<compile_context>
chip_gen: v5e
topology: v5e:2x2
jax: 0.10.0
libtpu: 0.0.40
codegen_flags: <defaults>
</compile_context>

<pallas_src>
import numpy as np
import jax
import jax.numpy as jnp
from jax.experimental import pallas as pl
from jax.experimental.pallas import tpu as pltpu

# ----------------------------------------------------------------------------- config
B, S, H = 2, 8, 32            # batch, max sentence length, HP_hidden_dim
BS = B * S                    # flattened (batch, position) lanes
MAX_SPAN = 4                  # data.term_span
VOCAB = 50
SPANLEN_EMB_DIM = 8           # data.spamEm_dim
LEN_TAB_PAD = 8               # spanLenEmb table (MAX_SPAN+1, 8) zero-padded to 8 rows

FEAT_DIM = 5 * H + SPANLEN_EMB_DIM   # node|head|first|last|tarAtt|lenEmb = 168
OUT_WIDTH = 256                      # lane-dense (2 x 128) packed output slab
META_WIDTH = 128                     # lane-dense per-span metadata slab
#   meta[:,  0:16]  sentence-softmax mask  (own sentence & s < seq_len)
#   meta[:, 16:32]  one-hot at span last token
#   meta[:, 32:96]  G: MAX_SPAN stacked one-hots at window token k (zero if k >= len)
#   meta[:, 96:128] zero padding
SMASK_OFF = 0
LAST_OFF = BS
G_OFF = 2 * BS

TILE = 128                    # spans per grid step; realistic N gives a multi-step
                              # "parallel" grid that also feeds both v7x TensorCores
NEG_INF = -1e30


# ----------------------------------------------------------------------------- kernel
def span_feature_kernel(meta_ref, a_ref, at_ref, attrow_ref, wh2v_ref, bh2v_ref,
                        lenemb_ref, out_ref):
    """Hot path of get_span_features (HIDDEN branch) for TILE spans at once.

    The only per-span streams are the 128-lane metadata slab in and the
    256-lane packed feature slab out; everything else is a small resident block.
    """
    T = TILE
    A = a_ref[...]                               # (BS, H)  attended hidden, f32
    A_T = at_ref[...]                            # (H, BS)
    meta = meta_ref[...]                         # (T, META_WIDTH)

    smask = meta[:, SMASK_OFF:SMASK_OFF + BS]    # (T, BS) own-sentence validity mask
    last1h = meta[:, LAST_OFF:LAST_OFF + BS]     # (T, BS) one-hot at span end-1
    gk = [meta[:, G_OFF + k * BS:G_OFF + (k + 1) * BS] for k in range(MAX_SPAN)]

    # window token k of every span gathered on the MXU:
    #   wins[k][n] = attended[sent_id_n, start_n + k]  (zero row if k >= span_len)
    wins = [jnp.dot(g, A, preferred_element_type=jnp.float32) for g in gk]

    spanmask = gk[0]
    span_sum = wins[0]
    for k in range(1, MAX_SPAN):
        spanmask = spanmask + gk[k]
        span_sum = span_sum + wins[k]
    slen = jnp.sum(spanmask, axis=-1, keepdims=True)            # (T, 1), exact ints

    # pairVec = mean(sentHid[start:end])
    pair_vec = span_sum * pl.reciprocal(slen, approx=True)      # (T, H)

    # pairTermScore = softmax(sentHid @ pairVec) over own-sentence tokens; tarAtt
    s_scores = jnp.dot(pair_vec, A_T, preferred_element_type=jnp.float32)   # (T, BS)
    s_scores = jnp.where(smask > 0.5, s_scores, NEG_INF)
    s_exp = jnp.exp(s_scores - jnp.max(s_scores, axis=-1, keepdims=True)) * smask
    s_alpha = s_exp * pl.reciprocal(jnp.sum(s_exp, axis=-1, keepdims=True), approx=True)
    tar = jnp.dot(s_alpha, A, preferred_element_type=jnp.float32)           # (T, H)

    # TermAttention node: masked learned-vector softmax over span tokens
    # (per-token scores vs. w_att are span-independent -> precomputed, broadcast here)
    att_b = jnp.broadcast_to(attrow_ref[...], (T, BS))
    n_scores = jnp.where(spanmask > 0.5, att_b, NEG_INF)
    n_exp = jnp.exp(n_scores - jnp.max(n_scores, axis=-1, keepdims=True)) * spanmask
    n_alpha = n_exp * pl.reciprocal(jnp.sum(n_exp, axis=-1, keepdims=True), approx=True)
    node = jnp.dot(n_alpha, A, preferred_element_type=jnp.float32)          # (T, H)

    # hidden2Vec(flattened zero-padded window): bf16 MXU operands, f32 accumulation
    w = wh2v_ref[...]                                            # (MAX_SPAN*H, H) bf16
    head = jnp.broadcast_to(bh2v_ref[...], (T, H))
    for k in range(MAX_SPAN):
        head = head + jnp.dot(wins[k].astype(jnp.bfloat16),
                              w[k * H:(k + 1) * H, :],
                              preferred_element_type=jnp.float32)

    first = wins[0]                                              # sentHid[start]
    last = jnp.dot(last1h, A, preferred_element_type=jnp.float32)  # sentHid[end-1]

    # span-length embedding via one-hot matmul against the zero-padded table
    lane_idx = jax.lax.broadcasted_iota(jnp.int32, (T, LEN_TAB_PAD), 1)
    len_oh = (lane_idx == slen.astype(jnp.int32)).astype(jnp.float32)
    len_emb = jnp.dot(len_oh, lenemb_ref[...], preferred_element_type=jnp.float32)

    pad = jnp.zeros((T, OUT_WIDTH - FEAT_DIM), jnp.float32)
    out_ref[...] = jnp.concatenate([node, head, first, last, tar, len_emb, pad], axis=-1)


# ----------------------------------------------------------------------------- pallas wrapper
def run_span_features(meta, a_flat, a_flat_t, att_row, w_h2v_bf16, b_h2v, lenemb_pad):
    n_pad = meta.shape[0]
    const2 = lambda i: (0, 0)
    return pl.pallas_call(
        span_feature_kernel,
        out_shape=jax.ShapeDtypeStruct((n_pad, OUT_WIDTH), jnp.float32),
        grid=(n_pad // TILE,),
        in_specs=[
            pl.BlockSpec((TILE, META_WIDTH), lambda i: (i, 0)),    # per-span metadata slab
            pl.BlockSpec((BS, H), const2),                         # attended hidden (resident)
            pl.BlockSpec((H, BS), const2),                         # its transpose
            pl.BlockSpec((1, BS), const2),                         # TermAttention token scores
            pl.BlockSpec((MAX_SPAN * H, H), const2),               # hidden2Vec weight (bf16)
            pl.BlockSpec((1, H), const2),                          # hidden2Vec bias
            pl.BlockSpec((LEN_TAB_PAD, SPANLEN_EMB_DIM), const2),  # padded spanLenEmb table
        ],
        out_specs=pl.BlockSpec((TILE, OUT_WIDTH), lambda i: (i, 0)),
        compiler_params=pltpu.CompilerParams(
            dimension_semantics=("parallel",),          # spans independent (v7x 2-core friendly)
            vmem_limit_bytes=32 * 1024 * 1024),         # explicit; actual use < 1 MiB per step
    )(meta, a_flat, a_flat_t, att_row, w_h2v_bf16, b_h2v, lenemb_pad)


# ----------------------------------------------------------------------------- host-side glue (pure Python bookkeeping from the module)
def get_candidate_span_pairs(seq_lengths, max_span):
    # TODO(synk): original uses list(set(...)) whose ordering is Python-hash
    # dependent; deterministic first-occurrence order is used here.
    span_pairs = []
    for L in seq_lengths:
        sent_pairs = []
        for start in range(int(L)):
            seen, tmp = set(), []
            for k in range(max_span):
                end = min(start + k, int(L) - 1)
                sp = (start, end + 1)
                if sp not in seen:
                    seen.add(sp)
                    tmp.append(sp)
            sent_pairs.extend(tmp)
        span_pairs.append(sent_pairs)
    return span_pairs


def reformat_labels(golden_labels):
    golden_spans, golden_class, golden_term_num = [], [], []
    for sent_span in golden_labels:
        golden_spans.append([(itm[0], itm[1] + 1) for itm in sent_span])
        golden_class.append([itm[2] for itm in sent_span])
        golden_term_num.append(len(sent_span) if sent_span[0][1] != -1 else 0)
    return golden_spans, golden_class, golden_term_num


def get_sent_slice_result(sentence_slice, results):
    out = []
    for itm in sentence_slice:
        out.append(results[itm[0]:itm[-1] + 1])
    return out


def get_gold_index(golden_spans, sent_span_candi, sent_slice):
    golden_ids = []
    golden_sent_ids = [[] for _ in range(len(sent_span_candi))]
    oov = 0
    for sid, (gold_, candi_, can_ids) in enumerate(zip(golden_spans, sent_span_candi, sent_slice)):
        for gold in gold_:
            try:
                tmp = can_ids[candi_.index(gold)]
            except ValueError:
                oov += 1
                continue
            golden_ids.append(tmp)
            golden_sent_ids[sid].append(tmp)
    return golden_ids, golden_sent_ids, oov


def build_span_meta(flat_span_pairs, flat_sent_ids, seq_lengths, n_pad):
    """One lane-dense (n_pad, 128) f32 slab per span: [smask | last1h | window one-hots]."""
    meta = np.zeros((n_pad, META_WIDTH), np.float32)
    # padding rows behave like a valid length-1 span at token 0 of sentence 0 (sliced off later)
    meta[:, SMASK_OFF] = 1.0
    meta[:, LAST_OFF] = 1.0
    meta[:, G_OFF] = 1.0
    for n, ((s0, e0), sid) in enumerate(zip(flat_span_pairs, flat_sent_ids)):
        L = e0 - s0
        base = sid * S
        row = np.zeros((META_WIDTH,), np.float32)
        row[SMASK_OFF + base:SMASK_OFF + base + int(seq_lengths[sid])] = 1.0
        row[LAST_OFF + base + e0 - 1] = 1.0
        for k in range(L):
            row[G_OFF + k * BS + base + s0 + k] = 1.0
        meta[n] = row
    return meta


# ----------------------------------------------------------------------------- full forward
def feature_model_forward(params, word_inputs, seq_lengths, mask_f, batch_label):
    # --- WordSequence stand-in (plain XLA glue) ---
    # TODO(synk): WordSequence (char extractor + BiLSTM) not available; use
    # embedding lookup + tanh(linear) with identical output shape (B, S, H).
    word_emb = params["word_emb"][word_inputs]                         # (B, S, H)
    hidden = jnp.tanh(word_emb @ params["W_enc"] + params["b_enc"])    # (B, S, H)

    # --- MaskedQueryAttention stand-in (plain XLA; too tiny for a kernel launch) ---
    q = params["term_query"]                                           # (1, H)
    q_scores = jnp.einsum("bsh,h->bs", hidden, q[0])
    q_scores = jnp.where(mask_f > 0.5, q_scores, NEG_INF)
    q_exp = jnp.exp(q_scores - jnp.max(q_scores, axis=-1, keepdims=True)) * mask_f
    q_alpha = q_exp / jnp.sum(q_exp, axis=-1, keepdims=True)
    attended = hidden * q_alpha[:, :, None]                            # (B, S, H)

    a_flat = attended.reshape(BS, H)                                   # resident (B*S, H)
    a_flat_t = a_flat.T
    # TermAttention per-token scores are span-independent: precompute once.
    att_row = (a_flat @ params["w_att"][0]).reshape(1, BS)

    # --- label bookkeeping (host Python, identical to module) ---
    golden_labels = [bat_[0] for bat_ in batch_label]
    golden_spans, _, _ = reformat_labels(golden_labels)

    # --- candidate spans (host Python, identical to module) ---
    span_pairs = get_candidate_span_pairs(seq_lengths, MAX_SPAN)
    flat_sent_ids, flat_span_pairs = [], []
    sentence_slice = [[] for _ in range(len(span_pairs))]
    pid = 0
    for sid, pairs in enumerate(span_pairs):
        for sp in pairs:
            flat_sent_ids.append(sid)
            flat_span_pairs.append(sp)
            sentence_slice[sid].append(pid)
            pid += 1
    n_span = len(flat_span_pairs)
    n_pad = ((n_span + TILE - 1) // TILE) * TILE

    meta = jnp.asarray(build_span_meta(flat_span_pairs, flat_sent_ids, seq_lengths, n_pad))

    lenemb_pad = jnp.zeros((LEN_TAB_PAD, SPANLEN_EMB_DIM), jnp.float32)
    lenemb_pad = lenemb_pad.at[:MAX_SPAN + 1].set(params["spanlen_emb"])

    # --- span-feature hot path : single Pallas kernel, packed lane-dense output ---
    out = run_span_features(meta, a_flat, a_flat_t, att_row,
                            params["W_h2v"].astype(jnp.bfloat16),
                            params["b_h2v"], lenemb_pad)
    span_embs = out[:n_span, :FEAT_DIM]   # [node|head|first|last|tarAtt|lenEmb] = 168

    # --- gold index bookkeeping (host Python, identical to module) ---
    sent_span_candidate = get_sent_slice_result(sentence_slice, flat_span_pairs)
    flat_golden_indexes, _, _ = get_gold_index(golden_spans, sent_span_candidate,
                                               sentence_slice)

    return span_embs, flat_sent_ids, flat_span_pairs, flat_golden_indexes, sentence_slice


# ----------------------------------------------------------------------------- main
def init_params(key):
    ks = jax.random.split(key, 7)
    return {
        "word_emb":    jax.random.normal(ks[0], (VOCAB, H), jnp.float32) * 0.1,
        "W_enc":       jax.random.normal(ks[1], (H, H), jnp.float32) * 0.1,
        "b_enc":       jnp.zeros((H,), jnp.float32),
        "term_query":  jax.random.normal(ks[2], (1, H), jnp.float32),        # TermQuery
        "w_att":       jax.random.normal(ks[3], (1, H), jnp.float32) * 0.1,  # TermAttention vec
        "W_h2v":       jax.random.normal(ks[4], (MAX_SPAN * H, H), jnp.float32) * 0.05,
        "b_h2v":       jnp.zeros((1, H), jnp.float32),
        "spanlen_emb": jax.random.normal(ks[5], (MAX_SPAN + 1, SPANLEN_EMB_DIM),
                                         jnp.float32) * 0.1,
    }


if __name__ == "__main__":
    key = jax.random.PRNGKey(0)
    pkey, wkey = jax.random.split(key)
    params = init_params(pkey)

    word_inputs = jax.random.randint(wkey, (B, S), 0, VOCAB, dtype=jnp.int32)
    seq_lengths = [8, 6]
    mask_np = np.zeros((B, S), np.float32)
    for b, L in enumerate(seq_lengths):
        mask_np[b, :L] = 1.0
    mask_f = jnp.asarray(mask_np)
    # batch_label: per sentence [(start, end_inclusive, class)], wrapped as in module
    batch_label = [([(0, 1, 0), (3, 4, 1)],), ([(2, 3, 1)],)]

    span_embs, flat_sent_ids, flat_span_pairs, flat_gold_idx, sentence_slice = \
        feature_model_forward(params, word_inputs, seq_lengths, mask_f, batch_label)

    span_embs = jax.block_until_ready(span_embs)
    assert span_embs.shape == (len(flat_span_pairs), 5 * H + SPANLEN_EMB_DIM)
    assert np.all(np.isfinite(np.asarray(span_embs)))
    print("KERNEL_OK")
</pallas_src>

<mosaic_0001>
module attributes {stable_mosaic.version = 11 : i64} {
  func.func @span_feature_kernel(%arg0: i32, %arg1: memref<128x128xf32, #tpu.memory_space<vmem>>, %arg2: memref<16x32xf32, #tpu.memory_space<vmem>>, %arg3: memref<32x16xf32, #tpu.memory_space<vmem>>, %arg4: memref<1x16xf32, #tpu.memory_space<vmem>>, %arg5: memref<128x32xbf16, #tpu.memory_space<vmem>>, %arg6: memref<1x32xf32, #tpu.memory_space<vmem>>, %arg7: memref<8x8xf32, #tpu.memory_space<vmem>>, %arg8: memref<128x256xf32, #tpu.memory_space<vmem>>) attributes {dimension_semantics = [#tpu.dimension_semantics<parallel>], iteration_bounds = array<i64: 1>, scalar_prefetch = 0 : i64, scratch_operands = 0 : i64, tpu.core_type = #tpu.core_type<tc>, window_params = [{transform_indices = @transform_0, window_bounds = array<i64: 128, 128>}, {pipeline_mode = #tpu.pipeline_mode<synchronous>, transform_indices = @transform_1, window_bounds = array<i64: 16, 32>}, {pipeline_mode = #tpu.pipeline_mode<synchronous>, transform_indices = @transform_2, window_bounds = array<i64: 32, 16>}, {pipeline_mode = #tpu.pipeline_mode<synchronous>, transform_indices = @transform_3, window_bounds = array<i64: 1, 16>}, {pipeline_mode = #tpu.pipeline_mode<synchronous>, transform_indices = @transform_4, window_bounds = array<i64: 128, 32>}, {pipeline_mode = #tpu.pipeline_mode<synchronous>, transform_indices = @transform_5, window_bounds = array<i64: 1, 32>}, {pipeline_mode = #tpu.pipeline_mode<synchronous>, transform_indices = @transform_6, window_bounds = array<i64: 8, 8>}, {transform_indices = @transform_7, window_bounds = array<i64: 128, 256>}]} {
    %c0 = arith.constant 0 : index
    %c0_0 = arith.constant 0 : index
    %0 = vector.load %arg2[%c0, %c0_0] : memref<16x32xf32, #tpu.memory_space<vmem>>, vector<16x32xf32>
    %c0_1 = arith.constant 0 : index
    %c0_2 = arith.constant 0 : index
    %1 = vector.load %arg3[%c0_1, %c0_2] : memref<32x16xf32, #tpu.memory_space<vmem>>, vector<32x16xf32>
    %c0_3 = arith.constant 0 : index
    %c0_4 = arith.constant 0 : index
    %2 = vector.load %arg1[%c0_3, %c0_4] : memref<128x128xf32, #tpu.memory_space<vmem>>, vector<128x128xf32>
    %3 = vector.extract_strided_slice %2 {offsets = [0, 0], sizes = [128, 16], strides = [1, 1]} : vector<128x128xf32> to vector<128x16xf32>
    %4 = vector.extract_strided_slice %2 {offsets = [0, 16], sizes = [128, 16], strides = [1, 1]} : vector<128x128xf32> to vector<128x16xf32>
    %5 = vector.extract_strided_slice %2 {offsets = [0, 32], sizes = [128, 16], strides = [1, 1]} : vector<128x128xf32> to vector<128x16xf32>
    %6 = vector.extract_strided_slice %2 {offsets = [0, 48], sizes = [128, 16], strides = [1, 1]} : vector<128x128xf32> to vector<128x16xf32>
    %7 = vector.extract_strided_slice %2 {offsets = [0, 64], sizes = [128, 16], strides = [1, 1]} : vector<128x128xf32> to vector<128x16xf32>
    %8 = vector.extract_strided_slice %2 {offsets = [0, 80], sizes = [128, 16], strides = [1, 1]} : vector<128x128xf32> to vector<128x16xf32>
    %cst = arith.constant dense<0.000000e+00> : vector<128x32xf32>
    %9 = tpu.matmul %5, %0, %cst {dimension_numbers = #tpu.dot_dimension_numbers<[1], [0], [0], [1], [0, 0, 1, 1], [], []>} : vector<128x16xf32>, vector<16x32xf32>, vector<128x32xf32> -> vector<128x32xf32>
    %cst_5 = arith.constant dense<0.000000e+00> : vector<128x32xf32>
    %10 = tpu.matmul %6, %0, %cst_5 {dimension_numbers = #tpu.dot_dimension_numbers<[1], [0], [0], [1], [0, 0, 1, 1], [], []>} : vector<128x16xf32>, vector<16x32xf32>, vector<128x32xf32> -> vector<128x32xf32>
    %cst_6 = arith.constant dense<0.000000e+00> : vector<128x32xf32>
    %11 = tpu.matmul %7, %0, %cst_6 {dimension_numbers = #tpu.dot_dimension_numbers<[1], [0], [0], [1], [0, 0, 1, 1], [], []>} : vector<128x16xf32>, vector<16x32xf32>, vector<128x32xf32> -> vector<128x32xf32>
    %cst_7 = arith.constant dense<0.000000e+00> : vector<128x32xf32>
    %12 = tpu.matmul %8, %0, %cst_7 {dimension_numbers = #tpu.dot_dimension_numbers<[1], [0], [0], [1], [0, 0, 1, 1], [], []>} : vector<128x16xf32>, vector<16x32xf32>, vector<128x32xf32> -> vector<128x32xf32>
    %13 = arith.addf %5, %6 : vector<128x16xf32>
    %14 = arith.addf %9, %10 : vector<128x32xf32>
    %15 = arith.addf %13, %7 : vector<128x16xf32>
    %16 = arith.addf %14, %11 : vector<128x32xf32>
    %17 = arith.addf %15, %8 : vector<128x16xf32>
    %18 = arith.addf %16, %12 : vector<128x32xf32>
    %cst_8 = arith.constant dense<0.000000e+00> : vector<128xf32>
    %19 = vector.multi_reduction <add>, %17, %cst_8 [1] : vector<128x16xf32> to vector<128xf32>
    %20 = vector.shape_cast %19 : vector<128xf32> to vector<128x1xf32>
    %21 = tpu.reciprocal %20 {approx = true} : vector<128x1xf32> -> vector<128x1xf32>
    %22 = vector.broadcast %21 : vector<128x1xf32> to vector<128x32xf32>
    %23 = arith.mulf %18, %22 : vector<128x32xf32>
    %cst_9 = arith.constant dense<0.000000e+00> : vector<128x16xf32>
    %24 = tpu.matmul %23, %1, %cst_9 {dimension_numbers = #tpu.dot_dimension_numbers<[1], [0], [0], [1], [0, 0, 1, 1], [], []>} : vector<128x32xf32>, vector<32x16xf32>, vector<128x16xf32> -> vector<128x16xf32>
    %cst_10 = arith.constant 5.000000e-01 : f32
    %25 = vector.broadcast %cst_10 : f32 to vector<128x16xf32>
    %26 = arith.cmpf ogt, %3, %25 : vector<128x16xf32>
    %cst_11 = arith.constant -1.000000e+30 : f32
    %27 = vector.broadcast %cst_11 : f32 to vector<128x16xf32>
    %28 = arith.select %26, %24, %27 : vector<128x16xi1>, vector<128x16xf32>
    %cst_12 = arith.constant dense<0xFF800000> : vector<128xf32>
    %29 = vector.multi_reduction <maximumf>, %28, %cst_12 [1] : vector<128x16xf32> to vector<128xf32>
    %30 = vector.shape_cast %29 : vector<128xf32> to vector<128x1xf32>
    %31 = vector.broadcast %30 : vector<128x1xf32> to vector<128x16xf32>
    %32 = arith.subf %28, %31 : vector<128x16xf32>
    %33 = math.exp %32 : vector<128x16xf32>
    %34 = arith.mulf %33, %3 : vector<128x16xf32>
    %cst_13 = arith.constant dense<0.000000e+00> : vector<128xf32>
    %35 = vector.multi_reduction <add>, %34, %cst_13 [1] : vector<128x16xf32> to vector<128xf32>
    %36 = vector.shape_cast %35 : vector<128xf32> to vector<128x1xf32>
    %37 = tpu.reciprocal %36 {approx = true} : vector<128x1xf32> -> vector<128x1xf32>
    %38 = vector.broadcast %37 : vector<128x1xf32> to vector<128x16xf32>
    %39 = arith.mulf %34, %38 : vector<128x16xf32>
    %cst_14 = arith.constant dense<0.000000e+00> : vector<128x32xf32>
    %40 = tpu.matmul %39, %0, %cst_14 {dimension_numbers = #tpu.dot_dimension_numbers<[1], [0], [0], [1], [0, 0, 1, 1], [], []>} : vector<128x16xf32>, vector<16x32xf32>, vector<128x32xf32> -> vector<128x32xf32>
    %c0_15 = arith.constant 0 : index
    %c0_16 = arith.constant 0 : index
    %41 = vector.load %arg4[%c0_15, %c0_16] : memref<1x16xf32, #tpu.memory_space<vmem>>, vector<1x16xf32>
    %42 = vector.shape_cast %41 : vector<1x16xf32> to vector<1x16xf32>
    %43 = vector.broadcast %42 : vector<1x16xf32> to vector<128x16xf32>
    %cst_17 = arith.constant 5.000000e-01 : f32
    %44 = vector.broadcast %cst_17 : f32 to vector<128x16xf32>
    %45 = arith.cmpf ogt, %17, %44 : vector<128x16xf32>
    %cst_18 = arith.constant -1.000000e+30 : f32
    %46 = vector.broadcast %cst_18 : f32 to vector<128x16xf32>
    %47 = arith.select %45, %43, %46 : vector<128x16xi1>, vector<128x16xf32>
    %cst_19 = arith.constant dense<0xFF800000> : vector<128xf32>
    %48 = vector.multi_reduction <maximumf>, %47, %cst_19 [1] : vector<128x16xf32> to vector<128xf32>
    %49 = vector.shape_cast %48 : vector<128xf32> to vector<128x1xf32>
    %50 = vector.broadcast %49 : vector<128x1xf32> to vector<128x16xf32>
    %51 = arith.subf %47, %50 : vector<128x16xf32>
    %52 = math.exp %51 : vector<128x16xf32>
    %53 = arith.mulf %52, %17 : vector<128x16xf32>
    %cst_20 = arith.constant dense<0.000000e+00> : vector<128xf32>
    %54 = vector.multi_reduction <add>, %53, %cst_20 [1] : vector<128x16xf32> to vector<128xf32>
    %55 = vector.shape_cast %54 : vector<128xf32> to vector<128x1xf32>
    %56 = tpu.reciprocal %55 {approx = true} : vector<128x1xf32> -> vector<128x1xf32>
    %57 = vector.broadcast %56 : vector<128x1xf32> to vector<128x16xf32>
    %58 = arith.mulf %53, %57 : vector<128x16xf32>
    %cst_21 = arith.constant dense<0.000000e+00> : vector<128x32xf32>
    %59 = tpu.matmul %58, %0, %cst_21 {dimension_numbers = #tpu.dot_dimension_numbers<[1], [0], [0], [1], [0, 0, 1, 1], [], []>} : vector<128x16xf32>, vector<16x32xf32>, vector<128x32xf32> -> vector<128x32xf32>
    %c0_22 = arith.constant 0 : index
    %c0_23 = arith.constant 0 : index
    %60 = vector.load %arg5[%c0_22, %c0_23] : memref<128x32xbf16, #tpu.memory_space<vmem>>, vector<128x32xbf16>
    %c0_24 = arith.constant 0 : index
    %c0_25 = arith.constant 0 : index
    %61 = vector.load %arg6[%c0_24, %c0_25] : memref<1x32xf32, #tpu.memory_space<vmem>>, vector<1x32xf32>
    %62 = vector.shape_cast %61 : vector<1x32xf32> to vector<1x32xf32>
    %63 = vector.broadcast %62 : vector<1x32xf32> to vector<128x32xf32>
    %64 = arith.truncf %9 : vector<128x32xf32> to vector<128x32xbf16>
    %65 = vector.extract_strided_slice %60 {offsets = [0, 0], sizes = [32, 32], strides = [1, 1]} : vector<128x32xbf16> to vector<32x32xbf16>
    %cst_26 = arith.constant dense<0.000000e+00> : vector<128x32xf32>
    %66 = tpu.matmul %64, %65, %cst_26 {dimension_numbers = #tpu.dot_dimension_numbers<[1], [0], [0], [1], [0, 0, 1, 1], [], []>} : vector<128x32xbf16>, vector<32x32xbf16>, vector<128x32xf32> -> vector<128x32xf32>
    %67 = arith.addf %63, %66 : vector<128x32xf32>
    %68 = arith.truncf %10 : vector<128x32xf32> to vector<128x32xbf16>
    %69 = vector.extract_strided_slice %60 {offsets = [32, 0], sizes = [32, 32], strides = [1, 1]} : vector<128x32xbf16> to vector<32x32xbf16>
    %cst_27 = arith.constant dense<0.000000e+00> : vector<128x32xf32>
    %70 = tpu.matmul %68, %69, %cst_27 {dimension_numbers = #tpu.dot_dimension_numbers<[1], [0], [0], [1], [0, 0, 1, 1], [], []>} : vector<128x32xbf16>, vector<32x32xbf16>, vector<128x32xf32> -> vector<128x32xf32>
    %71 = arith.addf %67, %70 : vector<128x32xf32>
    %72 = arith.truncf %11 : vector<128x32xf32> to vector<128x32xbf16>
    %73 = vector.extract_strided_slice %60 {offsets = [64, 0], sizes = [32, 32], strides = [1, 1]} : vector<128x32xbf16> to vector<32x32xbf16>
    %cst_28 = arith.constant dense<0.000000e+00> : vector<128x32xf32>
    %74 = tpu.matmul %72, %73, %cst_28 {dimension_numbers = #tpu.dot_dimension_numbers<[1], [0], [0], [1], [0, 0, 1, 1], [], []>} : vector<128x32xbf16>, vector<32x32xbf16>, vector<128x32xf32> -> vector<128x32xf32>
    %75 = arith.addf %71, %74 : vector<128x32xf32>
    %76 = arith.truncf %12 : vector<128x32xf32> to vector<128x32xbf16>
    %77 = vector.extract_strided_slice %60 {offsets = [96, 0], sizes = [32, 32], strides = [1, 1]} : vector<128x32xbf16> to vector<32x32xbf16>
    %cst_29 = arith.constant dense<0.000000e+00> : vector<128x32xf32>
    %78 = tpu.matmul %76, %77, %cst_29 {dimension_numbers = #tpu.dot_dimension_numbers<[1], [0], [0], [1], [0, 0, 1, 1], [], []>} : vector<128x32xbf16>, vector<32x32xbf16>, vector<128x32xf32> -> vector<128x32xf32>
    %79 = arith.addf %75, %78 : vector<128x32xf32>
    %cst_30 = arith.constant dense<0.000000e+00> : vector<128x32xf32>
    %80 = tpu.matmul %4, %0, %cst_30 {dimension_numbers = #tpu.dot_dimension_numbers<[1], [0], [0], [1], [0, 0, 1, 1], [], []>} : vector<128x16xf32>, vector<16x32xf32>, vector<128x32xf32> -> vector<128x32xf32>
    %81 = tpu.iota {dimensions = array<i32: 1>} : vector<128x8xi32>
    %82 = arith.fptosi %20 : vector<128x1xf32> to vector<128x1xi32>
    %83 = vector.broadcast %82 : vector<128x1xi32> to vector<128x8xi32>
    %84 = arith.cmpi eq, %81, %83 : vector<128x8xi32>
    %85 = arith.extui %84 : vector<128x8xi1> to vector<128x8xi32>
    %86 = arith.sitofp %85 : vector<128x8xi32> to vector<128x8xf32>
    %c0_31 = arith.constant 0 : index
    %c0_32 = arith.constant 0 : index
    %87 = vector.load %arg7[%c0_31, %c0_32] : memref<8x8xf32, #tpu.memory_space<vmem>>, vector<8x8xf32>
    %cst_33 = arith.constant dense<0.000000e+00> : vector<128x8xf32>
    %88 = tpu.matmul %86, %87, %cst_33 {dimension_numbers = #tpu.dot_dimension_numbers<[1], [0], [0], [1], [0, 0, 1, 1], [], []>} : vector<128x8xf32>, vector<8x8xf32>, vector<128x8xf32> -> vector<128x8xf32>
    %cst_34 = arith.constant 0.000000e+00 : f32
    %89 = vector.broadcast %cst_34 : f32 to vector<128x88xf32>
    %90 = tpu.concatenate %59, %79, %9, %80, %40, %88, %89 in 1 : vector<128x32xf32>, vector<128x32xf32>, vector<128x32xf32>, vector<128x32xf32>, vector<128x32xf32>, vector<128x8xf32>, vector<128x88xf32> -> vector<128x256xf32>
    %c0_35 = arith.constant 0 : index
    %c0_36 = arith.constant 0 : index
    %91 = vector.load %arg8[%c0_35, %c0_36] : memref<128x256xf32, #tpu.memory_space<vmem>>, vector<128x256xf32>
    tpu.vector_store %arg8[%c0_35, %c0_36], %90 {strides = array<i32>} : memref<128x256xf32, #tpu.memory_space<vmem>>, vector<128x256xf32>,
    return
  }
  func.func @transform_0(%arg0: i32) -> (i32, i32) {
    %c0_i32 = arith.constant 0 : i32
    %c0_i32_0 = arith.constant 0 : i32
    return %arg0, %c0_i32 : i32, i32
  }
  func.func @transform_1(%arg0: i32) -> (i32, i32) {
    %c0_i32 = arith.constant 0 : i32
    %c0_i32_0 = arith.constant 0 : i32
    %c0_i32_1 = arith.constant 0 : i32
    return %c0_i32, %c0_i32_0 : i32, i32
  }
  func.func @transform_2(%arg0: i32) -> (i32, i32) {
    %c0_i32 = arith.constant 0 : i32
    %c0_i32_0 = arith.constant 0 : i32
    %c0_i32_1 = arith.constant 0 : i32
    return %c0_i32, %c0_i32_0 : i32, i32
  }
  func.func @transform_3(%arg0: i32) -> (i32, i32) {
    %c0_i32 = arith.constant 0 : i32
    %c0_i32_0 = arith.constant 0 : i32
    %c0_i32_1 = arith.constant 0 : i32
    return %c0_i32, %c0_i32_0 : i32, i32
  }
  func.func @transform_4(%arg0: i32) -> (i32, i32) {
    %c0_i32 = arith.constant 0 : i32
    %c0_i32_0 = arith.constant 0 : i32
    %c0_i32_1 = arith.constant 0 : i32
    return %c0_i32, %c0_i32_0 : i32, i32
  }
  func.func @transform_5(%arg0: i32) -> (i32, i32) {
    %c0_i32 = arith.constant 0 : i32
    %c0_i32_0 = arith.constant 0 : i32
    %c0_i32_1 = arith.constant 0 : i32
    return %c0_i32, %c0_i32_0 : i32, i32
  }
  func.func @transform_6(%arg0: i32) -> (i32, i32) {
    %c0_i32 = arith.constant 0 : i32
    %c0_i32_0 = arith.constant 0 : i32
    %c0_i32_1 = arith.constant 0 : i32
    return %c0_i32, %c0_i32_0 : i32, i32
  }
  func.func @transform_7(%arg0: i32) -> (i32, i32) {
    %c0_i32 = arith.constant 0 : i32
    %c0_i32_0 = arith.constant 0 : i32
    return %arg0, %c0_i32 : i32, i32
  }
}

</mosaic_0001>

<bundles_post_ra>
// kernel: tpu_custom_call.1
= control target key start
LH: loop header
LB: loop body
LE: loop exit
PB: predicated region body
PF: predicated region fallthrough
CT: control target
= control target key end

     0   :  { %12 = vsyncpa [#allocation3], 0  ;;  %s5628_s0 = inlined_call_operand.hbm [shape: f32[128,128], index: 0, kind: input, shape index: {}]   ;;  %s5629_s1 = inlined_call_operand.vmem [shape: f32[16,32], index: 1, kind: input, shape index: {}]   ;;  %s5630_s2 = inlined_call_operand.vmem [shape: f32[32,16], index: 2, kind: input, shape index: {}]   ;;  %s5631_s3 = inlined_call_operand.vmem [shape: f32[1,16], index: 3, kind: input, shape index: {}]   ;;  %s5632_s4 = inlined_call_operand.vmem [shape: bf16[128,32], index: 4, kind: input, shape index: {}]   ;;  %s5633_s5 = inlined_call_operand.vmem [shape: f32[1,32], index: 5, kind: input, shape index: {}]   ;;  %s5634_s6 = inlined_call_operand.vmem [shape: f32[8,8], index: 6, kind: input, shape index: {}]   ;;  %s5635_s7 = inlined_call_operand.hbm [shape: f32[128,256], index: 7, kind: output, shape index: {}]  }
   0x1   :  { %13 = vsyncpa [#allocation4], 0  ;;  %s18_s26 = sshll.u32 %s5628_s0, 4  ;;  %s3496_s27 = smov [#allocation2]   ;;  %s19_s26 = int_to_ptr.hbm [resolvable:$true] %s18_s26 }
   0x2   :  { %s20_s28 = sshll.u32 %s3496_s27, 4  ;;  %s3497_s29 = smov 128   ;;  %s21_s28 = int_to_ptr.vmem [resolvable:$true] %s20_s28 }
   0x3   :  { %s3498_s30 = smov 8  }
   0x4   :  { %26 = dma.hbm_to_vmem [thread:$0]  %s19_s26, 2048, %s21_s28, [#allocation3], %s3497_s29, %s3497_s29, %s3498_s30  }
   0x5   :  { %3492 = dma.done.wait [#allocation3], 2048  }
   0x6   :  { %3493 = vsyncadd [#allocation3], 4294965248  ;;  %v3552_v0 = vld [vmem:[#allocation2 + $0x60] sm:$0xff]  ;;  %v3554_v1 = vld [vmem:[#allocation2 + $0x48] sm:$0xff]  ;;  %s3499_s8 = smov 96   ;;  %s3500_s0 = smov 48  }
   0x7   :  { %v3556_v2 = vld [vmem:[#allocation2 + $0x40] sm:$0xff]  ;;  %106 = vrot.lane.b32.xlu1 %v3552_v0, %s3499_s8  ;;  %100 = vrot.lane.b32.xlu2 %v3554_v1, %s3499_s8  ;;  %v3564_v3 = vld [vmem:[#allocation2 + $0x68] sm:$0xff]  ;;  %v3576_v6 = vld [vmem:[#allocation2 + $0x70] sm:$0xff]  ;;  %s3501_s9 = smov 64   ;;  %s3502_s10 = smov 80   ;;  %vm114_vm0 = vcmask 130048  }
   0x8   :  { %98 = vrot.lane.b32.xlu0 %v3556_v2, %s3499_s8  ;;  %v3566_v4 = vld [vmem:[#allocation2 + $0x20] sm:$0xff]  ;;  %v3578_v7 = vld [vmem:[#allocation2 + $0x50] sm:$0xff]  ;;  %v3580_v8 = vld [vmem:[#allocation2 + $0x28] sm:$0xff]  ;;  %vm919_vm1 = vcmask 261120   ;;  %vm1408_vm3 = vcmask 392448   ;;  %s2921_s22 = sshll.u32 %s5635_s7, 4  ;;  %s2922_s22 = int_to_ptr.hbm [resolvable:$true] %s2921_s22 }
   0x9   :  { %v3568_v5 = vld [vmem:[#allocation2] sm:$0xff]  ;;  %v3588_v9 = vld [vmem:[#allocation2 + $0x78] sm:$0xff]  ;;  %v3592_v11 = vld [vmem:[#allocation2 + $0x30] sm:$0xff]  ;;  %s3507_s23 = smov 256   ;;  %s3508_s24 = smov 16  }
   0xa   :  { %v3590_v10 = vld [vmem:[#allocation2 + $0x58] sm:$0xff]  ;;  %v3608_v13 = vld [vmem:[#allocation2 + $0x8] sm:$0xff]  ;;  %v3616_v14 = vld [vmem:[#allocation2 + $0x10] sm:$0xff] }
   0xb   :  { %v3600_v12 = vld [vmem:[#allocation2 + $0x38] sm:$0xff]  ;;  %v3651_v16 = vld [vmem:[%s5629_s1 + $0x8] sm:$0xff]  ;;  %v3660_v17 = vld [vmem:[%s5629_s1] sm:$0xff]  ;;  %s3503_s1 = smov 112  }
   0xc   :  { %v3630_v15 = vld [vmem:[#allocation2 + $0x18] sm:$0xff]  ;;  %3167 = vmatpush.msra.mxu2 %v3651_v16  ;;  %3168 = vmatpush.msra.mxu3 %v3651_v16 }
   0xd   :  { %161 = vmatpush.msra.mxu0 %v3651_v16  ;;  %3166 = vmatpush.msra.mxu1 %v3651_v16 }
   0xe   :  { %3170 = vmatpush.msra.mxu2 %v3660_v17  ;;  %3171 = vmatpush.msra.mxu3 %v3660_v17 }
   0xf   :  { %108 = vrot.lane.b32.xlu2 %v3564_v3, %s3499_s8  ;;  %90 = vrot.lane.b32.xlu1 %v3566_v4, %s3499_s8 }
  0x10   :  { %82 = vrot.lane.b32.xlu0 %v3568_v5, %s3499_s8  ;;  %162 = vmatpush.msra.mxu0 %v3660_v17 }
  0x11   :  { %3169 = vmatpush.msra.mxu1 %v3660_v17  ;;  %419 = vmatpush.msrb.mxu2 %v3651_v16 }
  0x12   :  { %548 = vmatpush.msrb.mxu3 %v3651_v16 }
  0x13   :  { %290 = vmatpush.msrb.mxu1 %v3651_v16  ;;  %420 = vmatpush.msrb.mxu2 %v3660_v17 }
  0x14   :  { %549 = vmatpush.msrb.mxu3 %v3660_v17 }
  0x15   :  { %291 = vmatpush.msrb.mxu1 %v3660_v17 }
  0x17   :  { %110 = vrot.lane.b32.xlu2 %v3576_v6, %s3499_s8  ;;  %102 = vrot.lane.b32.xlu1 %v3578_v7, %s3499_s8 }
  0x18   :  { %92 = vrot.lane.b32.xlu0 %v3580_v8, %s3499_s8 }
  0x1f   :  { %112 = vrot.lane.b32.xlu2 %v3588_v9, %s3499_s8  ;;  %104 = vrot.lane.b32.xlu1 %v3590_v10, %s3499_s8 }
  0x20   :  { %94 = vrot.lane.b32.xlu0 %v3592_v11, %s3499_s8 }
  0x27   :  { %470 = vrot.lane.b32.xlu2 %v3568_v5, %s3500_s0  ;;  %341 = vrot.lane.b32.xlu1 %v3568_v5, %s3501_s9 }
  0x28   :  { %96 = vrot.lane.b32.xlu0 %v3600_v12, %s3499_s8 }
  0x2f   :  { %472 = vrot.lane.b32.xlu2 %v3608_v13, %s3500_s0  ;;  %343 = vrot.lane.b32.xlu1 %v3608_v13, %s3501_s9 }
  0x30   :  { %212 = vrot.lane.b32.xlu0 %v3568_v5, %s3502_s10 }
  0x37   :  { %345 = vrot.lane.b32.xlu2 %v3616_v14, %s3501_s9  ;;  %214 = vrot.lane.b32.xlu1 %v3608_v13, %s3502_s10 }
  0x38   :  { %84 = vrot.lane.b32.xlu0 %v3608_v13, %s3499_s8 }
  0x3f   :  { %216 = vrot.lane.b32.xlu2 %v3616_v14, %s3502_s10  ;;  %86 = vrot.lane.b32.xlu1 %v3616_v14, %s3499_s8 }
  0x40   :  { %474 = vrot.lane.b32.xlu0 %v3616_v14, %s3500_s0 }
  0x47   :  { %88 = vrot.lane.b32.xlu2 %v3630_v15, %s3499_s8  ;;  %476 = vrot.lane.b32.xlu1 %v3630_v15, %s3500_s0 }
  0x48   :  { %347 = vrot.lane.b32.xlu0 %v3630_v15, %s3501_s9 }
  0x4f   :  { %478 = vrot.lane.b32.xlu2 %v3566_v4, %s3500_s0  ;;  %349 = vrot.lane.b32.xlu1 %v3566_v4, %s3501_s9 }
  0x50   :  { %218 = vrot.lane.b32.xlu0 %v3630_v15, %s3502_s10 }
  0x57   :  { %480 = vrot.lane.b32.xlu2 %v3580_v8, %s3500_s0  ;;  %351 = vrot.lane.b32.xlu1 %v3580_v8, %s3501_s9 }
  0x58   :  { %220 = vrot.lane.b32.xlu0 %v3566_v4, %s3502_s10 }
  0x5f   :  { %353 = vrot.lane.b32.xlu2 %v3592_v11, %s3501_s9  ;;  %222 = vrot.lane.b32.xlu1 %v3580_v8, %s3502_s10 }
  0x60   :  { %599 = vrot.lane.b32.xlu0 %v3568_v5, %s3503_s1 }
  0x61   :  { %v3679_v18 = vpop.permute.xlu2 %100 }
  0x67   :  { %224 = vrot.lane.b32.xlu2 %v3592_v11, %s3502_s10  ;;  %601 = vrot.lane.b32.xlu1 %v3608_v13, %s3503_s1 }
  0x68   :  { %482 = vrot.lane.b32.xlu0 %v3592_v11, %s3500_s0 }
  0x69   :  { %v3688_v19 = vpop.permute.xlu2 %108 }
  0x6f   :  { %603 = vrot.lane.b32.xlu2 %v3616_v14, %s3503_s1  ;;  %484 = vrot.lane.b32.xlu1 %v3600_v12, %s3500_s0 }
  0x70   :  { %355 = vrot.lane.b32.xlu0 %v3600_v12, %s3501_s9 }
  0x71   :  { %v3696_v20 = vpop.permute.xlu2 %110 }
  0x77   :  { %486 = vrot.lane.b32.xlu2 %v3556_v2, %s3500_s0  ;;  %357 = vrot.lane.b32.xlu1 %v3556_v2, %s3501_s9 }
  0x78   :  { %226 = vrot.lane.b32.xlu0 %v3600_v12, %s3502_s10 }
  0x79   :  { %v3704_v21 = vpop.permute.xlu1 %106  ;;  %v3706_v22 = vpop.permute.xlu2 %112 }
  0x7a   :  { %v3708_v23 = vpop.permute.xlu0 %98  ;;  %2946 = vmatmul.msk.f32.vlgmr.msra.gmra.mxu3 %vm114_vm0, %v3704_v21 }
  0x7b   :  { %2942 = vmatmul.msk.f32.vlgmr.msra.gmra.mxu2 %vm114_vm0, %v3708_v23 }
  0x7c   :  { %1759 = vmatpush.msra.mxu2 %v3651_v16 }
  0x7e   :  { %1760 = vmatpush.msra.mxu2 %v3660_v17 }
  0x7f   :  { %359 = vrot.lane.b32.xlu2 %v3554_v1, %s3501_s9  ;;  %228 = vrot.lane.b32.xlu1 %v3556_v2, %s3502_s10 }
  0x80   :  { %605 = vrot.lane.b32.xlu0 %v3630_v15, %s3503_s1 }
  0x81   :  { %v3722_v24 = vpop.permute.xlu1 %90  ;;  %v471_v25 = vpop.permute.xlu2 %470 }
  0x82   :  { %v3724_v26 = vpop.permute.xlu0 %82  ;;  %2938 = vmatmul.msk.f32.vlgmr.msra.gmra.mxu1 %vm114_vm0, %v3722_v24  ;;  %2947 = vmatmul.msk.f32.gmra.mxu3 %vm114_vm0, %v3688_v19 }
  0x83   :  { %2934 = vmatmul.msk.f32.vlgmr.msra.gmra.mxu0 %vm114_vm0, %v3724_v26  ;;  %2943 = vmatmul.msk.f32.gmra.mxu2 %vm114_vm0, %v3679_v18 }
  0x84   :  { %1319 = vmatpush.msra.mxu1 %v3651_v16 }
  0x86   :  { %1320 = vmatpush.msra.mxu1 %v3660_v17 }
  0x87   :  { %230 = vrot.lane.b32.xlu2 %v3554_v1, %s3502_s10  ;;  %607 = vrot.lane.b32.xlu1 %v3566_v4, %s3503_s1 }
  0x88   :  { %488 = vrot.lane.b32.xlu0 %v3554_v1, %s3500_s0 }
  0x89   :  { %v3742_v27 = vpop.permute.xlu1 %102  ;;  %v473_v28 = vpop.permute.xlu2 %472 }
  0x8a   :  { %v3744_v29 = vpop.permute.xlu0 %92  ;;  %2948 = vmatmul.msk.f32.gmra.mxu3 %vm114_vm0, %v3696_v20 }
  0x8b   :  { %2939 = vmatmul.msk.f32.gmra.mxu1 %vm114_vm0, %v3744_v29  ;;  %2944 = vmatmul.msk.f32.gmra.mxu2 %vm114_vm0, %v3742_v27 }
  0x8f   :  { %609 = vrot.lane.b32.xlu2 %v3580_v8, %s3503_s1  ;;  %490 = vrot.lane.b32.xlu1 %v3578_v7, %s3500_s0 }
  0x90   :  { %361 = vrot.lane.b32.xlu0 %v3578_v7, %s3501_s9 }
  0x91   :  { %v3758_v30 = vpop.permute.xlu1 %104  ;;  %v346_v31 = vpop.permute.xlu2 %345 }
  0x92   :  { %v3760_v32 = vpop.permute.xlu0 %94  ;;  %2949 = vmatmul.msk.f32.gmra.mxu3 %vm114_vm0, %v3706_v22 }
  0x93   :  { %2940 = vmatmul.msk.f32.gmra.mxu1 %vm114_vm0, %v3760_v32  ;;  %2945 = vmatmul.msk.f32.gmra.mxu2 %vm114_vm0, %v3758_v30 }
  0x97   :  { %363 = vrot.lane.b32.xlu1 %v3590_v10, %s3501_s9 }
  0x98   :  { %232 = vrot.lane.b32.xlu0 %v3578_v7, %s3502_s10 }
  0x99   :  { %v217_v33 = vpop.permute.xlu2 %216  ;;  %v342_v34 = vpop.permute.xlu1 %341 }
  0x9a   :  { %v3772_v35 = vpop.permute.xlu0 %96  ;;  %2982 = vmatmul.msk.f32.vlgmr.msrb.gmra.mxu3 %vm114_vm0, %v471_v25 }
  0x9b   :  { %2941 = vmatmul.msk.f32.gmra.mxu1 %vm114_vm0, %v3772_v35  ;;  %2966 = vmatmul.msk.f32.vlgmr.msrb.gmra.mxu2 %vm114_vm0, %v342_v34 }
  0x9f   :  { %611 = vrot.lane.b32.xlu1 %v3592_v11, %s3503_s1 }
  0xa0   :  { %492 = vrot.lane.b32.xlu0 %v3590_v10, %s3500_s0 }
  0xa1   :  { %v3782_v36 = vpop.permute.xlu2 %88  ;;  %v344_v37 = vpop.permute.xlu1 %343 }
  0xa2   :  { %v213_v38 = vpop.permute.xlu0 %212  ;;  %2983 = vmatmul.msk.f32.gmra.mxu3 %vm114_vm0, %v473_v28 }
  0xa3   :  { %2950 = vmatmul.msk.f32.vlgmr.msrb.gmra.mxu1 %vm114_vm0, %v213_v38  ;;  %2967 = vmatmul.msk.f32.gmra.mxu2 %vm114_vm0, %v344_v37 }
  0xa8   :  { %365 = vrot.lane.b32.xlu0 %v3552_v0, %s3501_s9 }
  0xa9   :  { %v479_v39 = vpop.permute.xlu2 %478  ;;  %v215_v40 = vpop.permute.xlu1 %214 }
  0xaa   :  { %v85_v41 = vpop.permute.xlu0 %84 }
  0xab   :  { %2935 = vmatmul.msk.f32.gmra.mxu0 %vm114_vm0, %v85_v41  ;;  %2951 = vmatmul.msk.f32.gmra.mxu1 %vm114_vm0, %v215_v40 }
  0xac   :  { %2968 = vmatmul.msk.f32.gmra.mxu2 %vm114_vm0, %v346_v31 }
  0xb0   :  { %613 = vrot.lane.b32.xlu0 %v3600_v12, %s3503_s1 }
  0xb1   :  { %v481_v42 = vpop.permute.xlu2 %480  ;;  %v87_v43 = vpop.permute.xlu1 %86 }
  0xb2   :  { %v475_v44 = vpop.permute.xlu0 %474 }
  0xb3   :  { %2936 = vmatmul.msk.f32.gmra.mxu0 %vm114_vm0, %v87_v43  ;;  %2952 = vmatmul.msk.f32.gmra.mxu1 %vm114_vm0, %v217_v33 }
  0xb4   :  { %2984 = vmatmul.msk.f32.gmra.mxu3 %vm114_vm0, %v475_v44 }
  0xb9   :  { %v354_v45 = vpop.permute.xlu2 %353  ;;  %v477_v46 = vpop.permute.xlu1 %476 }
  0xba   :  { %v348_v47 = vpop.permute.xlu0 %347 }
  0xbb   :  { %2937 = vmatmul.msk.f32.gmra.mxu0 %vm114_vm0, %v3782_v36  ;;  %2969 = vmatmul.msk.f32.gmra.mxu2 %vm114_vm0, %v348_v47 }
  0xbc   :  { %2985 = vmatmul.msk.f32.gmra.mxu3 %vm114_vm0, %v477_v46 }
  0xc1   :  { %v3801_v48 = vpop.permute.xlu2 %224  ;;  %v350_v49 = vpop.permute.xlu1 %349 }
  0xc2   :  { %v3803_v50 = vpop.permute.xlu0 %218 }
  0xc3   :  { %2953 = vmatmul.msk.f32.gmra.mxu1 %vm114_vm0, %v3803_v50  ;;  %2970 = vmatmul.msk.f32.gmra.mxu2 %vm114_vm0, %v350_v49 }
  0xc4   :  { %2986 = vmatmul.msk.f32.gmra.mxu3 %vm114_vm0, %v479_v39 }
  0xc9   :  { %v3809_v51 = vpop.permute.xlu2 %603  ;;  %v352_v52 = vpop.permute.xlu1 %351 }
  0xca   :  { %v649_v53 = vadd.f32 %v3809_v51, %v3616_v14  ;;  %v3813_v54 = vpop.permute.xlu0 %220 }
  0xcb   :  { %2954 = vmatmul.msk.f32.gmra.mxu1 %vm114_vm0, %v3813_v54  ;;  %2971 = vmatmul.msk.f32.gmra.mxu2 %vm114_vm0, %v352_v52 }
  0xcc   :  { %v697_v55 = vadd.f32 %v649_v53, %v87_v43  ;;  %2987 = vmatmul.msk.f32.gmra.mxu3 %vm114_vm0, %v481_v42 }
  0xce   :  { %v3819_v56 = vadd.f32 %v697_v55, %v217_v33 }
  0xd0   :  { %795 = vrot.lane.b32.xlu0 %v3819_v56, %s3499_s8  ;;  %vm1375_vm6 = vcmp.gt.f32.partialorder %v3819_v56, 0.5 }
  0xd1   :  { %v3823_v57 = vpop.permute.xlu1 %222  ;;  %v487_v28 = vpop.permute.xlu2 %486 }
  0xd2   :  { %v3825_v58 = vpop.permute.xlu0 %599 }
  0xd3   :  { %v647_v59 = vadd.f32 %v3825_v58, %v3568_v5  ;;  %2955 = vmatmul.msk.f32.gmra.mxu1 %vm114_vm0, %v3823_v57  ;;  %2972 = vmatmul.msk.f32.gmra.mxu2 %vm114_vm0, %v354_v45 }
  0xd5   :  { %v695_v60 = vadd.f32 %v647_v59, %v3724_v26 }
  0xd7   :  { %v3833_v61 = vadd.f32 %v695_v60, %v213_v38 }
  0xd8   :  { %238 = vrot.lane.b32.xlu0 %v3564_v3, %s3502_s10 }
  0xd9   :  { %791 = vrot.lane.b32.xlu2 %v3833_v61, %s3499_s8  ;;  %v3839_v62 = vpop.permute.xlu1 %601  ;;  %v360_v34 = vpop.permute.xlu2 %359  ;;  %vm1373_vm2 = vcmp.gt.f32.partialorder %v3833_v61, 0.5 }
  0xda   :  { %v648_v63 = vadd.f32 %v3839_v62, %v3608_v13  ;;  %v483_v5 = vpop.permute.xlu0 %482 }
  0xdb   :  { %2956 = vmatmul.msk.f32.gmra.mxu1 %vm114_vm0, %v3801_v48  ;;  %2988 = vmatmul.msk.f32.gmra.mxu3 %vm114_vm0, %v483_v5 }
  0xdc   :  { %v696_v14 = vadd.f32 %v648_v63, %v85_v41 }
  0xde   :  { %v3846_v25 = vadd.f32 %v696_v14, %v215_v40 }
  0xe0   :  { %498 = vrot.lane.b32.xlu0 %v3576_v6, %s3500_s0  ;;  %793 = vrot.lane.b32.xlu1 %v3846_v25, %s3499_s8  ;;  %vm1374_vm4 = vcmp.gt.f32.partialorder %v3846_v25, 0.5 }
  0xe1   :  { %234 = vrot.lane.b32.xlu2 %v3590_v10, %s3502_s10  ;;  %v485_v26 = vpop.permute.xlu1 %484  ;;  %v3886_v41 = vpop.permute.xlu2 %230 }
  0xe2   :  { %v356_v13 = vpop.permute.xlu0 %355 }
  0xe3   :  { %2973 = vmatmul.msk.f32.gmra.mxu2 %vm114_vm0, %v356_v13  ;;  %2989 = vmatmul.msk.f32.gmra.mxu3 %vm114_vm0, %v485_v26 }
  0xe8   :  { %371 = vrot.lane.b32.xlu0 %v3588_v9, %s3501_s9  ;;  %236 = vrot.lane.b32.xlu1 %v3552_v0, %s3502_s10 }
  0xe9   :  { %494 = vrot.lane.b32.xlu2 %v3552_v0, %s3500_s0  ;;  %v358_v31 = vpop.permute.xlu1 %357 }
  0xea   :  { %v227_v33 = vpop.permute.xlu0 %226 }
  0xeb   :  { %2957 = vmatmul.msk.f32.gmra.mxu1 %vm114_vm0, %v227_v33  ;;  %2974 = vmatmul.msk.f32.gmra.mxu2 %vm114_vm0, %v358_v31 }
  0xec   :  { %2990 = vmatmul.msk.f32.gmra.mxu3 %vm114_vm0, %v487_v28 }
  0xf0   :  { %619 = vrot.lane.b32.xlu0 %v3578_v7, %s3503_s1  ;;  %496 = vrot.lane.b32.xlu1 %v3564_v3, %s3500_s0 }
  0xf1   :  { %367 = vrot.lane.b32.xlu2 %v3564_v3, %s3501_s9  ;;  %v3871_v37 = vpop.permute.xlu1 %228 }
  0xf2   :  { %v3873_v38 = vpop.permute.xlu0 %605 }
  0xf3   :  { %2958 = vmatmul.msk.f32.gmra.mxu1 %vm114_vm0, %v3871_v37  ;;  %2975 = vmatmul.msk.f32.gmra.mxu2 %vm114_vm0, %v360_v34  ;;  %v650_v39 = vadd.f32 %v3873_v38, %v3630_v15  ;;  %v3159_v34 = vld [vmem:[%s5632_s4 + $0x8] sm:$0xff] }
  0xf4   :  { %1880 = vmatpush.bf16.msra.mxu3 %v3159_v34 }
  0xf5   :  { %v698_v43 = vadd.f32 %v650_v39, %v3782_v36 }
  0xf7   :  { %v3895_v44 = vadd.f32 %v698_v43, %v3803_v50  ;;  %v3158_v43 = vld [vmem:[%s5632_s4] sm:$0xff] }
  0xf8   :  { %369 = vrot.lane.b32.xlu1 %v3576_v6, %s3501_s9  ;;  %1881 = vmatpush.bf16.msra.mxu3 %v3158_v43 }
  0xf9   :  { %615 = vrot.lane.b32.xlu2 %v3556_v2, %s3503_s1  ;;  %v3884_v40 = vpop.permute.xlu1 %607  ;;  %vm1376_vm8 = vcmp.gt.f32.partialorder %v3895_v44, 0.5 }
  0xfa   :  { %v489_v42 = vpop.permute.xlu0 %488  ;;  %v651_v15 = vadd.f32 %v3884_v40, %v3566_v4 }
  0xfb   :  { %2959 = vmatmul.msk.f32.gmra.mxu1 %vm114_vm0, %v3886_v41  ;;  %2991 = vmatmul.msk.f32.gmra.mxu3 %vm114_vm0, %v489_v42 }
  0xfc   :  { %v699_v36 = vadd.f32 %v651_v15, %v3722_v24  ;;  %v3916_v24 = vpop.permute.xlu2 %609  ;;  %2312 = vmatpush.msrb.mxu3 %v3651_v16 }
  0xfd   :  { %v652_v50 = vadd.f32 %v3916_v24, %v3580_v8  ;;  %v3963_v26 = vpop.f32.mrf.mxu3 }
  0xfe   :  { %v3905_v47 = vadd.f32 %v699_v36, %v3813_v54  ;;  %5723 = vst [vmem:[#allocation8_spill] sm:$0xff] %v3963_v26  ;;  %2313 = vmatpush.msrb.mxu3 %v3660_v17 }
  0xff   :  { %v700_v53 = vadd.f32 %v652_v50, %v3744_v29  ;;  %v4037_v43 = vpop.f32.mrf.mxu1 }
 0x100   :  { %617 = vrot.lane.b32.xlu1 %v3554_v1, %s3503_s1  ;;  %5731 = vst [vmem:[#allocation16_spill] sm:$0xff] %v4037_v43  ;;  %vm1377_vm10 = vcmp.gt.f32.partialorder %v3905_v47, 0.5 }
 0x101   :  { %797 = vrot.lane.b32.xlu2 %v3895_v44, %s3499_s8  ;;  %v491_v45 = vpop.permute.xlu1 %490  ;;  %v3931_v59 = vadd.f32 %v700_v53, %v3823_v57 }
 0x102   :  { %v362_v46 = vpop.permute.xlu0 %361 }
 0x103   :  { %2976 = vmatmul.msk.f32.gmra.mxu2 %vm114_vm0, %v362_v46  ;;  %2992 = vmatmul.msk.f32.gmra.mxu3 %vm114_vm0, %v491_v45  ;;  %vm1378_vm5 = vcmp.gt.f32.partialorder %v3931_v59, 0.5 }
 0x105   :  { %v3972_v39 = vpop.f32.mrf.mxu3 }
 0x106   :  { %5724 = vst [vmem:[#allocation9_spill] sm:$0xff] %v3972_v39 }
 0x108   :  { %799 = vrot.lane.b32.xlu1 %v3905_v47, %s3499_s8 }
 0x109   :  { %240 = vrot.lane.b32.xlu2 %v3576_v6, %s3502_s10  ;;  %v364_v4 = vpop.permute.xlu1 %363 }
 0x10a   :  { %v3911_v49 = vpop.permute.xlu0 %232 }
 0x10b   :  { %2960 = vmatmul.msk.f32.gmra.mxu1 %vm114_vm0, %v3911_v49  ;;  %2977 = vmatmul.msk.f32.gmra.mxu2 %vm114_vm0, %v364_v4 }
 0x10d   :  { %v3986_v46 = vpop.f32.mrf.mxu3 }
 0x10e   :  { %5725 = vst [vmem:[#allocation10_spill] sm:$0xff] %v3986_v46 }
 0x110   :  { %242 = vrot.lane.b32.xlu1 %v3588_v9, %s3502_s10 }
 0x111   :  { %500 = vrot.lane.b32.xlu2 %v3588_v9, %s3500_s0  ;;  %v3926_v54 = vpop.permute.xlu1 %611 }
 0x112   :  { %v493_v52 = vpop.permute.xlu0 %492  ;;  %v653_v55 = vadd.f32 %v3926_v54, %v3592_v11 }
 0x113   :  { %2993 = vmatmul.msk.f32.gmra.mxu3 %vm114_vm0, %v493_v52 }
 0x114   :  { %v701_v60 = vadd.f32 %v653_v55, %v3760_v32 }
 0x115   :  { %v3998_v16 = vpop.f32.mrf.mxu3 }
 0x116   :  { %v3940_v29 = vadd.f32 %v701_v60, %v3801_v48  ;;  %5727 = vst [vmem:[#allocation12_spill] sm:$0xff] %v3998_v16 }
 0x118   :  { %621 = vrot.lane.b32.xlu1 %v3590_v10, %s3503_s1  ;;  %vm1379_vm11 = vcmp.gt.f32.partialorder %v3940_v29, 0.5 }
 0x119   :  { %801 = vrot.lane.b32.xlu2 %v3931_v59, %s3499_s8 }
 0x11a   :  { %v366_v8 = vpop.permute.xlu0 %365 }
 0x11b   :  { %2978 = vmatmul.msk.f32.gmra.mxu2 %vm114_vm0, %v366_v8  ;;  %v3996_v8 = vpop.f32.mrf.mxu0 }
 0x11c   :  { %5726 = vst [vmem:[#allocation11_spill] sm:$0xff] %v3996_v8 }
 0x121   :  { %803 = vrot.lane.b32.xlu2 %v3940_v29, %s3499_s8 }
 0x122   :  { %v3944_v11 = vpop.permute.xlu0 %613 }
 0x123   :  { %v654_v57 = vadd.f32 %v3944_v11, %v3600_v12 }
 0x125   :  { %v702_v63 = vadd.f32 %v654_v57, %v3772_v35 }
 0x127   :  { %v3951_v5 = vadd.f32 %v702_v63, %v227_v33 }
 0x129   :  { %623 = vrot.lane.b32.xlu2 %v3552_v0, %s3503_s1  ;;  %vm1380_vm7 = vcmp.gt.f32.partialorder %v3951_v5, 0.5 }
 0x131   :  { %805 = vrot.lane.b32.xlu2 %v3951_v5, %s3499_s8 }
 0x133   :  { %v792_v32 = vpop.permute.xlu2 %791 }
 0x134   :  { %v839_v48 = vsel %vm114_vm0, %v792_v32, 0.0  ;;  %v4014_v32 = vpop.f32.mrf.mxu0 }
 0x135   :  { %840 = vadd.xlane.f32.xlu0 %v839_v48  ;;  %5728 = vst [vmem:[#allocation13_spill] sm:$0xff] %v4014_v32 }
 0x13b   :  { %v3956_v14 = vpop.permute.xlu2 %234 }
 0x13c   :  { %2961 = vmatmul.msk.f32.gmra.mxu1 %vm114_vm0, %v3956_v14 }
 0x142   :  { %v796_v13 = vpop.permute.xlu0 %795 }
 0x143   :  { %v495_v12 = vpop.permute.xlu2 %494  ;;  %v845_v15 = vsel %vm114_vm0, %v796_v13, 0.0 }
 0x144   :  { %2994 = vmatmul.msk.f32.gmra.mxu3 %vm114_vm0, %v495_v12 }
 0x149   :  { %625 = vrot.lane.b32.xlu0 %v3564_v3, %s3503_s1 }
 0x14a   :  { %v3974_v42 = vpop.permute.xlu0 %238 }
 0x14b   :  { %v368_v35 = vpop.permute.xlu2 %367 }
 0x14c   :  { %2979 = vmatmul.msk.f32.gmra.mxu2 %vm114_vm0, %v368_v35 }
 0x152   :  { %v794_v28 = vpop.permute.xlu1 %793  ;;  %v499_v4 = vpop.permute.xlu0 %498 }
 0x153   :  { %v3966_v31 = vpop.permute.xlu2 %615  ;;  %v842_v33 = vsel %vm114_vm0, %v794_v28, 0.0 }
 0x154   :  { %843 = vadd.xlane.f32.xlu1 %v842_v33  ;;  %v655_v52 = vadd.f32 %v3966_v31, %v3556_v2 }
 0x156   :  { %v703_v55 = vadd.f32 %v655_v52, %v3708_v23 }
 0x158   :  { %v4004_v2 = vadd.f32 %v703_v55, %v3871_v37  ;;  %v4019_v37 = vpop.f32.mrf.mxu3 }
 0x159   :  { %5729 = vst [vmem:[#allocation14_spill] sm:$0xff] %v4019_v37 }
 0x15a   :  { %846 = vadd.xlane.f32.xlu2 %v845_v15  ;;  %v3980_v45 = vpop.permute.xlu1 %236  ;;  %v372_v60 = vpop.permute.xlu0 %371  ;;  %vm1381_vm9 = vcmp.gt.f32.partialorder %v4004_v2, 0.5 }
 0x15b   :  { %v798_v36 = vpop.permute.xlu2 %797  ;;  %2962 = vmatmul.msk.f32.gmra.mxu1 %vm114_vm0, %v3980_v45 }
 0x15c   :  { %v848_v63 = vsel %vm114_vm0, %v798_v36, 0.0 }
 0x160   :  { %v4043_v15 = vpop.f32.mrf.mxu3 }
 0x161   :  { %5733 = vst [vmem:[#allocation18_spill] sm:$0xff] %v4043_v15 }
 0x162   :  { %v497_v50 = vpop.permute.xlu1 %496  ;;  %v4022_v12 = vpop.permute.xlu0 %619 }
 0x163   :  { %v3990_v53 = vpop.permute.xlu2 %240  ;;  %2963 = vmatmul.msk.f32.gmra.mxu1 %vm114_vm0, %v3974_v42  ;;  %2995 = vmatmul.msk.f32.gmra.mxu3 %vm114_vm0, %v497_v50  ;;  %v657_v33 = vadd.f32 %v4022_v12, %v3578_v7  ;;  %v4041_v7 = vpop.f32.mrf.mxu0 }
 0x164   :  { %5732 = vst [vmem:[#allocation17_spill] sm:$0xff] %v4041_v7  ;;  %v4048_v50 = vpop.f32.mrf.mxu2 }
 0x165   :  { %5735 = vst [vmem:[#allocation20_spill] sm:$0xff] %v4048_v50 }
 0x16a   :  { %v370_v17 = vpop.permute.xlu1 %369 }
 0x16b   :  { %v501_v57 = vpop.permute.xlu2 %500  ;;  %2964 = vmatmul.msk.f32.gmra.mxu1 %vm114_vm0, %v3990_v53  ;;  %2980 = vmatmul.msk.f32.gmra.mxu2 %vm114_vm0, %v370_v17  ;;  %v4059_v17 = vpop.f32.mrf.mxu3 }
 0x16c   :  { %2996 = vmatmul.msk.f32.gmra.mxu3 %vm114_vm0, %v499_v4  ;;  %5737 = vst [vmem:[#allocation22_spill] sm:$0xff] %v4059_v17 }
 0x16d   :  { %807 = vrot.lane.b32.xlu1 %v4004_v2, %s3499_s8 }
 0x172   :  { %627 = vrot.lane.b32.xlu2 %v3576_v6, %s3503_s1  ;;  %v4011_v23 = vpop.permute.xlu1 %617 }
 0x173   :  { %v656_v48 = vadd.f32 %v4011_v23, %v3554_v1  ;;  %849 = vadd.xlane.f32.xlu0 %v848_v63  ;;  %2981 = vmatmul.msk.f32.gmra.mxu2 %vm114_vm0, %v372_v60  ;;  %v802_v13 = vpop.permute.xlu2 %801  ;;  %v1830_v1 = vpack.c.bf16 %v4014_v32, %v3996_v8  ;;  %v4061_v60 = vpop.f32.mrf.mxu0 }
 0x174   :  { %2997 = vmatmul.msk.f32.gmra.mxu3 %vm114_vm0, %v501_v57  ;;  %5738 = vst [vmem:[#allocation23_spill] sm:$0xff] %v4061_v60  ;;  %v1831_v63 = vpack.c.bf16 %v4061_v60, %v4041_v7 }
 0x175   :  { %v704_v35 = vadd.f32 %v656_v48, %v3679_v18  ;;  %v854_v18 = vsel %vm114_vm0, %v802_v13, 0.0  ;;  %v4069_v48 = vpop.f32.mrf.mxu2  ;;  %v49_v13 = vld [vmem:[%s5630_s2 + $0x18] sm:$0xff] }
 0x176   :  { %5739 = vst [vmem:[#allocation24_spill] sm:$0xff] %v4069_v48  ;;  %980 = vmatpush.msrb.mxu0 %v49_v13 }
 0x177   :  { %v4026_v28 = vadd.f32 %v704_v35, %v3886_v41  ;;  %v705_v41 = vadd.f32 %v657_v33, %v3742_v27  ;;  %v4057_v27 = vpop.f32.mrf.mxu1  ;;  %v48_v33 = vld [vmem:[%s5630_s2 + $0x10] sm:$0xff] }
 0x178   :  { %5736 = vst [vmem:[#allocation21_spill] sm:$0xff] %v4057_v27  ;;  %981 = vmatpush.msrb.mxu0 %v48_v33 }
 0x179   :  { %5730 = vst [vmem:[#allocation15_spill] sm:$0xff] %v4026_v28  ;;  %809 = vrot.lane.b32.xlu1 %v4026_v28, %s3499_s8  ;;  %v4046_v4 = vadd.f32 %v705_v41, %v3911_v49 }
 0x17a   :  { %629 = vrot.lane.b32.xlu2 %v3588_v9, %s3503_s1  ;;  %v800_v34 = vpop.permute.xlu1 %799 }
 0x17b   :  { %855 = vadd.xlane.f32.xlu0 %v854_v18  ;;  %v804_v36 = vpop.permute.xlu2 %803  ;;  %5734 = vst [vmem:[#allocation19_spill] sm:$0xff] %v4046_v4 }
 0x17c   :  { %3054 = vmatmul.msk.bf16.vlgmr.msra.gmra.mxu3 %vm919_vm1, %v1830_v1  ;;  %v857_v55 = vsel %vm114_vm0, %v804_v36, 0.0 }
 0x17f   :  { %v4086_v41 = vpop.f32.mrf.mxu1 }
 0x180   :  { %5740 = vst [vmem:[#allocation25_spill] sm:$0xff] %v4086_v41 }
 0x182   :  { %811 = vrot.lane.b32.xlu2 %v4046_v4, %s3499_s8  ;;  %v4052_v52 = vpop.permute.xlu1 %242 }
 0x183   :  { %858 = vadd.xlane.f32.xlu0 %v857_v55  ;;  %2965 = vmatmul.msk.f32.gmra.mxu1 %vm114_vm0, %v4052_v52  ;;  %v4063_v49 = vpop.permute.xlu2 %623  ;;  %v46_v55 = vld [vmem:[%s5630_s2] sm:$0xff] }
 0x184   :  { %v659_v1 = vadd.f32 %v4063_v49, %v3552_v0 }
 0x186   :  { %v707_v0 = vadd.f32 %v659_v1, %v3704_v21  ;;  %v1832_v21 = vpack.c.bf16 %v4057_v27, %v4037_v43  ;;  %v851_v1 = vsel %vm114_vm0, %v800_v34, 0.0 }
 0x187   :  { %v4109_v13 = vpop.f32.mrf.mxu1 }
 0x188   :  { %5745 = vst [vmem:[#allocation30_spill] sm:$0xff] %v4109_v13 }
 0x18a   :  { %v4065_v57 = vpop.permute.xlu1 %621 }
 0x18b   :  { %v658_v35 = vadd.f32 %v4065_v57, %v3590_v10  ;;  %v47_v10 = vld [vmem:[%s5630_s2 + $0x8] sm:$0xff]  ;;  %s3504_s2 = smov 32  }
 0x18c   :  { %3055 = vmatmul.msk.bf16.gmra.mxu3 %vm919_vm1, %v1831_v63  ;;  %v4094_v63 = vpop.f32.mrf.mxu3  ;;  %982 = vmatpush.msrb.mxu0 %v47_v10 }
 0x18d   :  { %v706_v18 = vadd.f32 %v658_v35, %v3758_v30  ;;  %5742 = vst [vmem:[#allocation27_spill] sm:$0xff] %v4094_v63  ;;  %v4099_v30 = vpop.f32.mrf.mxu2  ;;  %v4102_v35 = vadd.f32 %v707_v0, %v3980_v45 }
 0x18e   :  { %983 = vmatpush.msrb.mxu0 %v46_v55  ;;  %5743 = vst [vmem:[#allocation28_spill] sm:$0xff] %v4099_v30 }
 0x18f   :  { %v4089_v36 = vadd.f32 %v706_v18, %v3956_v14  ;;  %5744 = vst [vmem:[#allocation29_spill] sm:$0xff] %v4102_v35  ;;  %v3265_v14 = vld [vmem:[%s5631_s3] ss:$0 sm:$0xff]  ;;  %v4120_v18 = vpop.f32.mrf.mxu1 }
 0x190   :  { %5748 = vst [vmem:[#allocation33_spill] sm:$0xff] %v4120_v18  ;;  %v663_v55 = vadd.f32 %v4120_v18, %v3996_v8 }
 0x191   :  { %5741 = vst [vmem:[#allocation26_spill] sm:$0xff] %v4089_v36  ;;  %813 = vrot.lane.b32.xlu2 %v4089_v36, %s3499_s8 }
 0x194   :  { %v4114_v33 = vpop.f32.mrf.mxu3 }
 0x195   :  { %5746 = vst [vmem:[#allocation31_spill] sm:$0xff] %v4114_v33  ;;  %v4117_v45 = vpop.f32.mrf.mxu2 }
 0x196   :  { %5747 = vst [vmem:[#allocation32_spill] sm:$0xff] %v4117_v45 }
 0x197   :  { %815 = vrot.lane.b32.xlu0 %v4102_v35, %s3499_s8 }
 0x199   :  { %1389 = vrot.lane.b32.xlu2 %v3265_v14, %s3504_s2 }
 0x19c   :  { %3056 = vmatmul.msk.bf16.gmra.mxu3 %vm919_vm1, %v1832_v21  ;;  %v4122_v10 = vpop.f32.mrf.mxu3  ;;  %v1833_v21 = vpack.c.bf16 %v4109_v13, %v4086_v41 }
 0x19d   :  { %5749 = vst [vmem:[#allocation34_spill] sm:$0xff] %v4122_v10  ;;  %v4128_v14 = vpop.f32.mrf.mxu2 }
 0x19e   :  { %5751 = vst [vmem:[#allocation36_spill] sm:$0xff] %v4128_v14  ;;  %v711_v35 = vadd.f32 %v663_v55, %v4128_v14 }
 0x1a3   :  { %852 = vadd.xlane.f32.xlu1 %v851_v1  ;;  %v759_v1 = vadd.f32 %v711_v35, %v4019_v37 }
 0x1a4   :  { %v4134_v34 = vpop.f32.mrf.mxu3 }
 0x1a5   :  { %5752 = vst [vmem:[#allocation37_spill] sm:$0xff] %v4134_v34  ;;  %v4165_v28 = vpop.f32.mrf.mxu2 }
 0x1a6   :  { %5759 = vst [vmem:[#allocation44_spill] sm:$0xff] %v4165_v28 }
 0x1a8   :  { %v4126_v0 = vpop.xlane.xlu0 %840 }
 0x1a9   :  { %5750 = vst [vmem:[#allocation35_spill] sm:$0xff] %v4126_v0  ;;  %3267 = vrcp.f32 %v4126_v0  ;;  %v1834_v0 = vpack.c.bf16 %v4069_v48, %v4048_v50 }
 0x1ac   :  { %3057 = vmatmul.msk.bf16.gmra.mxu3 %vm919_vm1, %v1833_v21  ;;  %v4139_v8 = vpop.f32.mrf.mxu3  ;;  %v806_v21 = vpop.permute.xlu2 %805 }
 0x1ad   :  { %5753 = vst [vmem:[#allocation38_spill] sm:$0xff] %v4139_v8 }
 0x1af   :  { %v3268_v36 = vpop.eup %3267 }
 0x1b0   :  { %v903_v4 = vmul.f32 %v3268_v36, %v759_v1  ;;  %v4155_v1 = vpop.f32.mrf.mxu1 }
 0x1b1   :  { %5756 = vst [vmem:[#allocation41_spill] sm:$0xff] %v4155_v1 }
 0x1b2   :  { %2998 = vmatmul.msk.f32.vlgmr.msrb.gmra.mxu0 %vm919_vm1, %v903_v4  ;;  %v860_v4 = vsel %vm114_vm0, %v806_v21, 0.0 }
 0x1b4   :  { %v4148_v14 = vpop.f32.mrf.mxu3 }
 0x1b5   :  { %5754 = vst [vmem:[#allocation39_spill] sm:$0xff] %v4148_v14 }
 0x1bb   :  { %v4143_v18 = vpop.permute.xlu0 %625 }
 0x1bc   :  { %v660_v55 = vadd.f32 %v4143_v18, %v3564_v3  ;;  %3058 = vmatmul.msk.bf16.gmra.mxu3 %vm919_vm1, %v1834_v0  ;;  %v664_v3 = vadd.f32 %v4155_v1, %v4014_v32  ;;  %v4161_v0 = vpop.f32.mrf.mxu3 }
 0x1bd   :  { %5757 = vst [vmem:[#allocation42_spill] sm:$0xff] %v4161_v0 }
 0x1be   :  { %v708_v35 = vadd.f32 %v660_v55, %v3688_v19  ;;  %v712_v19 = vadd.f32 %v664_v3, %v4165_v28  ;;  %v4171_v55 = vpop.f32.mrf.mxu1  ;;  %v4183_v28 = vpop.f32.mrf.mxu2 }
 0x1bf   :  { %5762 = vst [vmem:[#allocation47_spill] sm:$0xff] %v4183_v28 }
 0x1c0   :  { %v4152_v36 = vadd.f32 %v708_v35, %v3974_v42  ;;  %v1835_v42 = vpack.c.bf16 %v4117_v45, %v4099_v30  ;;  %v760_v35 = vadd.f32 %v712_v19, %v4043_v15 }
 0x1c2   :  { %5755 = vst [vmem:[#allocation40_spill] sm:$0xff] %v4152_v36  ;;  %817 = vrot.lane.b32.xlu1 %v4152_v36, %s3499_s8  ;;  %861 = vadd.xlane.f32.xlu2 %v860_v4 }
 0x1c4   :  { %v4177_v32 = vpop.f32.mrf.mxu3 }
 0x1c5   :  { %5761 = vst [vmem:[#allocation46_spill] sm:$0xff] %v4177_v32 }
 0x1c7   :  { %v4163_v37 = vpop.xlane.xlu1 %843 }
 0x1c8   :  { %5758 = vst [vmem:[#allocation43_spill] sm:$0xff] %v4163_v37  ;;  %3269 = vrcp.f32 %v4163_v37  ;;  %v665_v37 = vadd.f32 %v4171_v55, %v4041_v7 }
 0x1ca   :  { %v713_v36 = vadd.f32 %v665_v37, %v4183_v28 }
 0x1cc   :  { %3059 = vmatmul.msk.bf16.gmra.mxu3 %vm919_vm1, %v1835_v42  ;;  %v761_v1 = vadd.f32 %v713_v36, %v4059_v17  ;;  %v4189_v19 = vpop.f32.mrf.mxu3 }
 0x1cd   :  { %v4174_v21 = vpop.xlane.xlu2 %846  ;;  %5763 = vst [vmem:[#allocation48_spill] sm:$0xff] %v4189_v19 }
 0x1ce   :  { %5760 = vst [vmem:[#allocation45_spill] sm:$0xff] %v4174_v21  ;;  %v3270_v4 = vpop.eup %3269  ;;  %3271 = vrcp.f32 %v4174_v21 }
 0x1cf   :  { %v904_v3 = vmul.f32 %v3270_v4, %v760_v35  ;;  %v1836_v35 = vpack.c.bf16 %v3972_v39, %v3963_v26 }
 0x1d1   :  { %2999 = vmatmul.msk.f32.gmra.mxu0 %vm919_vm1, %v904_v3 }
 0x1d4   :  { %v3272_v42 = vpop.eup %3271  ;;  %v4205_v4 = vpop.f32.mrf.mxu3 }
 0x1d5   :  { %v4187_v45 = vpop.permute.xlu2 %627  ;;  %v905_v21 = vmul.f32 %v3272_v42, %v761_v1  ;;  %5765 = vst [vmem:[#allocation50_spill] sm:$0xff] %v4205_v4 }
 0x1d6   :  { %v661_v15 = vadd.f32 %v4187_v45, %v3576_v6 }
 0x1d8   :  { %v709_v7 = vadd.f32 %v661_v15, %v3696_v20 }
 0x1d9   :  { %3000 = vmatmul.msk.f32.gmra.mxu0 %vm919_vm1, %v905_v21  ;;  %v4211_v21 = vpop.f32.mrf.mxu1 }
 0x1da   :  { %v4198_v37 = vadd.f32 %v709_v7, %v3990_v53  ;;  %v666_v7 = vadd.f32 %v4211_v21, %v4061_v60 }
 0x1dc   :  { %5764 = vst [vmem:[#allocation49_spill] sm:$0xff] %v4198_v37  ;;  %819 = vrot.lane.b32.xlu1 %v4198_v37, %s3499_s8  ;;  %3060 = vmatmul.msk.bf16.gmra.mxu3 %vm919_vm1, %v1836_v35 }
 0x1dd   :  { %v4203_v36 = vpop.permute.xlu2 %629 }
 0x1de   :  { %v662_v6 = vadd.f32 %v4203_v36, %v3588_v9 }
 0x1df   :  { %v808_v20 = vpop.permute.xlu1 %807 }
 0x1e0   :  { %v710_v15 = vadd.f32 %v662_v6, %v3706_v22  ;;  %v863_v1 = vsel %vm114_vm0, %v808_v20, 0.0  ;;  %v4224_v22 = vpop.f32.mrf.mxu2  ;;  %v1837_v20 = vpack.c.bf16 %v3998_v16, %v3986_v46 }
 0x1e1   :  { %864 = vadd.xlane.f32.xlu0 %v863_v1  ;;  %5769 = vst [vmem:[#allocation54_spill] sm:$0xff] %v4224_v22  ;;  %v714_v35 = vadd.f32 %v666_v7, %v4224_v22 }
 0x1e2   :  { %v4214_v53 = vadd.f32 %v710_v15, %v4052_v52 }
 0x1e3   :  { %v762_v15 = vadd.f32 %v714_v35, %v4094_v63 }
 0x1e4   :  { %5766 = vst [vmem:[#allocation51_spill] sm:$0xff] %v4214_v53  ;;  %821 = vrot.lane.b32.xlu2 %v4214_v53, %s3499_s8 }
 0x1e5   :  { %v812_v3 = vpop.permute.xlu2 %811 }
 0x1e6   :  { %v4220_v42 = vpop.xlane.xlu0 %849  ;;  %v4222_v9 = vpop.f32.mrf.mxu3  ;;  %v869_v6 = vsel %vm114_vm0, %v812_v3, 0.0 }
 0x1e7   :  { %5767 = vst [vmem:[#allocation52_spill] sm:$0xff] %v4220_v42  ;;  %3273 = vrcp.f32 %v4220_v42 }
 0x1e8   :  { %5768 = vst [vmem:[#allocation53_spill] sm:$0xff] %v4222_v9 }
 0x1e9   :  { %870 = vadd.xlane.f32.xlu0 %v869_v6 }
 0x1ec   :  { %3061 = vmatmul.msk.bf16.gmra.mxu3 %vm919_vm1, %v1837_v20 }
 0x1ed   :  { %v3274_v1 = vpop.eup %3273  ;;  %v814_v28 = vpop.permute.xlu2 %813 }
 0x1ee   :  { %v906_v17 = vmul.f32 %v3274_v1, %v762_v15  ;;  %v4244_v6 = vpop.xlane.xlu0 %855  ;;  %v810_v1 = vpop.permute.xlu1 %809 }
 0x1ef   :  { %v4235_v60 = vpop.f32.mrf.mxu3  ;;  %5771 = vst [vmem:[#allocation56_spill] sm:$0xff] %v4244_v6  ;;  %v866_v52 = vsel %vm114_vm0, %v810_v1, 0.0 }
 0x1f0   :  { %5770 = vst [vmem:[#allocation55_spill] sm:$0xff] %v4235_v60  ;;  %3001 = vmatmul.msk.f32.gmra.mxu0 %vm919_vm1, %v906_v17 }
 0x1f5   :  { %v4238_v7 = vpop.permute.xlu2 %1389 }
 0x1f6   :  { %v4242_v3 = vsel %vm1373_vm2, %v4238_v7, -1e+30  ;;  %v4254_v17 = vpop.xlane.xlu0 %858  ;;  %v4262_v63 = vsel %vm1374_vm4, %v4238_v7, -1e+30 }
 0x1f7   :  { %v4246_v20 = vpop.f32.mrf.mxu3  ;;  %v1409_v15 = vsel %vm1408_vm3, %v4242_v3, -inf  ;;  %5773 = vst [vmem:[#allocation58_spill] sm:$0xff] %v4254_v17 }
 0x1f8   :  { %5772 = vst [vmem:[#allocation57_spill] sm:$0xff] %v4246_v20  ;;  %1410 = vmax.xlane.f32.xlu0 %v1409_v15  ;;  %v4285_v15 = vpop.f32.mrf.mxu2 }
 0x1f9   :  { %5774 = vst [vmem:[#allocation59_spill] sm:$0xff] %v4285_v15 }
 0x1fc   :  { %3110 = vmatmul.msk.f32.vlgmr.msrb.gmra.mxu3 %vm114_vm0, %v3825_v58  ;;  %v872_v58 = vsel %vm114_vm0, %v814_v28, 0.0 }
 0x200   :  { %v4313_v37 = vpop.f32.mrf.mxu2 }
 0x201   :  { %5776 = vst [vmem:[#allocation61_spill] sm:$0xff] %v4313_v37 }
 0x204   :  { %3111 = vmatmul.msk.f32.gmra.mxu3 %vm114_vm0, %v3839_v62  ;;  %v1412_v62 = vsel %vm1408_vm3, %v4262_v63, -inf }
 0x206   :  { %867 = vadd.xlane.f32.xlu1 %v866_v52  ;;  %v4269_v52 = vpop.f32.mrf.mxu1 }
 0x209   :  { %v816_v22 = vpop.permute.xlu0 %815 }
 0x20a   :  { %v875_v35 = vsel %vm114_vm0, %v816_v22, 0.0  ;;  %v4273_v22 = vsel %vm1378_vm5, %v4238_v7, -1e+30 }
 0x20b   :  { %876 = vadd.xlane.f32.xlu0 %v875_v35  ;;  %v4277_v35 = vsel %vm1375_vm6, %v4238_v7, -1e+30  ;;  %v1424_v28 = vsel %vm1408_vm3, %v4273_v22, -inf }
 0x20c   :  { %3112 = vmatmul.msk.f32.gmra.mxu3 %vm114_vm0, %v3809_v51  ;;  %v667_v51 = vadd.f32 %v4269_v52, %v4037_v43  ;;  %v1415_v1 = vsel %vm1408_vm3, %v4277_v35, -inf }
 0x20d   :  { %873 = vadd.xlane.f32.xlu2 %v872_v58 }
 0x20e   :  { %1413 = vmax.xlane.f32.xlu1 %v1412_v62  ;;  %v715_v62 = vadd.f32 %v667_v51, %v4285_v15  ;;  %v4294_v43 = vpop.f32.mrf.mxu1 }
 0x210   :  { %v763_v15 = vadd.f32 %v715_v62, %v4114_v33  ;;  %v4323_v62 = vsel %vm1377_vm10, %v4238_v7, -1e+30 }
 0x214   :  { %3113 = vmatmul.msk.f32.gmra.mxu3 %vm114_vm0, %v3873_v38  ;;  %v4297_v38 = vsel %vm1380_vm7, %v4238_v7, -1e+30 }
 0x215   :  { %1425 = vmax.xlane.f32.xlu2 %v1424_v28  ;;  %v4301_v28 = vsel %vm1376_vm8, %v4238_v7, -1e+30  ;;  %v1430_v51 = vsel %vm1408_vm3, %v4297_v38, -inf }
 0x216   :  { %1416 = vmax.xlane.f32.xlu1 %v1415_v1  ;;  %v4289_v58 = vpop.xlane.xlu1 %852  ;;  %v668_v1 = vadd.f32 %v4294_v43, %v4057_v27  ;;  %v1418_v42 = vsel %vm1408_vm3, %v4301_v28, -inf  ;;  %v4325_v33 = vpop.f32.mrf.mxu1 }
 0x217   :  { %5775 = vst [vmem:[#allocation60_spill] sm:$0xff] %v4289_v58  ;;  %3275 = vrcp.f32 %v4289_v58 }
 0x218   :  { %3277 = vrcp.f32 %v4244_v6  ;;  %v716_v27 = vadd.f32 %v668_v1, %v4313_v37  ;;  %v4338_v37 = vpop.f32.mrf.mxu2 }
 0x219   :  { %3279 = vrcp.f32 %v4254_v17  ;;  %5777 = vst [vmem:[#allocation62_spill] sm:$0xff] %v4338_v37 }
 0x21c   :  { %3114 = vmatmul.msk.f32.gmra.mxu3 %vm114_vm0, %v3884_v40  ;;  %v4319_v40 = vsel %vm1381_vm9, %v4238_v7, -1e+30 }
 0x21d   :  { %v3276_v58 = vpop.eup %3275  ;;  %1431 = vmax.xlane.f32.xlu2 %v1430_v51 }
 0x21e   :  { %1419 = vmax.xlane.f32.xlu1 %v1418_v42  ;;  %v907_v53 = vmul.f32 %v3276_v58, %v763_v15  ;;  %v3278_v51 = vpop.eup %3277  ;;  %v1433_v42 = vsel %vm1408_vm3, %v4319_v40, -inf  ;;  %v1421_v15 = vsel %vm1408_vm3, %v4323_v62, -inf  ;;  %v669_v58 = vadd.f32 %v4325_v33, %v4086_v41  ;;  %v4346_v17 = vpop.f32.mrf.mxu1 }
 0x21f   :  { %v3280_v6 = vpop.eup %3279 }
 0x220   :  { %3002 = vmatmul.msk.f32.gmra.mxu0 %vm919_vm1, %v907_v53  ;;  %v764_v53 = vadd.f32 %v716_v27, %v4122_v10 }
 0x222   :  { %v908_v1 = vmul.f32 %v3278_v51, %v764_v53  ;;  %v670_v51 = vadd.f32 %v4346_v17, %v4109_v13 }
 0x224   :  { %3115 = vmatmul.msk.f32.gmra.mxu3 %vm114_vm0, %v3916_v24  ;;  %v717_v24 = vadd.f32 %v669_v58, %v4338_v37 }
 0x225   :  { %1434 = vmax.xlane.f32.xlu2 %v1433_v42  ;;  %v4344_v42 = vpop.f32.mrf.mxu3 }
 0x226   :  { %1422 = vmax.xlane.f32.xlu1 %v1421_v15  ;;  %v765_v27 = vadd.f32 %v717_v24, %v4134_v34  ;;  %5778 = vst [vmem:[#allocation63_spill] sm:$0xff] %v4344_v42  ;;  %v5790_v42 = vld [vmem:[#allocation32_spill] sm:$0xff] }
 0x228   :  { %3003 = vmatmul.msk.f32.gmra.mxu0 %vm919_vm1, %v908_v1  ;;  %v909_v10 = vmul.f32 %v3280_v6, %v765_v27  ;;  %v4356_v1 = vpop.f32.mrf.mxu2 }
 0x229   :  { %5779 = vst [vmem:[#allocation64_spill] sm:$0xff] %v4356_v1 }
 0x22c   :  { %3116 = vmatmul.msk.f32.gmra.mxu3 %vm114_vm0, %v3926_v54  ;;  %v718_v54 = vadd.f32 %v670_v51, %v4356_v1 }
 0x22d   :  { %v4360_v6 = vpop.f32.mrf.mxu3 }
 0x22e   :  { %5780 = vst [vmem:[#allocation65_spill] sm:$0xff] %v4360_v6 }
 0x230   :  { %3004 = vmatmul.msk.f32.gmra.mxu0 %vm919_vm1, %v909_v10  ;;  %v766_v10 = vadd.f32 %v718_v54, %v4139_v8 }
 0x234   :  { %v818_v53 = vpop.permute.xlu1 %817  ;;  %3117 = vmatmul.msk.f32.gmra.mxu3 %vm114_vm0, %v3944_v11 }
 0x235   :  { %v4353_v15 = vpop.xlane.xlu2 %861  ;;  %v878_v58 = vsel %vm114_vm0, %v818_v53, 0.0  ;;  %v4366_v27 = vpop.f32.mrf.mxu3 }
 0x236   :  { %3281 = vrcp.f32 %v4353_v15  ;;  %879 = vadd.xlane.f32.xlu0 %v878_v58  ;;  %5781 = vst [vmem:[#allocation66_spill] sm:$0xff] %v4366_v27  ;;  %v4374_v58 = vpop.f32.mrf.mxu1 }
 0x23c   :  { %v3282_v24 = vpop.eup %3281  ;;  %3118 = vmatmul.msk.f32.gmra.mxu3 %vm114_vm0, %v3966_v31  ;;  %v671_v31 = vadd.f32 %v4374_v58, %v4048_v50  ;;  %v4395_v50 = vsel %vm1379_vm11, %v4238_v7, -1e+30 }
 0x23d   :  { %v910_v11 = vmul.f32 %v3282_v24, %v766_v10  ;;  %v4370_v53 = vpop.f32.mrf.mxu3 }
 0x23e   :  { %5782 = vst [vmem:[#allocation67_spill] sm:$0xff] %v4370_v53  ;;  %v822_v10 = vpop.permute.xlu2 %821 }
 0x23f   :  { %3005 = vmatmul.msk.f32.gmra.mxu0 %vm919_vm1, %v910_v11 }
 0x244   :  { %3119 = vmatmul.msk.f32.gmra.mxu3 %vm114_vm0, %v4011_v23  ;;  %v4383_v23 = vpop.f32.mrf.mxu2 }
 0x245   :  { %5783 = vst [vmem:[#allocation68_spill] sm:$0xff] %v4383_v23  ;;  %v4387_v11 = vpop.f32.mrf.mxu3 }
 0x246   :  { %5784 = vst [vmem:[#allocation69_spill] sm:$0xff] %v4387_v11 }
 0x24c   :  { %3120 = vmatmul.msk.f32.gmra.mxu3 %vm114_vm0, %v4022_v12  ;;  %v719_v12 = vadd.f32 %v671_v31, %v4383_v23  ;;  %v1427_v31 = vsel %vm1408_vm3, %v4395_v50, -inf }
 0x24d   :  { %v4400_v11 = vpop.f32.mrf.mxu3 }
 0x24e   :  { %v820_v51 = vpop.permute.xlu1 %819  ;;  %5785 = vst [vmem:[#allocation70_spill] sm:$0xff] %v4400_v11 }
 0x24f   :  { %v881_v54 = vsel %vm114_vm0, %v820_v51, 0.0  ;;  %v884_v51 = vsel %vm114_vm0, %v822_v10, 0.0 }
 0x250   :  { %882 = vadd.xlane.f32.xlu0 %v881_v54  ;;  %v767_v54 = vadd.f32 %v719_v12, %v4148_v14 }
 0x254   :  { %3121 = vmatmul.msk.f32.gmra.mxu3 %vm114_vm0, %v4065_v57  ;;  %v4381_v24 = vpop.xlane.xlu0 %864 }
 0x255   :  { %3283 = vrcp.f32 %v4381_v24  ;;  %v4406_v12 = vpop.f32.mrf.mxu3 }
 0x256   :  { %5786 = vst [vmem:[#allocation71_spill] sm:$0xff] %v4406_v12  ;;  %v4420_v12 = vpop.f32.mrf.mxu2 }
 0x257   :  { %5788 = vst [vmem:[#allocation73_spill] sm:$0xff] %v4420_v12 }
 0x258   :  { %885 = vadd.xlane.f32.xlu0 %v884_v51 }
 0x25b   :  { %v3284_v13 = vpop.eup %3283 }
 0x25c   :  { %3122 = vmatmul.msk.f32.gmra.mxu3 %vm114_vm0, %v4063_v49  ;;  %v911_v57 = vmul.f32 %v3284_v13, %v767_v54  ;;  %v4402_v10 = vpop.xlane.xlu0 %870 }
 0x25d   :  { %v4411_v54 = vpop.f32.mrf.mxu3 }
 0x25e   :  { %3006 = vmatmul.msk.f32.gmra.mxu0 %vm919_vm1, %v911_v57  ;;  %5787 = vst [vmem:[#allocation72_spill] sm:$0xff] %v4411_v54  ;;  %v4415_v57 = vpop.f32.mrf.mxu1 }
 0x260   :  { %1428 = vmax.xlane.f32.xlu0 %v1427_v31 }
 0x264   :  { %3123 = vmatmul.msk.f32.gmra.mxu3 %vm114_vm0, %v4143_v18 }
 0x26b   :  { %v1411_v49 = vpop.xlane.xlu0 %1410 }
 0x26c   :  { %3124 = vmatmul.msk.f32.gmra.mxu3 %vm114_vm0, %v4187_v45  ;;  %v1457_v13 = vsub.f32 %v4242_v3, %v1411_v49  ;;  %v672_v45 = vadd.f32 %v4415_v57, %v4069_v48  ;;  %v4429_v3 = vpop.f32.mrf.mxu1 }
 0x26e   :  { %v1473_v51 = vmul.f32 1.442695, %v1457_v13  ;;  %v673_v13 = vadd.f32 %v4429_v3, %v4099_v30 }
 0x270   :  { %3285 = vpow2.f32 %v1473_v51  ;;  %v4435_v51 = vpop.f32.mrf.mxu2 }
 0x271   :  { %5789 = vst [vmem:[#allocation74_spill] sm:$0xff] %v4435_v51  ;;  %v721_v53 = vadd.f32 %v673_v13, %v4435_v51 }
 0x273   :  { %v769_v30 = vadd.f32 %v721_v53, %v4177_v32 }
 0x274   :  { %3125 = vmatmul.msk.f32.gmra.mxu3 %vm114_vm0, %v4203_v36  ;;  %v720_v36 = vadd.f32 %v672_v45, %v4420_v12  ;;  %v4441_v45 = vpop.f32.mrf.mxu1 }
 0x275   :  { %v674_v12 = vadd.f32 %v4441_v45, %v5790_v42 }
 0x276   :  { %v3286_v31 = vpop.eup %3285 }
 0x277   :  { %v4418_v18 = vmul.f32 %v3286_v31, %v3833_v61  ;;  %v768_v61 = vadd.f32 %v720_v36, %v4161_v0 }
 0x279   :  { %v4422_v11 = vpop.xlane.xlu1 %867  ;;  %1537 = vrot.lane.b32.xlu1 %v4418_v18, %s3499_s8 }
 0x27a   :  { %3287 = vrcp.f32 %v4422_v11 }
 0x27b   :  { %3289 = vrcp.f32 %v4402_v10 }
 0x27e   :  { %v4459_v42 = vpop.xlane.xlu0 %876 }
 0x280   :  { %v3288_v49 = vpop.eup %3287  ;;  %v4443_v6 = vpop.xlane.xlu2 %873 }
 0x281   :  { %v1414_v31 = vpop.xlane.xlu1 %1413  ;;  %v912_v54 = vmul.f32 %v3288_v49, %v768_v61  ;;  %v3290_v36 = vpop.eup %3289 }
 0x282   :  { %v1458_v48 = vsub.f32 %v4262_v63, %v1414_v31  ;;  %v913_v61 = vmul.f32 %v3290_v36, %v769_v30 }
 0x283   :  { %3007 = vmatmul.msk.f32.gmra.mxu0 %vm919_vm1, %v912_v54 }
 0x284   :  { %v1475_v27 = vmul.f32 1.442695, %v1458_v48  ;;  %v4450_v48 = vpop.f32.mrf.mxu2 }
 0x285   :  { %5791 = vst [vmem:[#allocation75_spill] sm:$0xff] %v4450_v48  ;;  %v722_v13 = vadd.f32 %v674_v12, %v4450_v48 }
 0x286   :  { %3291 = vpow2.f32 %v1475_v27  ;;  %v4454_v27 = vpop.f32.mrf.mxu1 }
 0x287   :  { %3293 = vrcp.f32 %v4443_v6  ;;  %v675_v30 = vadd.f32 %v4454_v27, %v3963_v26 }
 0x289   :  { %v1417_v63 = vpop.xlane.xlu1 %1416 }
 0x28a   :  { %v1459_v49 = vsub.f32 %v4277_v35, %v1417_v63  ;;  %v770_v35 = vadd.f32 %v722_v13, %v4189_v19 }
 0x28b   :  { %3008 = vmatmul.msk.f32.gmra.mxu0 %vm919_vm1, %v913_v61 }
 0x28c   :  { %v3292_v54 = vpop.eup %3291  ;;  %v1477_v31 = vmul.f32 1.442695, %v1459_v49 }
 0x28d   :  { %v4457_v53 = vmul.f32 %v3292_v54, %v3846_v25  ;;  %v3294_v51 = vpop.eup %3293  ;;  %v4468_v25 = vpop.f32.mrf.mxu2 }
 0x28e   :  { %3295 = vpow2.f32 %v1477_v31  ;;  %v914_v63 = vmul.f32 %v3294_v51, %v770_v35  ;;  %5792 = vst [vmem:[#allocation76_spill] sm:$0xff] %v4468_v25  ;;  %v723_v61 = vadd.f32 %v675_v30, %v4468_v25  ;;  %v5793_v30 = vld [vmem:[#allocation15_spill] sm:$0xff] }
 0x28f   :  { %1539 = vrot.lane.b32.xlu0 %v4457_v53, %s3499_s8  ;;  %3297 = vrcp.f32 %v4459_v42  ;;  %vm1382_vm12 = vcmp.gt.f32.partialorder %v5793_v30, 0.5 }
 0x290   :  { %v771_v13 = vadd.f32 %v723_v61, %v4205_v4 }
 0x291   :  { %v1420_v12 = vpop.xlane.xlu1 %1419 }
 0x292   :  { %v1460_v36 = vsub.f32 %v4301_v28, %v1420_v12 }
 0x293   :  { %3009 = vmatmul.msk.f32.gmra.mxu0 %vm919_vm1, %v914_v63 }
 0x294   :  { %v3296_v49 = vpop.eup %3295  ;;  %v1479_v54 = vmul.f32 1.442695, %v1460_v36  ;;  %v4490_v36 = vpop.f32.mrf.mxu1 }
 0x295   :  { %v4473_v31 = vmul.f32 %v3296_v49, %v3819_v56  ;;  %v3298_v26 = vpop.eup %3297  ;;  %v4486_v56 = vsel %vm1382_vm12, %v4238_v7, -1e+30  ;;  %v676_v63 = vadd.f32 %v4490_v36, %v3972_v39  ;;  %v4498_v61 = vpop.f32.mrf.mxu2  ;;  %v3161_v39 = vld [vmem:[%s5632_s4 + $0x18] sm:$0xff] }
 0x296   :  { %3299 = vpow2.f32 %v1479_v54  ;;  %v915_v28 = vmul.f32 %v3298_v26, %v771_v13  ;;  %v1436_v12 = vsel %vm1408_vm3, %v4486_v56, -inf  ;;  %5794 = vst [vmem:[#allocation15_spill] sm:$0xff] %v4498_v61  ;;  %1989 = vmatpush.bf16.msra.mxu0 %v3161_v39 }
 0x297   :  { %1541 = vrot.lane.b32.xlu2 %v4473_v31, %s3499_s8  ;;  %v724_v54 = vadd.f32 %v676_v63, %v4498_v61  ;;  %v3160_v63 = vld [vmem:[%s5632_s4 + $0x10] sm:$0xff] }
 0x299   :  { %v1423_v26 = vpop.xlane.xlu1 %1422 }
 0x29a   :  { %v1461_v49 = vsub.f32 %v4323_v62, %v1423_v26  ;;  %v985_v62 = vpop.f32.mrf.mxu0  ;;  %v4506_v26 = vld [vmem:[#allocation2] sm:$0xff]  ;;  %1990 = vmatpush.bf16.msra.mxu0 %v3160_v63 }
 0x29b   :  { %3010 = vmatmul.msk.f32.gmra.mxu0 %vm919_vm1, %v915_v28  ;;  %v772_v28 = vadd.f32 %v724_v54, %v4222_v9  ;;  %vm1033_vm13 = vcmp.gt.f32.partialorder %v4506_v26, 0.5 }
 0x29c   :  { %v3300_v51 = vpop.eup %3299  ;;  %v1481_v13 = vmul.f32 1.442695, %v1461_v49  ;;  %v4515_v54 = vsel %vm1033_vm13, %v985_v62, -1e+30 }
 0x29d   :  { %v4480_v35 = vmul.f32 %v3300_v51, %v3895_v44  ;;  %v4523_v39 = vpop.f32.mrf.mxu2 }
 0x29e   :  { %5795 = vst [vmem:[#allocation77_spill] sm:$0xff] %v4523_v39 }
 0x29f   :  { %1543 = vrot.lane.b32.xlu0 %v4480_v35, %s3499_s8 }
 0x2a3   :  { %1437 = vmax.xlane.f32.xlu1 %v1436_v12 }
 0x2a9   :  { %v4494_v44 = vpop.xlane.xlu0 %879 }
 0x2aa   :  { %3301 = vrcp.f32 %v4494_v44 }
 0x2ab   :  { %3303 = vpow2.f32 %v1481_v13  ;;  %v4519_v13 = vpop.f32.mrf.mxu1 }
 0x2b0   :  { %v3302_v51 = vpop.eup %3301 }
 0x2b1   :  { %v916_v12 = vmul.f32 %v3302_v51, %v772_v28  ;;  %v3304_v25 = vpop.eup %3303  ;;  %v1065_v28 = vsel %vm114_vm0, %v4515_v54, -inf  ;;  %v1426_v51 = vpop.xlane.xlu2 %1425 }
 0x2b2   :  { %v4513_v49 = vmul.f32 %v3304_v25, %v3905_v47  ;;  %v5796_v25 = vld [vmem:[#allocation19_spill] sm:$0xff]  ;;  %v1462_v63 = vsub.f32 %v4273_v22, %v1426_v51  ;;  %v4545_v22 = vpop.f32.mrf.mxu2  ;;  %v5798_v51 = vld [vmem:[#allocation26_spill] sm:$0xff] }
 0x2b3   :  { %3011 = vmatmul.msk.f32.gmra.mxu0 %vm919_vm1, %v916_v12  ;;  %v677_v12 = vadd.f32 %v4519_v13, %v3986_v46  ;;  %vm1383_vm14 = vcmp.gt.f32.partialorder %v5796_v25, 0.5  ;;  %5797 = vst [vmem:[#allocation19_spill] sm:$0xff] %v4545_v22  ;;  %vm1384_vm15 = vcmp.gt.f32.partialorder %v5798_v51, 0.5 }
 0x2b4   :  { %v4534_v61 = vsel %vm1383_vm14, %v4238_v7, -1e+30  ;;  %v1483_v48 = vmul.f32 1.442695, %v1462_v63  ;;  %v988_v63 = vpop.f32.mrf.mxu0 }
 0x2b5   :  { %v725_v62 = vadd.f32 %v677_v12, %v4523_v39  ;;  %v1439_v4 = vsel %vm1408_vm3, %v4534_v61, -inf }
 0x2b7   :  { %v773_v46 = vadd.f32 %v725_v62, %v4235_v60  ;;  %v4552_v62 = vsel %vm1384_vm15, %v4238_v7, -1e+30  ;;  %vm2430_vm15 = vcmask 64512  }
 0x2b9   :  { %v1432_v0 = vpop.xlane.xlu2 %1431 }
 0x2bc   :  { %1545 = vrot.lane.b32.xlu1 %v4513_v49, %s3499_s8 }
 0x2c0   :  { %1066 = vmax.xlane.f32.xlu2 %v1065_v28  ;;  %v4536_v28 = vpop.f32.mrf.mxu1 }
 0x2c1   :  { %v678_v9 = vadd.f32 %v4536_v28, %v3998_v16  ;;  %v4557_v16 = vld [vmem:[#allocation2 + $0x8] sm:$0xff] }
 0x2c2   :  { %vm1034_vm2 = vcmp.gt.f32.partialorder %v4557_v16, 0.5 }
 0x2c3   :  { %v4527_v47 = vpop.xlane.xlu0 %882  ;;  %v726_v39 = vadd.f32 %v678_v9, %v4545_v22  ;;  %v5800_v22 = vld [vmem:[#allocation41_spill] sm:$0xff] }
 0x2c4   :  { %3305 = vrcp.f32 %v4527_v47 }
 0x2c9   :  { %1440 = vmax.xlane.f32.xlu0 %v1439_v4  ;;  %v1442_v4 = vsel %vm1408_vm3, %v4552_v62, -inf }
 0x2ca   :  { %v3306_v19 = vpop.eup %3305 }
 0x2cb   :  { %v4543_v32 = vpop.xlane.xlu0 %885  ;;  %v917_v12 = vmul.f32 %v3306_v19, %v773_v46  ;;  %v774_v46 = vadd.f32 %v726_v39, %v4246_v20 }
 0x2cc   :  { %3307 = vrcp.f32 %v4543_v32 }
 0x2cd   :  { %3309 = vpow2.f32 %v1483_v48  ;;  %3012 = vmatmul.msk.f32.gmra.mxu0 %vm919_vm1, %v917_v12  ;;  %v4561_v48 = vsel %vm1034_vm2, %v988_v63, -1e+30 }
 0x2ce   :  { %v1068_v39 = vsel %vm114_vm0, %v4561_v48, -inf }
 0x2d1   :  { %1443 = vmax.xlane.f32.xlu0 %v1442_v4  ;;  %v5799_v4 = vld [vmem:[#allocation33_spill] sm:$0xff] }
 0x2d2   :  { %v3308_v19 = vpop.eup %3307  ;;  %v1939_v20 = vpack.c.bf16 %v5800_v22, %v5799_v4  ;;  %v1940_v22 = vpack.c.bf16 %v4211_v21, %v4171_v55  ;;  %v1464_v21 = vsub.f32 %v4297_v38, %v1432_v0 }
 0x2d3   :  { %v3310_v60 = vpop.eup %3309  ;;  %v918_v9 = vmul.f32 %v3308_v19, %v774_v46  ;;  %v991_v46 = vpop.f32.mrf.mxu0  ;;  %v5801_v19 = vld [vmem:[#allocation29_spill] sm:$0xff] }
 0x2d4   :  { %v4564_v12 = vmul.f32 %v3310_v60, %v3931_v59  ;;  %vm1385_vm4 = vcmp.gt.f32.partialorder %v5801_v19, 0.5  ;;  %v1429_v55 = vpop.xlane.xlu0 %1428 }
 0x2d5   :  { %3013 = vmatmul.msk.f32.gmra.mxu0 %vm919_vm1, %v918_v9  ;;  %v4575_v63 = vsel %vm1385_vm4, %v4238_v7, -1e+30  ;;  %v4579_v9 = vld [vmem:[#allocation2 + $0x18] sm:$0xff] }
 0x2d6   :  { %v1445_v59 = vsel %vm1408_vm3, %v4575_v63, -inf  ;;  %vm1036_vm5 = vcmp.gt.f32.partialorder %v4579_v9, 0.5 }
 0x2d8   :  { %1547 = vrot.lane.b32.xlu2 %v4564_v12, %s3499_s8 }
 0x2d9   :  { %1069 = vmax.xlane.f32.xlu0 %v1068_v39 }
 0x2db   :  { %v994_v60 = vpop.f32.mrf.mxu0 }
 0x2dc   :  { %v4584_v39 = vsel %vm1036_vm5, %v994_v60, -1e+30 }
 0x2dd   :  { %3070 = vmatmul.msk.bf16.vlgmr.msra.gmra.mxu0 %vm919_vm1, %v1939_v20  ;;  %v1074_v23 = vsel %vm114_vm0, %v4584_v39, -inf }
 0x2e3   :  { %v997_v14 = vpop.f32.mrf.mxu0 }
 0x2e6   :  { %1446 = vmax.xlane.f32.xlu1 %v1445_v59  ;;  %v4590_v59 = vld [vmem:[#allocation2 + $0x10] sm:$0xff] }
 0x2e7   :  { %vm1035_vm6 = vcmp.gt.f32.partialorder %v4590_v59, 0.5 }
 0x2e8   :  { %v4593_v1 = vsel %vm1035_vm6, %v991_v46, -1e+30 }
 0x2e9   :  { %v1071_v60 = vsel %vm114_vm0, %v4593_v1, -inf }
 0x2eb   :  { %v1538_v20 = vpop.permute.xlu1 %1537  ;;  %v4599_v37 = vpop.f32.mrf.mxu0 }
 0x2ec   :  { %v1585_v4 = vsel %vm114_vm0, %v1538_v20, 0.0  ;;  %v1487_v20 = vmul.f32 1.442695, %v1464_v21 }
 0x2ed   :  { %3071 = vmatmul.msk.bf16.gmra.mxu0 %vm919_vm1, %v1940_v22  ;;  %1586 = vadd.xlane.f32.xlu0 %v1585_v4  ;;  %v1463_v22 = vsub.f32 %v4395_v50, %v1429_v55  ;;  %v1435_v4 = vpop.xlane.xlu2 %1434 }
 0x2ee   :  { %1075 = vmax.xlane.f32.xlu1 %v1074_v23  ;;  %v1941_v23 = vpack.c.bf16 %v4294_v43, %v4269_v52  ;;  %3311 = vpow2.f32 %v1487_v20  ;;  %v1465_v46 = vsub.f32 %v4319_v40, %v1435_v4 }
 0x2ef   :  { %v1485_v8 = vmul.f32 1.442695, %v1463_v22  ;;  %v1942_v22 = vpack.c.bf16 %v4346_v17, %v4325_v33  ;;  %v4633_v33 = vld [vmem:[#allocation2 + $0x20] sm:$0xff] }
 0x2f0   :  { %v1489_v0 = vmul.f32 1.442695, %v1465_v46  ;;  %vm1037_vm8 = vcmp.gt.f32.partialorder %v4633_v33, 0.5  ;;  %v1943_v46 = vpack.c.bf16 %v4415_v57, %v4374_v58  ;;  %v1944_v58 = vpack.c.bf16 %v4441_v45, %v4429_v3  ;;  %v4670_v45 = vld [vmem:[#allocation2 + $0x28] sm:$0xff] }
 0x2f1   :  { %3313 = vpow2.f32 %v1485_v8  ;;  %vm1038_vm12 = vcmp.gt.f32.partialorder %v4670_v45, 0.5 }
 0x2f2   :  { %3315 = vpow2.f32 %v1489_v0 }
 0x2f3   :  { %v1003_v50 = vpop.f32.mrf.mxu0 }
 0x2f4   :  { %v3312_v34 = vpop.eup %3311 }
 0x2f5   :  { %1072 = vmax.xlane.f32.xlu0 %v1071_v60  ;;  %v4607_v21 = vmul.f32 %v3312_v34, %v3951_v5  ;;  %v1542_v43 = vpop.permute.xlu2 %1541  ;;  %v5805_v34 = vld [vmem:[#allocation49_spill] sm:$0xff] }
 0x2f6   :  { %v1591_v8 = vsel %vm114_vm0, %v1542_v43, 0.0  ;;  %vm1387_vm7 = vcmp.gt.f32.partialorder %v5805_v34, 0.5 }
 0x2f7   :  { %v3314_v55 = vpop.eup %3313  ;;  %5802 = vst [vmem:[#allocation26_spill] sm:$0xff] %v4607_v21 }
 0x2f8   :  { %v4612_v52 = vmul.f32 %v3314_v55, %v3940_v29  ;;  %v3316_v40 = vpop.eup %3315  ;;  %v4627_v29 = vsel %vm1387_vm7, %v4238_v7, -1e+30 }
 0x2f9   :  { %v4623_v5 = vmul.f32 %v3316_v40, %v4004_v2  ;;  %v1451_v4 = vsel %vm1408_vm3, %v4627_v29, -inf  ;;  %v4638_v2 = vsel %vm1037_vm8, %v997_v14, -1e+30 }
 0x2fa   :  { %5803 = vst [vmem:[#allocation33_spill] sm:$0xff] %v4612_v52 }
 0x2fb   :  { %v4619_v20 = vpop.f32.mrf.mxu0  ;;  %5804 = vst [vmem:[#allocation41_spill] sm:$0xff] %v4623_v5 }
 0x2fd   :  { %3072 = vmatmul.msk.bf16.gmra.mxu0 %vm919_vm1, %v1941_v23  ;;  %v1077_v23 = vsel %vm114_vm0, %v4638_v2, -inf }
 0x301   :  { %v1540_v38 = vpop.permute.xlu0 %1539 }
 0x302   :  { %v1588_v60 = vsel %vm114_vm0, %v1540_v38, 0.0  ;;  %v5806_v38 = vld [vmem:[#allocation51_spill] sm:$0xff] }
 0x303   :  { %1589 = vadd.xlane.f32.xlu2 %v1588_v60  ;;  %v4636_v17 = vpop.f32.mrf.mxu0  ;;  %vm1388_vm9 = vcmp.gt.f32.partialorder %v5806_v38, 0.5 }
 0x304   :  { %v4649_v60 = vsel %vm1388_vm9, %v4238_v7, -1e+30 }
 0x305   :  { %v1454_v14 = vsel %vm1408_vm3, %v4649_v60, -inf }
 0x307   :  { %1551 = vrot.lane.b32.xlu1 %v4607_v21, %s3499_s8 }
 0x309   :  { %1549 = vrot.lane.b32.xlu0 %v4612_v52, %s3499_s8 }
 0x30b   :  { %1592 = vadd.xlane.f32.xlu2 %v1591_v8  ;;  %v4644_v0 = vpop.f32.mrf.mxu0  ;;  %v5807_v8 = vld [vmem:[#allocation40_spill] sm:$0xff] }
 0x30c   :  { %vm1386_vm10 = vcmp.gt.f32.partialorder %v5807_v8, 0.5 }
 0x30d   :  { %3073 = vmatmul.msk.bf16.gmra.mxu0 %vm919_vm1, %v1942_v22 }
 0x30f   :  { %1553 = vrot.lane.b32.xlu1 %v4623_v5, %s3499_s8 }
 0x313   :  { %1452 = vmax.xlane.f32.xlu2 %v1451_v4  ;;  %v4653_v55 = vpop.f32.mrf.mxu0  ;;  %v4663_v4 = vsel %vm1386_vm10, %v4238_v7, -1e+30 }
 0x314   :  { %v1448_v3 = vsel %vm1408_vm3, %v4663_v4, -inf }
 0x316   :  { %v1438_v43 = vpop.xlane.xlu1 %1437 }
 0x31b   :  { %1078 = vmax.xlane.f32.xlu2 %v1077_v23  ;;  %v4659_v40 = vpop.f32.mrf.mxu0  ;;  %v4665_v23 = vld [vmem:[#allocation2 + $0x30] sm:$0xff] }
 0x31c   :  { %vm1039_vm11 = vcmp.gt.f32.partialorder %v4665_v23, 0.5 }
 0x31d   :  { %3074 = vmatmul.msk.bf16.gmra.mxu0 %vm919_vm1, %v1943_v46 }
 0x323   :  { %1455 = vmax.xlane.f32.xlu2 %v1454_v14  ;;  %v1544_v14 = vpop.permute.xlu0 %1543  ;;  %v4683_v21 = vpop.f32.mrf.mxu0 }
 0x32d   :  { %3075 = vmatmul.msk.bf16.gmra.mxu0 %vm919_vm1, %v1944_v58 }
 0x32e   :  { %v1546_v57 = vpop.permute.xlu1 %1545 }
 0x32f   :  { %v1597_v22 = vsel %vm114_vm0, %v1546_v57, 0.0  ;;  %v4674_v57 = vsel %vm1039_vm11, %v1003_v50, -1e+30  ;;  %v1594_v50 = vsel %vm114_vm0, %v1544_v14, 0.0 }
 0x330   :  { %1598 = vadd.xlane.f32.xlu2 %v1597_v22  ;;  %v4677_v22 = vsel %vm1038_vm12, %v4599_v37, -1e+30  ;;  %v1083_v41 = vsel %vm114_vm0, %v4674_v57, -inf  ;;  %v1466_v37 = vsub.f32 %v4486_v56, %v1438_v43  ;;  %v4699_v14 = vpop.f32.mrf.mxu0 }
 0x331   :  { %v1080_v5 = vsel %vm114_vm0, %v4677_v22, -inf }
 0x333   :  { %v1067_v46 = vpop.xlane.xlu2 %1066  ;;  %1449 = vmax.xlane.f32.xlu0 %v1448_v3 }
 0x334   :  { %v1113_v58 = vsub.f32 %v4515_v54, %v1067_v46  ;;  %v1945_v54 = vpack.c.bf16 %v4490_v36, %v4454_v27  ;;  %v1491_v27 = vmul.f32 1.442695, %v1466_v37  ;;  %v5809_v37 = vld [vmem:[#allocation35_spill] sm:$0xff] }
 0x335   :  { %vm3172_vm3 = vcmp.lt.s32.totalorder %v5809_v37, 0 }
 0x336   :  { %v1129_v7 = vmul.f32 1.442695, %v1113_v58 }
 0x338   :  { %3317 = vpow2.f32 %v1129_v7  ;;  %1084 = vmax.xlane.f32.xlu2 %v1083_v41 }
 0x339   :  { %1081 = vmax.xlane.f32.xlu1 %v1080_v5  ;;  %v2429_v5 = vld [vmem:[%s5634_s6] sm:$0xff]  ;;  %3319 = vpow2.f32 %v1491_v27 }
 0x33a   :  { %2494 = vmatpush.msrb.mxu0 %v2429_v5 }
 0x33b   :  { %1595 = vadd.xlane.f32.xlu0 %v1594_v50 }
 0x33c   :  { %v1441_v46 = vpop.xlane.xlu0 %1440 }
 0x33d   :  { %3076 = vmatmul.msk.bf16.gmra.mxu0 %vm919_vm1, %v1945_v54  ;;  %v1467_v41 = vsub.f32 %v4534_v61, %v1441_v46  ;;  %v1946_v54 = vpack.c.bf16 %v4536_v28, %v4519_v13  ;;  %v2363_v13 = vlaneseq }
 0x33e   :  { %v3318_v3 = vpop.eup %3317 }
 0x33f   :  { %v4692_v58 = vmul.f32 %v4506_v26, %v3318_v3  ;;  %v1493_v56 = vmul.f32 1.442695, %v1467_v41  ;;  %v3320_v7 = vpop.eup %3319  ;;  %v3173_v3 = vceil.f32 %v5809_v37  ;;  %v3174_v41 = vfloor.f32 %v5809_v37 }
 0x340   :  { %v4710_v5 = vmul.f32 %v3320_v7, %v5793_v30 }
 0x341   :  { %v1177_v36 = vsel %vm114_vm0, %v4692_v58, 0.0  ;;  %3321 = vpow2.f32 %v1493_v56  ;;  %v3175_v28 = vsel %vm3172_vm3, %v3173_v3, %v3174_v41  ;;  %v4722_v56 = vand.u32 127, %v2363_v13  ;;  %v5815_v41 = vld [vmem:[#allocation45_spill] sm:$0xff] }
 0x342   :  { %1178 = vadd.xlane.f32.xlu1 %v1177_v36  ;;  %5810 = vst [vmem:[#allocation49_spill] sm:$0xff] %v4710_v5  ;;  %v3176_v36 = vcvt.f32.s32 %v3175_v28  ;;  %v3183_v13 = vceil.f32 %v5815_v41  ;;  %vm3182_vm2 = vcmp.lt.s32.totalorder %v5815_v41, 0 }
 0x344   :  { %v1444_v43 = vpop.xlane.xlu0 %1443  ;;  %vm2381_vm14 = vcmp.eq.s32.totalorder %v4722_v56, %v3176_v36 }
 0x345   :  { %v1468_v61 = vsub.f32 %v4552_v62, %v1444_v43  ;;  %v5812_v43 = vld [vmem:[#allocation43_spill] sm:$0xff] }
 0x346   :  { %vm3177_vm13 = vcmp.lt.s32.totalorder %v5812_v43, 0 }
 0x347   :  { %v3322_v50 = vpop.eup %3321  ;;  %v1495_v46 = vmul.f32 1.442695, %v1468_v61  ;;  %v3178_v61 = vceil.f32 %v5812_v43 }
 0x348   :  { %v4714_v62 = vmul.f32 %v3322_v50, %v5796_v25  ;;  %v3179_v25 = vfloor.f32 %v5812_v43 }
 0x349   :  { %3323 = vpow2.f32 %v1495_v46  ;;  %v5718_v46 = vmov 0.0  }
 0x34a   :  { %v4702_v26 = vpop.f32.mrf.mxu0  ;;  %5811 = vst [vmem:[#allocation51_spill] sm:$0xff] %v4714_v62  ;;  %v3180_v50 = vsel %vm3177_vm13, %v3178_v61, %v3179_v25  ;;  %v3126_v37 = vsel %vm2381_vm14, 1.0, %v5718_v46  ;;  %v5817_v25 = vld [vmem:[#allocation52_spill] sm:$0xff]  ;;  %vm3207_vm14 = vcmp.lt.s32.totalorder %v4353_v15, 0 }
 0x34b   :  { %5808 = vst [vmem:[#allocation29_spill] sm:$0xff] %v4702_v26  ;;  %v3181_v3 = vcvt.f32.s32 %v3180_v50  ;;  %v3189_v50 = vfloor.f32 %v5817_v25  ;;  %vm3187_vm5 = vcmp.lt.s32.totalorder %v5817_v25, 0  ;;  %v5823_v26 = vld [vmem:[#allocation58_spill] sm:$0xff] }
 0x34c   :  { %v3203_v52 = vceil.f32 %v5823_v26  ;;  %vm3202_vm3 = vcmp.lt.s32.totalorder %v5823_v26, 0 }
 0x34d   :  { %3077 = vmatmul.msk.bf16.gmra.mxu0 %vm919_vm1, %v1946_v54  ;;  %vm2382_vm4 = vcmp.eq.s32.totalorder %v4722_v56, %v3181_v3 }
 0x34e   :  { %v3127_v43 = vsel %vm2382_vm4, 1.0, %v5718_v46  ;;  %vm3212_vm4 = vcmp.lt.s32.totalorder %v4381_v24, 0 }
 0x34f   :  { %1555 = vrot.lane.b32.xlu0 %v4710_v5, %s3499_s8  ;;  %v3324_v30 = vpop.eup %3323  ;;  %v5822_v5 = vld [vmem:[#allocation56_spill] sm:$0xff] }
 0x350   :  { %1557 = vrot.lane.b32.xlu2 %v4714_v62, %s3499_s8  ;;  %v4728_v7 = vmul.f32 %v3324_v30, %v5798_v51  ;;  %v3184_v51 = vfloor.f32 %v5815_v41  ;;  %v1070_v30 = vpop.xlane.xlu0 %1069  ;;  %v3198_v62 = vceil.f32 %v5822_v5  ;;  %vm3197_vm10 = vcmp.lt.s32.totalorder %v5822_v5, 0 }
 0x352   :  { %v4720_v27 = vpop.f32.mrf.mxu0  ;;  %5813 = vst [vmem:[#allocation40_spill] sm:$0xff] %v4728_v7  ;;  %v3185_v36 = vsel %vm3182_vm2, %v3183_v13, %v3184_v51 }
 0x353   :  { %v3186_v61 = vcvt.f32.s32 %v3185_v36 }
 0x355   :  { %vm2383_vm6 = vcmp.eq.s32.totalorder %v4722_v56, %v3186_v61  ;;  %v1114_v61 = vsub.f32 %v4561_v48, %v1070_v30  ;;  %v1548_v30 = vpop.permute.xlu2 %1547 }
 0x356   :  { %v3128_v13 = vsel %vm2383_vm6, 1.0, %v5718_v46  ;;  %vm3217_vm6 = vcmp.lt.s32.totalorder %v4422_v11, 0 }
 0x357   :  { %v1131_v46 = vmul.f32 1.442695, %v1114_v61 }
 0x359   :  { %v4754_v51 = vpop.xlane.xlu1 %1446  ;;  %3325 = vpow2.f32 %v1131_v46 }
 0x35a   :  { %v4731_v54 = vpop.f32.mrf.mxu0 }
 0x35b   :  { %5814 = vst [vmem:[#allocation35_spill] sm:$0xff] %v4731_v54  ;;  %1559 = vrot.lane.b32.xlu1 %v4728_v7, %s3499_s8 }
 0x35d   :  { %3142 = vmatmul.msk.f32.vlgmr.msrb.gmra.mxu0 %vm2430_vm15, %v3126_v37  ;;  %v3188_v37 = vceil.f32 %v5817_v25 }
 0x35f   :  { %v3190_v3 = vsel %vm3187_vm5, %v3188_v37, %v3189_v50  ;;  %v4764_v50 = vld [vmem:[#allocation2 + $0x38] sm:$0xff] }
 0x360   :  { %v4751_v54 = vpop.xlane.xlu0 %1586  ;;  %v3191_v36 = vcvt.f32.s32 %v3190_v3  ;;  %vm1040_vm9 = vcmp.gt.f32.partialorder %v4764_v50, 0.5 }
 0x361   :  { %v4772_v48 = vsel %vm1040_vm9, %v4619_v20, -1e+30 }
 0x362   :  { %v4741_v28 = vpop.f32.mrf.mxu0  ;;  %vm2384_vm8 = vcmp.eq.s32.totalorder %v4722_v56, %v3191_v36  ;;  %v1086_v61 = vsel %vm114_vm0, %v4772_v48, -inf }
 0x363   :  { %5816 = vst [vmem:[#allocation43_spill] sm:$0xff] %v4741_v28 }
 0x365   :  { %3143 = vmatmul.msk.f32.gmra.mxu0 %vm2430_vm15, %v3127_v43  ;;  %v5819_v43 = vld [vmem:[#allocation60_spill] sm:$0xff] }
 0x366   :  { %v3193_v28 = vceil.f32 %v5819_v43  ;;  %v3194_v7 = vfloor.f32 %v5819_v43  ;;  %vm3192_vm7 = vcmp.lt.s32.totalorder %v5819_v43, 0  ;;  %v3199_v43 = vfloor.f32 %v5822_v5 }
 0x368   :  { %v3195_v37 = vsel %vm3192_vm7, %v3193_v28, %v3194_v7  ;;  %v1073_v36 = vpop.xlane.xlu0 %1072  ;;  %v4775_v7 = vpop.xlane.xlu1 %1075  ;;  %v1600_v28 = vsel %vm114_vm0, %v1548_v30, 0.0  ;;  %v3200_v20 = vsel %vm3197_vm10, %v3198_v62, %v3199_v43  ;;  %vm3227_vm10 = vcmp.lt.s32.totalorder %v4443_v6, 0 }
 0x369   :  { %v1115_v5 = vsub.f32 %v4593_v1, %v1073_v36  ;;  %v3201_v30 = vcvt.f32.s32 %v3200_v20 }
 0x36a   :  { %v4749_v41 = vpop.f32.mrf.mxu0 }
 0x36b   :  { %5818 = vst [vmem:[#allocation45_spill] sm:$0xff] %v4749_v41  ;;  %v3196_v41 = vcvt.f32.s32 %v3195_v37  ;;  %vm2386_vm13 = vcmp.eq.s32.totalorder %v4722_v56, %v3201_v30  ;;  %v1903_v30 = vpop.f32.mrf.mxu3 }
 0x36d   :  { %3144 = vmatmul.msk.f32.gmra.mxu0 %vm2430_vm15, %v3128_v13  ;;  %v5821_v13 = vmov 0.0   ;;  %vm2385_vm11 = vcmp.eq.s32.totalorder %v4722_v56, %v3196_v41  ;;  %v3204_v41 = vfloor.f32 %v5823_v26 }
 0x36e   :  { %v3129_v3 = vsel %vm2384_vm8, 1.0, %v5821_v13  ;;  %v3130_v46 = vsel %vm2385_vm11, 1.0, %v5821_v13  ;;  %vm3222_vm8 = vcmp.lt.s32.totalorder %v4402_v10, 0 }
 0x372   :  { %v4762_v25 = vpop.f32.mrf.mxu0 }
 0x373   :  { %5820 = vst [vmem:[#allocation52_spill] sm:$0xff] %v4762_v25  ;;  %v3326_v25 = vpop.eup %3325 }
 0x374   :  { %v4796_v1 = vmul.f32 %v4557_v16, %v3326_v25  ;;  %v3208_v25 = vceil.f32 %v4353_v15 }
 0x375   :  { %3145 = vmatmul.msk.f32.gmra.mxu0 %vm2430_vm15, %v3129_v3  ;;  %v4783_v3 = vld [vmem:[#allocation2 + $0x40] sm:$0xff] }
 0x376   :  { %vm1041_vm12 = vcmp.gt.f32.partialorder %v4783_v3, 0.5  ;;  %v1180_v26 = vsel %vm114_vm0, %v4796_v1, 0.0 }
 0x379   :  { %1601 = vadd.xlane.f32.xlu0 %v1600_v28  ;;  %1087 = vmax.xlane.f32.xlu2 %v1086_v61  ;;  %v4792_v28 = vsel %vm1041_vm12, %v4636_v17, -1e+30  ;;  %v1552_v43 = vpop.permute.xlu1 %1551  ;;  %v1133_v61 = vmul.f32 1.442695, %v1115_v5  ;;  %v3205_v17 = vsel %vm3202_vm3, %v3203_v52, %v3204_v41  ;;  %v3131_v5 = vsel %vm2386_vm13, 1.0, %v5821_v13 }
 0x37a   :  { %v4781_v37 = vpop.f32.mrf.mxu0  ;;  %v1089_v20 = vsel %vm114_vm0, %v4792_v28, -inf  ;;  %v3206_v16 = vcvt.f32.s32 %v3205_v17  ;;  %v1469_v17 = vsub.f32 %v4575_v63, %v4754_v51  ;;  %vm3232_vm12 = vcmp.lt.s32.totalorder %v4459_v42, 0 }
 0x37b   :  { %v1550_v62 = vpop.permute.xlu0 %1549  ;;  %3327 = vpow2.f32 %v1133_v61  ;;  %vm3237_vm13 = vcmp.lt.s32.totalorder %v4494_v44, 0 }
 0x37c   :  { %v1603_v36 = vsel %vm114_vm0, %v1550_v62, 0.0  ;;  %v3209_v62 = vfloor.f32 %v4353_v15  ;;  %vm2387_vm2 = vcmp.eq.s32.totalorder %v4722_v56, %v3206_v16  ;;  %3329 = vrcp.f32 %v4751_v54 }
 0x37d   :  { %3146 = vmatmul.msk.f32.gmra.mxu0 %vm2430_vm15, %v3130_v46  ;;  %v3132_v15 = vsel %vm2387_vm2, 1.0, %v5821_v13  ;;  %v3213_v16 = vceil.f32 %v4381_v24  ;;  %v1497_v63 = vmul.f32 1.442695, %v1469_v17  ;;  %v3218_v17 = vceil.f32 %v4422_v11 }
 0x37e   :  { %vm3242_vm2 = vcmp.lt.s32.totalorder %v4527_v47, 0 }
 0x37f   :  { %3331 = vpow2.f32 %v1497_v63 }
 0x381   :  { %1604 = vadd.xlane.f32.xlu0 %v1603_v36  ;;  %1090 = vmax.xlane.f32.xlu2 %v1089_v20  ;;  %v1606_v36 = vsel %vm114_vm0, %v1552_v43, 0.0  ;;  %v1554_v52 = vpop.permute.xlu1 %1553  ;;  %v3328_v41 = vpop.eup %3327  ;;  %v3210_v20 = vsel %vm3207_vm14, %v3208_v25, %v3209_v62  ;;  %v3214_v25 = vfloor.f32 %v4381_v24 }
 0x382   :  { %v4802_v46 = vpop.f32.mrf.mxu0  ;;  %v4822_v43 = vmul.f32 %v4590_v59, %v3328_v41  ;;  %v1590_v62 = vpop.xlane.xlu2 %1589 }
 0x383   :  { %v3330_v54 = vpop.eup %3329  ;;  %v3215_v59 = vsel %vm3212_vm4, %v3213_v16, %v3214_v25  ;;  %3333 = vrcp.f32 %v1590_v62 }
 0x384   :  { %v1183_v51 = vsel %vm114_vm0, %v4822_v43, 0.0  ;;  %v1649_v41 = vmul.f32 %v3330_v54, %v4418_v18  ;;  %v3216_v24 = vcvt.f32.s32 %v3215_v59 }
 0x385   :  { %1181 = vadd.xlane.f32.xlu1 %v1180_v26  ;;  %3147 = vmatmul.msk.f32.gmra.mxu0 %vm2430_vm15, %v3131_v5  ;;  %v1609_v26 = vsel %vm114_vm0, %v1554_v52, 0.0  ;;  %v3211_v5 = vcvt.f32.s32 %v3210_v20  ;;  %v3332_v18 = vpop.eup %3331 }
 0x386   :  { %vm2389_vm7 = vcmp.eq.s32.totalorder %v4722_v56, %v3216_v24  ;;  %v4849_v59 = vmul.f32 %v3332_v18, %v5801_v19 }
 0x387   :  { %vm2388_vm5 = vcmp.eq.s32.totalorder %v4722_v56, %v3211_v5 }
 0x388   :  { %v3133_v20 = vsel %vm2388_vm5, 1.0, %v5821_v13  ;;  %vm3247_vm5 = vcmp.lt.s32.totalorder %v4543_v32, 0 }
 0x389   :  { %1607 = vadd.xlane.f32.xlu2 %v1606_v36  ;;  %v1905_v36 = vpop.f32.mrf.mxu3  ;;  %v3334_v62 = vpop.eup %3333 }
 0x38a   :  { %v4813_v61 = vpop.f32.mrf.mxu0  ;;  %v1593_v5 = vpop.xlane.xlu2 %1592  ;;  %v1650_v18 = vmul.f32 %v3334_v62, %v4457_v53 }
 0x38b   :  { %3335 = vrcp.f32 %v1593_v5 }
 0x38d   :  { %1610 = vadd.xlane.f32.xlu1 %v1609_v26  ;;  %3148 = vmatmul.msk.f32.gmra.mxu0 %vm2430_vm15, %v3132_v15  ;;  %v3219_v26 = vfloor.f32 %v4422_v11  ;;  %v4841_v15 = vld [vmem:[%s5633_s5] ss:$0 sm:$0xff] }
 0x38e   :  { %v1931_v16 = vadd.f32 %v4841_v15, %v1903_v30  ;;  %v3224_v30 = vfloor.f32 %v4402_v10 }
 0x38f   :  { %v3220_v63 = vsel %vm3217_vm6, %v3218_v17, %v3219_v26  ;;  %v1932_v17 = vadd.f32 %v4841_v15, %v1905_v36  ;;  %v3229_v36 = vfloor.f32 %v4443_v6 }
 0x390   :  { %v3221_v11 = vcvt.f32.s32 %v3220_v63 }
 0x391   :  { %1184 = vadd.xlane.f32.xlu2 %v1183_v51  ;;  %v1908_v51 = vpop.f32.mrf.mxu3  ;;  %v3336_v24 = vpop.eup %3335 }
 0x392   :  { %v4830_v52 = vpop.f32.mrf.mxu0  ;;  %vm2390_vm9 = vcmp.eq.s32.totalorder %v4722_v56, %v3221_v11 }
 0x395   :  { %3149 = vmatmul.msk.f32.gmra.mxu0 %vm2430_vm15, %v3133_v20  ;;  %1681 = vrot.lane.b32.xlu0 %v1649_v41, %s3499_s8  ;;  %v3134_v41 = vsel %vm2389_vm7, 1.0, %v5821_v13  ;;  %v3223_v20 = vceil.f32 %v4402_v10 }
 0x397   :  { %v3225_v26 = vsel %vm3222_vm8, %v3223_v20, %v3224_v30  ;;  %v1933_v20 = vadd.f32 %v4841_v15, %v1908_v51 }
 0x398   :  { %v3226_v63 = vcvt.f32.s32 %v3225_v26  ;;  %v3233_v26 = vceil.f32 %v4459_v42 }
 0x399   :  { %v1910_v10 = vpop.f32.mrf.mxu3 }
 0x39a   :  { %v2012_v25 = vpop.f32.mrf.mxu0  ;;  %vm2391_vm11 = vcmp.eq.s32.totalorder %v4722_v56, %v3226_v63 }
 0x39b   :  { %v4846_v54 = vadd.f32 %v2012_v25, %v1931_v16  ;;  %v3135_v16 = vsel %vm2390_vm9, 1.0, %v5821_v13  ;;  %v1651_v25 = vmul.f32 %v3336_v24, %v4473_v31 }
 0x39d   :  { %3150 = vmatmul.msk.f32.gmra.mxu0 %vm2430_vm15, %v3134_v41  ;;  %1561 = vrot.lane.b32.xlu0 %v4849_v59, %s3499_s8  ;;  %v3228_v41 = vceil.f32 %v4443_v6 }
 0x39f   :  { %v3230_v62 = vsel %vm3227_vm10, %v3228_v41, %v3229_v36 }
 0x3a0   :  { %v3231_v6 = vcvt.f32.s32 %v3230_v62 }
 0x3a1   :  { %v1913_v51 = vpop.f32.mrf.mxu3 }
 0x3a2   :  { %v2014_v19 = vpop.f32.mrf.mxu0  ;;  %vm2392_vm3 = vcmp.eq.s32.totalorder %v4722_v56, %v3231_v6 }
 0x3a3   :  { %v4860_v5 = vadd.f32 %v2014_v19, %v1932_v17  ;;  %v3136_v17 = vsel %vm2391_vm11, 1.0, %v5821_v13 }
 0x3a5   :  { %3151 = vmatmul.msk.f32.gmra.mxu0 %vm2430_vm15, %v3135_v16  ;;  %1683 = vrot.lane.b32.xlu0 %v1650_v18, %s3499_s8  ;;  %v1934_v18 = vadd.f32 %v4841_v15, %v1910_v10 }
 0x3a6   :  { %1685 = vrot.lane.b32.xlu1 %v1651_v25, %s3499_s8  ;;  %v1450_v11 = vpop.xlane.xlu0 %1449 }
 0x3a7   :  { %v1470_v53 = vsub.f32 %v4663_v4, %v1450_v11  ;;  %v3234_v4 = vfloor.f32 %v4459_v42  ;;  %v4890_v11 = vpop.xlane.xlu2 %1452 }
 0x3a9   :  { %v1499_v31 = vmul.f32 1.442695, %v1470_v53  ;;  %v3235_v63 = vsel %vm3232_vm12, %v3233_v26, %v3234_v4  ;;  %v3137_v53 = vsel %vm2392_vm3, 1.0, %v5821_v13 }
 0x3aa   :  { %v2017_v30 = vpop.f32.mrf.mxu0  ;;  %v3236_v10 = vcvt.f32.s32 %v3235_v63 }
 0x3ab   :  { %v4874_v24 = vadd.f32 %v2017_v30, %v1933_v20  ;;  %3337 = vpow2.f32 %v1499_v31  ;;  %v3238_v20 = vceil.f32 %v4494_v44  ;;  %v3239_v31 = vfloor.f32 %v4494_v44  ;;  %v1915_v30 = vpop.f32.mrf.mxu3 }
 0x3ac   :  { %v4877_v19 = vpop.xlane.xlu1 %1081  ;;  %vm2393_vm14 = vcmp.eq.s32.totalorder %v4722_v56, %v3236_v10  ;;  %v1936_v63 = vadd.f32 %v4841_v15, %v1915_v30  ;;  %v1116_v30 = vsub.f32 %v4584_v39, %v4775_v7 }
 0x3ad   :  { %3152 = vmatmul.msk.f32.gmra.mxu0 %vm2430_vm15, %v3136_v17  ;;  %v3240_v17 = vsel %vm3237_vm13, %v3238_v20, %v3239_v31  ;;  %v3138_v4 = vsel %vm2393_vm14, 1.0, %v5821_v13  ;;  %vm2866_vm13 = vcmask 326656   ;;  %vm2833_vm14 = vcmask 785408  }
 0x3ae   :  { %v3241_v44 = vcvt.f32.s32 %v3240_v17 }
 0x3b0   :  { %vm2394_vm4 = vcmp.eq.s32.totalorder %v4722_v56, %v3241_v44 }
 0x3b1   :  { %v3338_v16 = vpop.eup %3337 }
 0x3b2   :  { %v2019_v25 = vpop.f32.mrf.mxu0  ;;  %v4888_v36 = vmul.f32 %v3338_v16, %v5807_v8  ;;  %v1935_v8 = vadd.f32 %v4841_v15, %v1913_v51  ;;  %v3244_v16 = vfloor.f32 %v4527_v47  ;;  %v1079_v51 = vpop.xlane.xlu2 %1078 }
 0x3b3   :  { %v4885_v41 = vadd.f32 %v2019_v25, %v1934_v18  ;;  %v3243_v18 = vceil.f32 %v4527_v47  ;;  %v1918_v31 = vpop.f32.mrf.mxu3  ;;  %v3248_v47 = vceil.f32 %v4543_v32 }
 0x3b4   :  { %1563 = vrot.lane.b32.xlu2 %v4888_v36, %s3499_s8 }
 0x3b5   :  { %v1179_v42 = vpop.xlane.xlu1 %1178  ;;  %3153 = vmatmul.msk.f32.gmra.mxu0 %vm2430_vm15, %v3137_v53  ;;  %v3245_v53 = vsel %vm3242_vm2, %v3243_v18, %v3244_v16  ;;  %v4929_v18 = vld [vmem:[#allocation2 + $0x50] sm:$0xff] }
 0x3b6   :  { %3339 = vrcp.f32 %v1179_v42  ;;  %v1117_v42 = vsub.f32 %v4638_v2, %v1079_v51  ;;  %vm1043_vm8 = vcmp.gt.f32.partialorder %v4929_v18, 0.5  ;;  %v1135_v51 = vmul.f32 1.442695, %v1116_v30 }
 0x3b7   :  { %v4939_v44 = vsel %vm1043_vm8, %v4653_v55, -1e+30  ;;  %v1471_v55 = vsub.f32 %v4627_v29, %v4890_v11 }
 0x3b8   :  { %v1137_v17 = vmul.f32 1.442695, %v1117_v42 }
 0x3b9   :  { %v1501_v30 = vmul.f32 1.442695, %v1471_v55 }
 0x3ba   :  { %v2022_v62 = vpop.f32.mrf.mxu0  ;;  %v4922_v2 = vpop.xlane.xlu2 %1455  ;;  %3341 = vpow2.f32 %v1137_v17 }
 0x3bb   :  { %v4901_v6 = vadd.f32 %v2022_v62, %v1935_v8  ;;  %v3246_v8 = vcvt.f32.s32 %v3245_v53  ;;  %v3249_v62 = vfloor.f32 %v4543_v32  ;;  %v1920_v53 = vpop.f32.mrf.mxu3  ;;  %3343 = vpow2.f32 %v1135_v51 }
 0x3bc   :  { %v3340_v26 = vpop.eup %3339  ;;  %3345 = vpow2.f32 %v1501_v30 }
 0x3bd   :  { %v1241_v25 = vmul.f32 %v3340_v26, %v4692_v58  ;;  %3154 = vmatmul.msk.f32.gmra.mxu0 %vm2430_vm15, %v3138_v4  ;;  %v3139_v58 = vsel %vm2394_vm4, 1.0, %v5821_v13  ;;  %vm2395_vm6 = vcmp.eq.s32.totalorder %v4722_v56, %v3246_v8  ;;  %v1937_v26 = vadd.f32 %v4841_v15, %v1918_v31  ;;  %v4926_v4 = vld [vmem:[#allocation2 + $0x48] sm:$0xff] }
 0x3be   :  { %vm1042_vm7 = vcmp.gt.f32.partialorder %v4926_v4, 0.5  ;;  %v3250_v32 = vsel %vm3247_vm5, %v3248_v47, %v3249_v62  ;;  %v3140_v39 = vsel %vm2395_vm6, 1.0, %v5821_v13 }
 0x3bf   :  { %3014 = vmatmul.msk.f32.vlgmr.msra.gmra.mxu1 %vm114_vm0, %v1241_v25  ;;  %v4936_v7 = vsel %vm1042_vm7, %v4644_v0, -1e+30  ;;  %v1938_v0 = vadd.f32 %v4841_v15, %v1920_v53 }
 0x3c0   :  { %v1092_v42 = vsel %vm114_vm0, %v4936_v7, -inf  ;;  %v3342_v31 = vpop.eup %3341 }
 0x3c1   :  { %v4953_v62 = vmul.f32 %v4633_v33, %v3342_v31 }
 0x3c2   :  { %v2024_v10 = vpop.f32.mrf.mxu0 }
 0x3c3   :  { %v4913_v20 = vadd.f32 %v2024_v10, %v1936_v63  ;;  %v3251_v63 = vcvt.f32.s32 %v3250_v32  ;;  %v1095_v10 = vsel %vm114_vm0, %v4939_v44, -inf  ;;  %v1189_v15 = vsel %vm114_vm0, %v4953_v62, 0.0 }
 0x3c5   :  { %3155 = vmatmul.msk.f32.gmra.mxu0 %vm2430_vm15, %v3139_v58  ;;  %v1599_v58 = vpop.xlane.xlu2 %1598  ;;  %vm2396_vm9 = vcmp.eq.s32.totalorder %v4722_v56, %v3251_v63  ;;  %v1596_v63 = vpop.xlane.xlu0 %1595 }
 0x3c6   :  { %v3141_v17 = vsel %vm2396_vm9, 1.0, %v5821_v13 }
 0x3ca   :  { %v2027_v16 = vpop.f32.mrf.mxu0 }
 0x3cb   :  { %v4932_v25 = vadd.f32 %v2027_v16, %v1937_v26  ;;  %v3344_v26 = vpop.eup %3343  ;;  %v4959_v16 = vld [vmem:[#allocation2 + $0x58] sm:$0xff] }
 0x3cc   :  { %vm1044_vm10 = vcmp.gt.f32.partialorder %v4959_v16, 0.5  ;;  %v4963_v29 = vmul.f32 %v4579_v9, %v3344_v26  ;;  %v3346_v11 = vpop.eup %3345 }
 0x3cd   :  { %3156 = vmatmul.msk.f32.gmra.mxu0 %vm2430_vm15, %v3140_v39  ;;  %v1085_v33 = vpop.xlane.xlu2 %1084  ;;  %v4966_v56 = vsel %vm1044_vm10, %v4659_v40, -1e+30  ;;  %v4974_v51 = vmul.f32 %v3346_v11, %v5805_v34  ;;  %v1556_v31 = vpop.permute.xlu0 %1555  ;;  %v4998_v11 = vld [vmem:[#allocation2 + $0x68] sm:$0xff] }
 0x3ce   :  { %v1186_v13 = vsel %vm114_vm0, %v4963_v29, 0.0  ;;  %v1098_v32 = vsel %vm114_vm0, %v4966_v56, -inf  ;;  %v1119_v39 = vsub.f32 %v4674_v57, %v1085_v33  ;;  %v1472_v57 = vsub.f32 %v4649_v60, %v4922_v2 }
 0x3cf   :  { %1093 = vmax.xlane.f32.xlu0 %v1092_v42  ;;  %v4979_v42 = vld [vmem:[#allocation2 + $0x60] sm:$0xff]  ;;  %vm1046_vm11 = vcmp.gt.f32.partialorder %v4998_v11, 0.5 }
 0x3d0   :  { %1096 = vmax.xlane.f32.xlu1 %v1095_v10  ;;  %v1141_v40 = vmul.f32 1.442695, %v1119_v39 }
 0x3d2   :  { %v2029_v8 = vpop.f32.mrf.mxu0  ;;  %3347 = vpow2.f32 %v1141_v40  ;;  %v1118_v40 = vsub.f32 %v4677_v22, %v4877_v19 }
 0x3d3   :  { %v4950_v47 = vadd.f32 %v2029_v8, %v1938_v0  ;;  %3349 = vrcp.f32 %v1596_v63  ;;  %v1503_v0 = vmul.f32 1.442695, %v1472_v57 }
 0x3d5   :  { %3157 = vmatmul.msk.f32.gmra.mxu0 %vm2430_vm15, %v3141_v17  ;;  %v1558_v9 = vpop.permute.xlu2 %1557  ;;  %vm1045_vm15 = vcmp.gt.f32.partialorder %v4979_v42, 0.5  ;;  %v4989_v17 = vpop.permute.xlu1 %1559  ;;  %3351 = vpow2.f32 %v1503_v0 }
 0x3d6   :  { %v1615_v53 = vsel %vm114_vm0, %v1558_v9, 0.0  ;;  %v4985_v34 = vsel %vm1045_vm15, %v4683_v21, -1e+30 }
 0x3d7   :  { %v1101_v55 = vsel %vm114_vm0, %v4985_v34, -inf }
 0x3d8   :  { %1190 = vadd.xlane.f32.xlu1 %v1189_v15  ;;  %v3348_v8 = vpop.eup %3347 }
 0x3d9   :  { %v3350_v30 = vpop.eup %3349  ;;  %v4992_v26 = vmul.f32 %v4665_v23, %v3348_v8  ;;  %v5002_v23 = vsel %vm1046_vm11, %v4699_v14, -1e+30 }
 0x3da   :  { %v1652_v60 = vmul.f32 %v3350_v30, %v4480_v35  ;;  %v1104_v9 = vsel %vm114_vm0, %v5002_v23, -inf }
 0x3db   :  { %v1195_v15 = vsel %vm114_vm0, %v4992_v26, 0.0 }
 0x3dd   :  { %1187 = vadd.xlane.f32.xlu2 %v1186_v13  ;;  %v3352_v13 = vpop.eup %3351 }
 0x3de   :  { %v5005_v35 = vmul.f32 %v3352_v13, %v5806_v38  ;;  %v1139_v38 = vmul.f32 1.442695, %v1118_v40 }
 0x3e0   :  { %1099 = vmax.xlane.f32.xlu1 %v1098_v32 }
 0x3e3   :  { %1565 = vrot.lane.b32.xlu0 %v4974_v51, %s3499_s8 }
 0x3e8   :  { %1616 = vadd.xlane.f32.xlu1 %v1615_v53 }
 0x3ec   :  { %v1088_v10 = vpop.xlane.xlu2 %1087  ;;  %v1602_v21 = vpop.xlane.xlu0 %1601 }
 0x3ed   :  { %v1120_v53 = vsub.f32 %v4772_v48, %v1088_v10 }
 0x3f0   :  { %1102 = vmax.xlane.f32.xlu1 %v1101_v55  ;;  %v1143_v55 = vmul.f32 1.442695, %v1120_v53 }
 0x3f4   :  { %v1091_v2 = vpop.xlane.xlu2 %1090  ;;  %v1605_v63 = vpop.xlane.xlu0 %1604 }
 0x3f5   :  { %1687 = vrot.lane.b32.xlu2 %v1652_v60, %s3499_s8 }
 0x3f8   :  { %v1182_v33 = vpop.xlane.xlu1 %1181  ;;  %1196 = vadd.xlane.f32.xlu1 %v1195_v15  ;;  %v1121_v15 = vsub.f32 %v4792_v28, %v1091_v2 }
 0x3f9   :  { %3353 = vrcp.f32 %v1182_v33 }
 0x3fa   :  { %3355 = vrcp.f32 %v1599_v58 }
 0x3fc   :  { %v5007_v32 = vpop.xlane.xlu2 %1607 }
 0x3fd   :  { %1567 = vrot.lane.b32.xlu2 %v5005_v35, %s3499_s8 }
 0x3ff   :  { %v3354_v39 = vpop.eup %3353 }
 0x400   :  { %1105 = vmax.xlane.f32.xlu1 %v1104_v9  ;;  %v1242_v14 = vmul.f32 %v3354_v39, %v4796_v1  ;;  %v3356_v58 = vpop.eup %3355  ;;  %v1612_v1 = vsel %vm114_vm0, %v1556_v31, 0.0  ;;  %v1611_v13 = vpop.xlane.xlu1 %1610 }
 0x401   :  { %v1653_v57 = vmul.f32 %v3356_v58, %v4513_v49 }
 0x402   :  { %3015 = vmatmul.msk.f32.gmra.mxu1 %vm114_vm0, %v1242_v14 }
 0x404   :  { %v1185_v0 = vpop.xlane.xlu2 %1184 }
 0x405   :  { %3357 = vrcp.f32 %v1185_v0  ;;  %1689 = vrot.lane.b32.xlu2 %v1653_v57, %s3499_s8 }
 0x406   :  { %3359 = vpow2.f32 %v1139_v38 }
 0x407   :  { %v1682_v8 = vpop.permute.xlu0 %1681  ;;  %3361 = vpow2.f32 %v1143_v55 }
 0x408   :  { %3030 = vmatmul.msk.f32.vlgmr.msra.gmra.mxu2 %vm114_vm0, %v1682_v8 }
 0x40b   :  { %v3358_v22 = vpop.eup %3357 }
 0x40c   :  { %v1243_v19 = vmul.f32 %v3358_v22, %v4822_v43  ;;  %v3360_v30 = vpop.eup %3359  ;;  %v1145_v43 = vmul.f32 1.442695, %v1121_v15  ;;  %v5825_v22 = vld [vmem:[#allocation26_spill] sm:$0xff] }
 0x40d   :  { %1613 = vadd.xlane.f32.xlu0 %v1612_v1  ;;  %v5026_v10 = vmul.f32 %v4670_v45, %v3360_v30  ;;  %v3362_v60 = vpop.eup %3361 }
 0x40e   :  { %3016 = vmatmul.msk.f32.gmra.mxu1 %vm114_vm0, %v1243_v19  ;;  %v5032_v31 = vmul.f32 %v4764_v50, %v3362_v60  ;;  %3363 = vpow2.f32 %v1145_v43  ;;  %v1564_v9 = vpop.permute.xlu2 %1563  ;;  %v5067_v43 = vld [vmem:[#allocation2 + $0x70] sm:$0xff] }
 0x40f   :  { %v1562_v49 = vpop.permute.xlu0 %1561  ;;  %v1192_v33 = vsel %vm114_vm0, %v5026_v10, 0.0  ;;  %3365 = vrcp.f32 %v1602_v21  ;;  %v1624_v2 = vsel %vm114_vm0, %v1564_v9, 0.0  ;;  %v5046_v21 = vld [vmem:[#allocation2 + $0x78] sm:$0xff]  ;;  %vm1047_vm3 = vcmp.gt.f32.partialorder %v5067_v43, 0.5 }
 0x410   :  { %v1621_v48 = vsel %vm114_vm0, %v1562_v49, 0.0  ;;  %v1198_v45 = vsel %vm114_vm0, %v5032_v31, 0.0  ;;  %3367 = vrcp.f32 %v1605_v63  ;;  %vm1048_vm12 = vcmp.gt.f32.partialorder %v5046_v21, 0.5  ;;  %v5824_v63 = vld [vmem:[#allocation33_spill] sm:$0xff] }
 0x411   :  { %1622 = vadd.xlane.f32.xlu1 %v1621_v48  ;;  %v5050_v57 = vsel %vm1048_vm12, %v4720_v27, -1e+30  ;;  %3369 = vrcp.f32 %v5007_v32  ;;  %v5826_v48 = vld [vmem:[#allocation41_spill] sm:$0xff] }
 0x412   :  { %v1110_v0 = vsel %vm114_vm0, %v5050_v57, -inf  ;;  %3371 = vrcp.f32 %v1611_v13 }
 0x414   :  { %v3364_v50 = vpop.eup %3363 }
 0x415   :  { %1193 = vadd.xlane.f32.xlu0 %v1192_v33  ;;  %v3366_v40 = vpop.eup %3365  ;;  %v5040_v14 = vmul.f32 %v4783_v3, %v3364_v50  ;;  %v1618_v3 = vsel %vm114_vm0, %v4989_v17, 0.0 }
 0x416   :  { %v1654_v58 = vmul.f32 %v3366_v40, %v4564_v12  ;;  %v3368_v53 = vpop.eup %3367 }
 0x417   :  { %v1684_v39 = vpop.permute.xlu0 %1683  ;;  %v1201_v38 = vsel %vm114_vm0, %v5040_v14, 0.0  ;;  %v1655_v12 = vmul.f32 %v3368_v53, %v5824_v63  ;;  %v3370_v55 = vpop.eup %3369 }
 0x418   :  { %3031 = vmatmul.msk.f32.gmra.mxu2 %vm114_vm0, %v1684_v39  ;;  %v1686_v28 = vpop.permute.xlu1 %1685  ;;  %v1656_v27 = vmul.f32 %v3370_v55, %v5825_v22  ;;  %v3372_v19 = vpop.eup %3371 }
 0x419   :  { %1199 = vadd.xlane.f32.xlu1 %v1198_v45  ;;  %v1657_v60 = vmul.f32 %v3372_v19, %v5826_v48 }
 0x420   :  { %3032 = vmatmul.msk.f32.gmra.mxu2 %vm114_vm0, %v1686_v28  ;;  %v5827_v28 = vld [vmem:[#allocation29_spill] sm:$0xff] }
 0x421   :  { %1625 = vadd.xlane.f32.xlu1 %v1624_v2  ;;  %v5072_v2 = vsel %vm1047_vm3, %v5827_v28, -1e+30 }
 0x429   :  { %1691 = vrot.lane.b32.xlu0 %v1654_v58, %s3499_s8  ;;  %1202 = vadd.xlane.f32.xlu1 %v1201_v38  ;;  %v1107_v58 = vsel %vm114_vm0, %v5072_v2, -inf }
 0x42e   :  { %1619 = vadd.xlane.f32.xlu2 %v1618_v3 }
 0x431   :  { %1693 = vrot.lane.b32.xlu0 %v1655_v12, %s3499_s8  ;;  %1111 = vmax.xlane.f32.xlu1 %v1110_v0 }
 0x442   :  { %v1094_v1 = vpop.xlane.xlu0 %1093 }
 0x443   :  { %v1097_v8 = vpop.xlane.xlu1 %1096  ;;  %v1122_v17 = vsub.f32 %v4936_v7, %v1094_v1 }
 0x444   :  { %v1123_v32 = vsub.f32 %v4939_v44, %v1097_v8 }
 0x445   :  { %v1147_v49 = vmul.f32 1.442695, %v1122_v17 }
 0x446   :  { %1695 = vrot.lane.b32.xlu2 %v1656_v27, %s3499_s8  ;;  %v1149_v13 = vmul.f32 1.442695, %v1123_v32 }
 0x447   :  { %3373 = vpow2.f32 %v1147_v49 }
 0x44b   :  { %v1191_v30 = vpop.xlane.xlu1 %1190 }
 0x44d   :  { %v3374_v39 = vpop.eup %3373 }
 0x44e   :  { %1697 = vrot.lane.b32.xlu2 %v1657_v60, %s3499_s8  ;;  %v5080_v38 = vmul.f32 %v4926_v4, %v3374_v39  ;;  %v5828_v60 = vld [vmem:[#allocation51_spill] sm:$0xff] }
 0x450   :  { %v1188_v15 = vpop.xlane.xlu2 %1187  ;;  %v1204_v3 = vsel %vm114_vm0, %v5080_v38, 0.0 }
 0x451   :  { %3375 = vrcp.f32 %v1188_v15 }
 0x452   :  { %3377 = vrcp.f32 %v1191_v30 }
 0x453   :  { %v5065_v33 = vpop.xlane.xlu1 %1099  ;;  %3379 = vpow2.f32 %v1149_v13 }
 0x455   :  { %v1566_v7 = vpop.permute.xlu0 %1565 }
 0x456   :  { %v1627_v45 = vsel %vm114_vm0, %v1566_v7, 0.0 }
 0x457   :  { %v3376_v9 = vpop.eup %3375  ;;  %1628 = vadd.xlane.f32.xlu1 %v1627_v45 }
 0x458   :  { %v1688_v50 = vpop.permute.xlu2 %1687  ;;  %v1244_v44 = vmul.f32 %v3376_v9, %v4963_v29  ;;  %v3378_v53 = vpop.eup %3377  ;;  %v5829_v9 = vld [vmem:[#allocation49_spill] sm:$0xff] }
 0x459   :  { %3033 = vmatmul.msk.f32.gmra.mxu2 %vm114_vm0, %v1688_v50  ;;  %v3380_v63 = vpop.eup %3379  ;;  %v1245_v12 = vmul.f32 %v3378_v53, %v4953_v62 }
 0x45a   :  { %3017 = vmatmul.msk.f32.gmra.mxu1 %vm114_vm0, %v1244_v44  ;;  %v5087_v55 = vmul.f32 %v4929_v18, %v3380_v63 }
 0x45b   :  { %v1617_v40 = vpop.xlane.xlu1 %1616  ;;  %1108 = vmax.xlane.f32.xlu0 %v1107_v58 }
 0x45c   :  { %v1207_v4 = vsel %vm114_vm0, %v5087_v55, 0.0 }
 0x45f   :  { %1205 = vadd.xlane.f32.xlu1 %v1204_v3 }
 0x460   :  { %v1568_v29 = vpop.permute.xlu2 %1567 }
 0x461   :  { %v1630_v18 = vsel %vm114_vm0, %v1568_v29, 0.0 }
 0x462   :  { %3018 = vmatmul.msk.f32.gmra.mxu1 %vm114_vm0, %v1245_v12  ;;  %v1124_v12 = vsub.f32 %v4966_v56, %v5065_v33 }
 0x463   :  { %v1103_v0 = vpop.xlane.xlu1 %1102 }
 0x464   :  { %v1125_v22 = vsub.f32 %v4985_v34, %v1103_v0 }
 0x466   :  { %v1153_v1 = vmul.f32 1.442695, %v1125_v22 }
 0x467   :  { %1208 = vadd.xlane.f32.xlu1 %v1207_v4  ;;  %v1151_v4 = vmul.f32 1.442695, %v1124_v12  ;;  %v5832_v12 = vld [vmem:[#allocation17_spill] sm:$0xff] }
 0x468   :  { %v1690_v8 = vpop.permute.xlu2 %1689  ;;  %3381 = vpow2.f32 %v1153_v1 }
 0x469   :  { %3034 = vmatmul.msk.f32.gmra.mxu2 %vm114_vm0, %v1690_v8  ;;  %3383 = vrcp.f32 %v1617_v40 }
 0x46b   :  { %v1197_v27 = vpop.xlane.xlu1 %1196 }
 0x46e   :  { %v3382_v30 = vpop.eup %3381 }
 0x46f   :  { %v5096_v49 = vmul.f32 %v4979_v42, %v3382_v30  ;;  %v3384_v48 = vpop.eup %3383 }
 0x470   :  { %v1659_v15 = vmul.f32 %v3384_v48, %v5828_v60 }
 0x471   :  { %v1213_v34 = vsel %vm114_vm0, %v5096_v49, 0.0 }
 0x473   :  { %v1106_v17 = vpop.xlane.xlu1 %1105 }
 0x474   :  { %v1126_v62 = vsub.f32 %v5002_v23, %v1106_v17  ;;  %v5830_v17 = vld [vmem:[#allocation40_spill] sm:$0xff] }
 0x476   :  { %v1155_v19 = vmul.f32 1.442695, %v1126_v62 }
 0x477   :  { %1631 = vadd.xlane.f32.xlu2 %v1630_v18 }
 0x478   :  { %3385 = vpow2.f32 %v1155_v19 }
 0x47e   :  { %v3386_v32 = vpop.eup %3385 }
 0x47f   :  { %1214 = vadd.xlane.f32.xlu2 %v1213_v34  ;;  %v5103_v23 = vmul.f32 %v4998_v11, %v3386_v32 }
 0x480   :  { %v1614_v13 = vpop.xlane.xlu0 %1613  ;;  %1701 = vrot.lane.b32.xlu1 %v1659_v15, %s3499_s8 }
 0x481   :  { %3387 = vrcp.f32 %v1614_v13  ;;  %v1216_v42 = vsel %vm114_vm0, %v5103_v23, 0.0 }
 0x484   :  { %v1623_v7 = vpop.xlane.xlu1 %1622 }
 0x487   :  { %v3388_v39 = vpop.eup %3387  ;;  %1217 = vadd.xlane.f32.xlu2 %v1216_v42 }
 0x488   :  { %v1194_v45 = vpop.xlane.xlu0 %1193  ;;  %v1658_v28 = vmul.f32 %v3388_v39, %v5829_v9 }
 0x489   :  { %3389 = vrcp.f32 %v1194_v45 }
 0x48a   :  { %1699 = vrot.lane.b32.xlu0 %v1658_v28, %s3499_s8  ;;  %3391 = vrcp.f32 %v1197_v27 }
 0x48c   :  { %v1200_v50 = vpop.xlane.xlu1 %1199 }
 0x48d   :  { %3393 = vrcp.f32 %v1200_v50 }
 0x48f   :  { %v3390_v44 = vpop.eup %3389 }
 0x490   :  { %v1246_v40 = vmul.f32 %v3390_v44, %v5026_v10  ;;  %v3392_v58 = vpop.eup %3391 }
 0x491   :  { %v1247_v53 = vmul.f32 %v3392_v58, %v4992_v26 }
 0x492   :  { %3019 = vmatmul.msk.f32.gmra.mxu1 %vm114_vm0, %v1246_v40 }
 0x493   :  { %v3394_v29 = vpop.eup %3393 }
 0x494   :  { %v1626_v11 = vpop.xlane.xlu1 %1625  ;;  %v1248_v10 = vmul.f32 %v3394_v29, %v5032_v31 }
 0x49a   :  { %3020 = vmatmul.msk.f32.gmra.mxu1 %vm114_vm0, %v1247_v53 }
 0x49b   :  { %v1692_v3 = vpop.permute.xlu0 %1691 }
 0x49c   :  { %3035 = vmatmul.msk.f32.gmra.mxu2 %vm114_vm0, %v1692_v3  ;;  %v1203_v63 = vpop.xlane.xlu1 %1202 }
 0x49d   :  { %3395 = vrcp.f32 %v1203_v63 }
 0x4a1   :  { %v1620_v0 = vpop.xlane.xlu2 %1619 }
 0x4a2   :  { %3397 = vrcp.f32 %v1620_v0  ;;  %3021 = vmatmul.msk.f32.gmra.mxu1 %vm114_vm0, %v1248_v10  ;;  %v5834_v10 = vld [vmem:[#allocation21_spill] sm:$0xff]  ;;  %v5835_v0 = vld [vmem:[#allocation23_spill] sm:$0xff] }
 0x4a3   :  { %v1694_v8 = vpop.permute.xlu0 %1693  ;;  %v3396_v26 = vpop.eup %3395  ;;  %3399 = vpow2.f32 %v1151_v4  ;;  %v3162_v4 = vld [vmem:[%s5632_s4 + $0x20] sm:$0xff] }
 0x4a4   :  { %3036 = vmatmul.msk.f32.gmra.mxu2 %vm114_vm0, %v1694_v8  ;;  %3401 = vrcp.f32 %v1623_v7  ;;  %v1249_v27 = vmul.f32 %v3396_v26, %v5040_v14  ;;  %v1112_v34 = vpop.xlane.xlu1 %1111  ;;  %v5836_v8 = vld [vmem:[#allocation25_spill] sm:$0xff] }
 0x4a5   :  { %3403 = vrcp.f32 %v1626_v11  ;;  %v1128_v32 = vsub.f32 %v5050_v57, %v1112_v34 }
 0x4a7   :  { %v1159_v45 = vmul.f32 1.442695, %v1128_v32  ;;  %v5186_v32 = vpop.f32.mrf.mxu1 }
 0x4a8   :  { %v3398_v22 = vpop.eup %3397 }
 0x4a9   :  { %v1696_v1 = vpop.permute.xlu2 %1695  ;;  %v1660_v56 = vmul.f32 %v3398_v22, %v5830_v17  ;;  %v3400_v31 = vpop.eup %3399 }
 0x4aa   :  { %3022 = vmatmul.msk.f32.gmra.mxu1 %vm114_vm0, %v1249_v27  ;;  %v3402_v33 = vpop.eup %3401  ;;  %v5125_v62 = vmul.f32 %v4959_v16, %v3400_v31  ;;  %v3165_v16 = vld [vmem:[%s5632_s4 + $0x38] sm:$0xff] }
 0x4ab   :  { %1703 = vrot.lane.b32.xlu1 %v1660_v56, %s3499_s8  ;;  %v1661_v19 = vmul.f32 %v3402_v33, %v4849_v59  ;;  %v3404_v30 = vpop.eup %3403  ;;  %v3163_v59 = vld [vmem:[%s5632_s4 + $0x28] sm:$0xff]  ;;  %2207 = vmatpush.bf16.msrb.mxu2 %v3165_v16 }
 0x4ac   :  { %3037 = vmatmul.msk.f32.gmra.mxu2 %vm114_vm0, %v1696_v1  ;;  %v1210_v14 = vsel %vm114_vm0, %v5125_v62, 0.0  ;;  %v1662_v48 = vmul.f32 %v3404_v30, %v4888_v36  ;;  %2098 = vmatpush.bf16.msrb.mxu1 %v3163_v59 }
 0x4b0   :  { %2099 = vmatpush.bf16.msrb.mxu1 %v3162_v4 }
 0x4b1   :  { %v1698_v18 = vpop.permute.xlu2 %1697 }
 0x4b3   :  { %1705 = vrot.lane.b32.xlu1 %v1661_v19, %s3499_s8 }
 0x4b4   :  { %3038 = vmatmul.msk.f32.gmra.mxu2 %vm114_vm0, %v1698_v18  ;;  %1211 = vadd.xlane.f32.xlu0 %v1210_v14 }
 0x4bb   :  { %1707 = vrot.lane.b32.xlu1 %v1662_v48, %s3499_s8 }
 0x4ca   :  { %v1629_v60 = vpop.xlane.xlu1 %1628 }
 0x4cb   :  { %3405 = vrcp.f32 %v1629_v60 }
 0x4ce   :  { %v1109_v15 = vpop.xlane.xlu0 %1108 }
 0x4cf   :  { %v1127_v36 = vsub.f32 %v5072_v2, %v1109_v15  ;;  %v5831_v2 = vld [vmem:[#allocation13_spill] sm:$0xff] }
 0x4d1   :  { %v3406_v13 = vpop.eup %3405  ;;  %v1157_v7 = vmul.f32 1.442695, %v1127_v36  ;;  %v5837_v36 = vld [vmem:[#allocation14_spill] sm:$0xff] }
 0x4d2   :  { %v1206_v42 = vpop.xlane.xlu1 %1205  ;;  %v1663_v39 = vmul.f32 %v3406_v13, %v4974_v51  ;;  %v5838_v13 = vld [vmem:[#allocation18_spill] sm:$0xff] }
 0x4d3   :  { %3407 = vpow2.f32 %v1157_v7  ;;  %v2157_v7 = vpack.c.bf16 %v5838_v13, %v5837_v36  ;;  %v5858_v36 = vld [vmem:[#allocation48_spill] sm:$0xff] }
 0x4d4   :  { %3409 = vrcp.f32 %v1206_v42  ;;  %1709 = vrot.lane.b32.xlu0 %v1663_v39, %s3499_s8  ;;  %v5194_v39 = vpop.f32.mrf.mxu1 }
 0x4d5   :  { %3411 = vpow2.f32 %v1159_v45  ;;  %v5839_v45 = vld [vmem:[#allocation36_spill] sm:$0xff] }
 0x4d9   :  { %v3408_v9 = vpop.eup %3407 }
 0x4da   :  { %v3410_v28 = vpop.eup %3409  ;;  %v1209_v50 = vpop.xlane.xlu1 %1208  ;;  %v1175_v44 = vmul.f32 %v5067_v43, %v3408_v9  ;;  %v5840_v9 = vld [vmem:[#allocation44_spill] sm:$0xff] }
 0x4db   :  { %3413 = vrcp.f32 %v1209_v50  ;;  %v1250_v57 = vmul.f32 %v3410_v28, %v5080_v38  ;;  %v3412_v51 = vpop.eup %3411  ;;  %v2048_v28 = vpack.c.bf16 %v5840_v9, %v5839_v45  ;;  %v5859_v45 = vld [vmem:[#allocation74_spill] sm:$0xff]  ;;  %v5860_v9 = vld [vmem:[#allocation75_spill] sm:$0xff] }
 0x4dc   :  { %2626 = vrot.lane.b32.xlu0 %v5831_v2, %s3501_s9  ;;  %v1219_v40 = vsel %vm114_vm0, %v1175_v44, 0.0  ;;  %v1176_v11 = vmul.f32 %v5046_v21, %v3412_v51  ;;  %v5833_v21 = vld [vmem:[#allocation11_spill] sm:$0xff] }
 0x4dd   :  { %3023 = vmatmul.msk.f32.gmra.mxu1 %vm114_vm0, %v1250_v57  ;;  %1220 = vadd.xlane.f32.xlu2 %v1219_v40  ;;  %v5841_v57 = vld [vmem:[#allocation22_spill] sm:$0xff]  ;;  %v5842_v2 = vld [vmem:[#allocation27_spill] sm:$0xff] }
 0x4de   :  { %v1222_v3 = vsel %vm114_vm0, %v1176_v11, 0.0  ;;  %v2158_v40 = vpack.c.bf16 %v5842_v2, %v5841_v57 }
 0x4e1   :  { %v3414_v58 = vpop.eup %3413 }
 0x4e2   :  { %v1251_v53 = vmul.f32 %v3414_v58, %v5087_v55  ;;  %v5843_v58 = vld [vmem:[#allocation47_spill] sm:$0xff] }
 0x4e5   :  { %3024 = vmatmul.msk.f32.gmra.mxu1 %vm114_vm0, %v1251_v53  ;;  %1223 = vadd.xlane.f32.xlu1 %v1222_v3  ;;  %v5844_v53 = vld [vmem:[#allocation54_spill] sm:$0xff] }
 0x4e6   :  { %v2049_v3 = vpack.c.bf16 %v5844_v53, %v5843_v58  ;;  %v5862_v58 = vld [vmem:[#allocation50_spill] sm:$0xff] }
 0x4ea   :  { %v1632_v43 = vpop.xlane.xlu2 %1631 }
 0x4eb   :  { %3415 = vrcp.f32 %v1632_v43 }
 0x4f1   :  { %v3416_v38 = vpop.eup %3415 }
 0x4f2   :  { %v1664_v63 = vmul.f32 %v3416_v38, %v5005_v35  ;;  %v1702_v55 = vpop.permute.xlu1 %1701  ;;  %v3164_v35 = vld [vmem:[%s5632_s4 + $0x30] sm:$0xff]  ;;  %v1215_v1 = vpop.xlane.xlu2 %1214 }
 0x4f3   :  { %2208 = vmatpush.bf16.msrb.mxu2 %v3164_v35 }
 0x4f5   :  { %1711 = vrot.lane.b32.xlu2 %v1664_v63, %s3499_s8  ;;  %v5845_v63 = vld [vmem:[#allocation31_spill] sm:$0xff] }
 0x4fa   :  { %v1218_v33 = vpop.xlane.xlu2 %1217 }
 0x4fc   :  { %v1700_v29 = vpop.permute.xlu0 %1699 }
 0x4fd   :  { %2628 = vrot.lane.b32.xlu2 %v5832_v12, %s3501_s9  ;;  %3039 = vmatmul.msk.f32.gmra.mxu2 %vm114_vm0, %v1700_v29  ;;  %v5846_v29 = vld [vmem:[#allocation34_spill] sm:$0xff] }
 0x4fe   :  { %2624 = vrot.lane.b32.xlu1 %v5833_v21, %s3501_s9  ;;  %v2159_v12 = vpack.c.bf16 %v5846_v29, %v5845_v63  ;;  %v5865_v29 = vld [vmem:[#allocation76_spill] sm:$0xff] }
 0x505   :  { %2634 = vrot.lane.b32.xlu2 %v5834_v10, %s3501_s9  ;;  %3040 = vmatmul.msk.f32.gmra.mxu2 %vm114_vm0, %v1702_v55  ;;  %v5847_v10 = vld [vmem:[#allocation59_spill] sm:$0xff] }
 0x506   :  { %2630 = vrot.lane.b32.xlu1 %v5835_v0, %s3501_s9  ;;  %v5848_v0 = vld [vmem:[#allocation61_spill] sm:$0xff] }
 0x507   :  { %v2050_v35 = vpack.c.bf16 %v5848_v0, %v5847_v10 }
 0x50e   :  { %2636 = vrot.lane.b32.xlu1 %v5836_v8, %s3501_s9 }
 0x51d   :  { %v1704_v26 = vpop.permute.xlu1 %1703 }
 0x51e   :  { %3041 = vmatmul.msk.f32.gmra.mxu2 %vm114_vm0, %v1704_v26  ;;  %v5849_v26 = vld [vmem:[#allocation37_spill] sm:$0xff] }
 0x525   :  { %v1706_v22 = vpop.permute.xlu1 %1705 }
 0x526   :  { %3042 = vmatmul.msk.f32.gmra.mxu2 %vm114_vm0, %v1706_v22  ;;  %v5850_v22 = vld [vmem:[#allocation38_spill] sm:$0xff] }
 0x527   :  { %v1212_v27 = vpop.xlane.xlu0 %1211 }
 0x528   :  { %3417 = vrcp.f32 %v1212_v27  ;;  %v2160_v27 = vpack.c.bf16 %v5850_v22, %v5849_v26  ;;  %v5868_v26 = vld [vmem:[#allocation57_spill] sm:$0xff]  ;;  %v5869_v22 = vld [vmem:[#allocation55_spill] sm:$0xff] }
 0x529   :  { %3419 = vrcp.f32 %v1215_v1 }
 0x52a   :  { %3421 = vrcp.f32 %v1218_v33 }
 0x52d   :  { %v1708_v17 = vpop.permute.xlu1 %1707 }
 0x52e   :  { %3043 = vmatmul.msk.f32.gmra.mxu2 %vm114_vm0, %v1708_v17  ;;  %v3418_v56 = vpop.eup %3417 }
 0x52f   :  { %v1252_v31 = vmul.f32 %v3418_v56, %v5125_v62  ;;  %v3420_v19 = vpop.eup %3419  ;;  %v5184_v62 = vpop.f32.mrf.mxu2  ;;  %v5851_v56 = vld [vmem:[#allocation62_spill] sm:$0xff] }
 0x530   :  { %v1253_v18 = vmul.f32 %v3420_v19, %v5096_v49  ;;  %v3422_v14 = vpop.eup %3421 }
 0x531   :  { %3025 = vmatmul.msk.f32.gmra.mxu1 %vm114_vm0, %v1252_v31  ;;  %v1254_v30 = vmul.f32 %v3422_v14, %v5103_v23  ;;  %v5852_v31 = vld [vmem:[#allocation64_spill] sm:$0xff]  ;;  %v5854_v14 = vld [vmem:[#allocation42_spill] sm:$0xff] }
 0x532   :  { %v2051_v33 = vpack.c.bf16 %v5852_v31, %v5851_v56  ;;  %v5292_v31 = vpop.f32.mrf.mxu0 }
 0x537   :  { %v5190_v49 = vpop.f32.mrf.mxu2 }
 0x539   :  { %3026 = vmatmul.msk.f32.gmra.mxu1 %vm114_vm0, %v1253_v18  ;;  %v5853_v18 = vld [vmem:[#allocation39_spill] sm:$0xff] }
 0x53f   :  { %v5200_v50 = vpop.f32.mrf.mxu2 }
 0x541   :  { %3027 = vmatmul.msk.f32.gmra.mxu1 %vm114_vm0, %v1254_v30  ;;  %v2161_v30 = vpack.c.bf16 %v5854_v14, %v5853_v18  ;;  %v5872_v18 = vld [vmem:[#allocation77_spill] sm:$0xff]  ;;  %v5873_v14 = vld [vmem:[#allocation19_spill] sm:$0xff] }
 0x546   :  { %v1710_v48 = vpop.permute.xlu0 %1709 }
 0x547   :  { %3044 = vmatmul.msk.f32.gmra.mxu2 %vm114_vm0, %v1710_v48  ;;  %v5207_v51 = vpop.f32.mrf.mxu2 }
 0x54f   :  { %v5214_v43 = vpop.f32.mrf.mxu2 }
 0x550   :  { %v1221_v34 = vpop.xlane.xlu2 %1220 }
 0x551   :  { %3423 = vrcp.f32 %v1221_v34 }
 0x557   :  { %v3424_v16 = vpop.eup %3423  ;;  %v5221_v21 = vpop.f32.mrf.mxu2 }
 0x558   :  { %v1712_v59 = vpop.permute.xlu2 %1711  ;;  %v1224_v60 = vpop.xlane.xlu1 %1223  ;;  %v1255_v15 = vmul.f32 %v3424_v16, %v1175_v44  ;;  %v5855_v16 = vld [vmem:[#allocation68_spill] sm:$0xff] }
 0x559   :  { %3425 = vrcp.f32 %v1224_v60  ;;  %3045 = vmatmul.msk.f32.gmra.mxu2 %vm114_vm0, %v1712_v59  ;;  %v5202_v44 = vpop.f32.mrf.mxu1  ;;  %v5856_v59 = vld [vmem:[#allocation73_spill] sm:$0xff] }
 0x55a   :  { %3028 = vmatmul.msk.f32.gmra.mxu1 %vm114_vm0, %v1255_v15  ;;  %v2052_v60 = vpack.c.bf16 %v5856_v59, %v5855_v16  ;;  %v5301_v59 = vpop.f32.mrf.mxu0 }
 0x55f   :  { %v3426_v23 = vpop.eup %3425  ;;  %v5228_v4 = vpop.f32.mrf.mxu2 }
 0x560   :  { %v1256_v42 = vmul.f32 %v3426_v23, %v1176_v11  ;;  %v5857_v23 = vld [vmem:[#allocation46_spill] sm:$0xff] }
 0x561   :  { %3102 = vmatmul.msk.bf16.vlgmr.msrb.gmra.mxu2 %vm919_vm1, %v2157_v7  ;;  %v5209_v11 = vpop.f32.mrf.mxu1  ;;  %v2162_v13 = vpack.c.bf16 %v5858_v36, %v5857_v23  ;;  %v3443_v23 = vld [vmem:[%s5633_s5] ss:$0 sm:$0xff]  ;;  %v5875_v36 = vld [vmem:[#allocation63_spill] sm:$0xff]  ;;  %s3506_s5 = smov [#allocation5]  }
 0x562   :  { %3029 = vmatmul.msk.f32.gmra.mxu1 %vm114_vm0, %v1256_v42  ;;  %vm2816_vm0 = vcmask 523264  }
 0x567   :  { %v5236_v1 = vpop.f32.mrf.mxu2 }
 0x569   :  { %v5217_v38 = vpop.f32.mrf.mxu1 }
 0x56a   :  { %3086 = vmatmul.msk.bf16.vlgmr.msrb.gmra.mxu1 %vm919_vm1, %v2048_v28  ;;  %v2053_v28 = vpack.c.bf16 %v5860_v9, %v5859_v45  ;;  %v5876_v9 = vld [vmem:[#allocation35_spill] sm:$0xff] }
 0x56f   :  { %v5243_v19 = vpop.f32.mrf.mxu2 }
 0x571   :  { %3103 = vmatmul.msk.bf16.gmra.mxu2 %vm919_vm1, %v2158_v40  ;;  %v5224_v55 = vpop.f32.mrf.mxu1  ;;  %v5861_v40 = vld [vmem:[#allocation53_spill] sm:$0xff] }
 0x572   :  { %v5863_v53 = vpack.c.bf16 %v5861_v40, %v5862_v58 }
 0x579   :  { %v5231_v8 = vpop.f32.mrf.mxu1 }
 0x57a   :  { %3087 = vmatmul.msk.bf16.gmra.mxu1 %vm919_vm1, %v2049_v3 }
 0x580   :  { %v5250_v34 = vpop.f32.mrf.mxu2 }
 0x581   :  { %3104 = vmatmul.msk.bf16.gmra.mxu2 %vm919_vm1, %v2159_v12  ;;  %v5238_v17 = vpop.f32.mrf.mxu1  ;;  %v5866_v12 = vld [vmem:[#allocation15_spill] sm:$0xff] }
 0x582   :  { %v2054_v10 = vpack.c.bf16 %v5866_v12, %v5865_v29  ;;  %v5877_v12 = vld [vmem:[#allocation65_spill] sm:$0xff] }
 0x588   :  { %v5259_v7 = vpop.f32.mrf.mxu2 }
 0x589   :  { %v5247_v48 = vpop.f32.mrf.mxu1 }
 0x58a   :  { %3088 = vmatmul.msk.bf16.gmra.mxu1 %vm919_vm1, %v2050_v35 }
 0x591   :  { %3105 = vmatmul.msk.bf16.gmra.mxu2 %vm919_vm1, %v2160_v27  ;;  %v5254_v15 = vpop.f32.mrf.mxu1  ;;  %v5870_v27 = vpack.c.bf16 %v5868_v26, %v5869_v22  ;;  %v5878_v22 = vld [vmem:[#allocation43_spill] sm:$0xff] }
 0x599   :  { %v5262_v42 = vpop.f32.mrf.mxu1 }
 0x59a   :  { %3089 = vmatmul.msk.bf16.gmra.mxu1 %vm919_vm1, %v2051_v33 }
 0x5a1   :  { %3106 = vmatmul.msk.bf16.gmra.mxu2 %vm919_vm1, %v2161_v30  ;;  %v5266_v57 = vpop.f32.mrf.mxu2  ;;  %v2055_v30 = vpack.c.bf16 %v5873_v14, %v5872_v18 }
 0x5a9   :  { %v5275_v3 = vpop.f32.mrf.mxu2 }
 0x5aa   :  { %3090 = vmatmul.msk.bf16.gmra.mxu1 %vm919_vm1, %v2052_v60  ;;  %5864 = vst [vmem:[#allocation60_spill] sm:$0xff] %v5275_v3 }
 0x5ae   :  { %v5269_v2 = vpop.f32.mrf.mxu1 }
 0x5b1   :  { %3107 = vmatmul.msk.bf16.gmra.mxu2 %vm919_vm1, %v2162_v13  ;;  %v5282_v0 = vpop.f32.mrf.mxu2  ;;  %v1923_v13 = vadd.f32 %v3443_v23, %v5875_v36  ;;  %v5879_v36 = vld [vmem:[#allocation66_spill] sm:$0xff] }
 0x5b2   :  { %5867 = vst [vmem:[#allocation56_spill] sm:$0xff] %v5282_v0  ;;  %v1925_v0 = vadd.f32 %v3443_v23, %v5879_v36 }
 0x5b6   :  { %v5277_v63 = vpop.f32.mrf.mxu1 }
 0x5ba   :  { %3091 = vmatmul.msk.bf16.gmra.mxu1 %vm919_vm1, %v2053_v28  ;;  %v2032_v28 = vadd.f32 %v5876_v9, %v1923_v13  ;;  %v5880_v9 = vld [vmem:[#allocation16_spill] sm:$0xff] }
 0x5be   :  { %v5284_v35 = vpop.f32.mrf.mxu1 }
 0x5c1   :  { %3108 = vmatmul.msk.bf16.gmra.mxu2 %vm919_vm1, %v5863_v53  ;;  %v5310_v53 = vpop.f32.mrf.mxu0 }
 0x5ca   :  { %3092 = vmatmul.msk.bf16.gmra.mxu1 %vm919_vm1, %v2054_v10  ;;  %v5290_v56 = vpop.f32.mrf.mxu2  ;;  %v1924_v10 = vadd.f32 %v3443_v23, %v5877_v12  ;;  %v5882_v12 = vld [vmem:[#allocation67_spill] sm:$0xff] }
 0x5cb   :  { %5871 = vst [vmem:[#allocation58_spill] sm:$0xff] %v5290_v56  ;;  %v5315_v56 = vpop.f32.mrf.mxu0 }
 0x5d1   :  { %3109 = vmatmul.msk.bf16.gmra.mxu2 %vm919_vm1, %v5870_v27  ;;  %v2033_v27 = vadd.f32 %v5878_v22, %v1924_v10  ;;  %v1926_v10 = vadd.f32 %v3443_v23, %v5882_v12 }
 0x5d7   :  { %v5294_v33 = vpop.f32.mrf.mxu1 }
 0x5da   :  { %3093 = vmatmul.msk.bf16.gmra.mxu1 %vm919_vm1, %v2055_v30 }
 0x5dc   :  { %v5299_v16 = vpop.f32.mrf.mxu2 }
 0x5dd   :  { %5874 = vst [vmem:[#allocation33_spill] sm:$0xff] %v5299_v16  ;;  %v5885_v16 = vld [vmem:[#allocation69_spill] sm:$0xff] }
 0x5df   :  { %v5303_v60 = vpop.f32.mrf.mxu1 }
 0x5e4   :  { %v2210_v45 = vpop.f32.mrf.mxu2 }
 0x5e7   :  { %v2101_v40 = vpop.f32.mrf.mxu1 }
 0x5e8   :  { %v2141_v58 = vadd.f32 %v2101_v40, %v2032_v28 }
 0x5ea   :  { %v2250_v29 = vadd.f32 %v2210_v45, %v2141_v58  ;;  %v5881_v45 = vld [vmem:[#allocation45_spill] sm:$0xff] }
 0x5eb   :  { %v2034_v28 = vadd.f32 %v5881_v45, %v1925_v0  ;;  %v1927_v0 = vadd.f32 %v3443_v23, %v5885_v16 }
 0x5ec   :  { %v2212_v26 = vpop.f32.mrf.mxu2  ;;  %2560 = vrot.lane.b32.xlu0 %v2250_v29, %s3504_s2 }
 0x5ef   :  { %v2103_v18 = vpop.f32.mrf.mxu1 }
 0x5f0   :  { %v2142_v14 = vadd.f32 %v2103_v18, %v2033_v27  ;;  %v5326_v27 = vpop.f32.mrf.mxu0  ;;  %v5884_v18 = vld [vmem:[#allocation52_spill] sm:$0xff] }
 0x5f2   :  { %v2251_v30 = vadd.f32 %v2212_v26, %v2142_v14  ;;  %v5883_v26 = vld [vmem:[#allocation20_spill] sm:$0xff]  ;;  %v2035_v14 = vadd.f32 %v5884_v18, %v1926_v10 }
 0x5f4   :  { %v2215_v13 = vpop.f32.mrf.mxu2  ;;  %2632 = vrot.lane.b32.xlu0 %v5880_v9, %s3501_s9  ;;  %2562 = vrot.lane.b32.xlu2 %v2251_v30, %s3504_s2 }
 0x5f7   :  { %v2106_v40 = vpop.f32.mrf.mxu1 }
 0x5f8   :  { %v2143_v58 = vadd.f32 %v2106_v40, %v2034_v28  ;;  %v5333_v28 = vpop.f32.mrf.mxu3  ;;  %v2036_v40 = vadd.f32 %v4781_v37, %v1927_v0  ;;  %v5888_v37 = vld [vmem:[#allocation71_spill] sm:$0xff] }
 0x5f9   :  { %v1929_v0 = vadd.f32 %v3443_v23, %v5888_v37 }
 0x5fa   :  { %v2252_v29 = vadd.f32 %v2215_v13, %v2143_v58  ;;  %v5886_v13 = vld [vmem:[#allocation30_spill] sm:$0xff]  ;;  %v5336_v58 = vpop.f32.mrf.mxu0 }
 0x5fc   :  { %v2217_v22 = vpop.f32.mrf.mxu2  ;;  %2640 = vrot.lane.b32.xlu2 %v5883_v26, %s3501_s9  ;;  %2564 = vrot.lane.b32.xlu0 %v2252_v29, %s3504_s2  ;;  %v5887_v26 = vld [vmem:[#allocation70_spill] sm:$0xff] }
 0x5fd   :  { %v1928_v18 = vadd.f32 %v3443_v23, %v5887_v26 }
 0x5ff   :  { %v2108_v36 = vpop.f32.mrf.mxu1  ;;  %v2037_v16 = vadd.f32 %v4802_v46, %v1928_v18  ;;  %v5890_v18 = vld [vmem:[#allocation72_spill] sm:$0xff] }
 0x600   :  { %v2144_v9 = vadd.f32 %v2108_v36, %v2035_v14  ;;  %v5341_v14 = vpop.f32.mrf.mxu3 }
 0x602   :  { %v2253_v30 = vadd.f32 %v2217_v22, %v2144_v9 }
 0x604   :  { %v2220_v45 = vpop.f32.mrf.mxu2  ;;  %2638 = vrot.lane.b32.xlu0 %v5886_v13, %s3501_s9  ;;  %2566 = vrot.lane.b32.xlu2 %v2253_v30, %s3504_s2  ;;  %v5343_v30 = vpop.f32.mrf.mxu0 }
 0x607   :  { %v2111_v29 = vpop.f32.mrf.mxu1 }
 0x608   :  { %v2145_v12 = vadd.f32 %v2111_v29, %v2036_v40  ;;  %v5889_v40 = vld [vmem:[#allocation28_spill] sm:$0xff]  ;;  %v5350_v46 = vpop.f32.mrf.mxu3 }
 0x60a   :  { %v2254_v10 = vadd.f32 %v2220_v45, %v2145_v12  ;;  %v2038_v45 = vadd.f32 %v4813_v61, %v1929_v0 }
 0x60c   :  { %v2222_v22 = vpop.f32.mrf.mxu2  ;;  %2568 = vrot.lane.b32.xlu0 %v2254_v10, %s3504_s2  ;;  %v2517_v26 = vpop.f32.mrf.mxu0 }
 0x60f   :  { %v2113_v36 = vpop.f32.mrf.mxu1 }
 0x610   :  { %v2146_v9 = vadd.f32 %v2113_v36, %v2037_v16  ;;  %v1930_v16 = vadd.f32 %v3443_v23, %v5890_v18 }
 0x612   :  { %v2255_v13 = vadd.f32 %v2222_v22, %v2146_v9  ;;  %v5891_v22 = vld [vmem:[#allocation9_spill] sm:$0xff]  ;;  %v5892_v9 = vld [vmem:[#allocation32_spill] sm:$0xff] }
 0x614   :  { %v2225_v3 = vpop.f32.mrf.mxu2  ;;  %2644 = vrot.lane.b32.xlu0 %v5889_v40, %s3501_s9  ;;  %2570 = vrot.lane.b32.xlu2 %v2255_v13, %s3504_s2  ;;  %v2039_v13 = vadd.f32 %v4830_v52, %v1930_v16  ;;  %v5359_v40 = vpop.f32.mrf.mxu3 }
 0x615   :  { %v2520_v23 = vpop.f32.mrf.mxu0 }
 0x617   :  { %v2116_v29 = vpop.f32.mrf.mxu1 }
 0x618   :  { %v2147_v12 = vadd.f32 %v2116_v29, %v2038_v45  ;;  %v5893_v45 = vld [vmem:[#allocation10_spill] sm:$0xff]  ;;  %v5894_v29 = vld [vmem:[#allocation24_spill] sm:$0xff] }
 0x61a   :  { %v2256_v10 = vadd.f32 %v2225_v3, %v2147_v12 }
 0x61c   :  { %v2227_v36 = vpop.f32.mrf.mxu2  ;;  %2650 = vrot.lane.b32.xlu0 %v5891_v22, %s3501_s9  ;;  %2646 = vrot.lane.b32.xlu2 %v5892_v9, %s3501_s9  ;;  %v5370_v52 = vpop.f32.mrf.mxu3 }
 0x61d   :  { %2572 = vrot.lane.b32.xlu1 %v2256_v10, %s3504_s2  ;;  %v5895_v10 = vld [vmem:[#allocation8_spill] sm:$0xff] }
 0x61f   :  { %v2118_v61 = vpop.f32.mrf.mxu1 }
 0x620   :  { %v2148_v37 = vadd.f32 %v2118_v61, %v2039_v13 }
 0x622   :  { %v2257_v0 = vadd.f32 %v2227_v36, %v2148_v37  ;;  %v2523_v36 = vpop.f32.mrf.mxu0 }
 0x624   :  { %v2230_v3 = vpop.f32.mrf.mxu2  ;;  %2652 = vrot.lane.b32.xlu2 %v5893_v45, %s3501_s9  ;;  %2574 = vrot.lane.b32.xlu0 %v2257_v0, %s3504_s2 }
 0x625   :  { %2642 = vrot.lane.b32.xlu1 %v5894_v29, %s3501_s9  ;;  %v5382_v29 = vpop.permute.xlu2 %2628 }
 0x627   :  { %v2121_v12 = vpop.f32.mrf.mxu1 }
 0x628   :  { %v2149_v16 = vadd.f32 %v2121_v12, %v4846_v54 }
 0x62a   :  { %v2258_v13 = vadd.f32 %v2230_v3, %v2149_v16  ;;  %v2526_v45 = vpop.f32.mrf.mxu0 }
 0x62c   :  { %v2232_v18 = vpop.f32.mrf.mxu2  ;;  %2754 = vrot.lane.b32.xlu2 %v5301_v59, %s3504_s2  ;;  %2752 = vrot.lane.b32.xlu0 %v5292_v31, %s3504_s2  ;;  %v5896_v31 = vld [vmem:[#allocation12_spill] sm:$0xff]  ;;  %v5380_v59 = vpop.f32.mrf.mxu3 }
 0x62d   :  { %2648 = vrot.lane.b32.xlu1 %v5895_v10, %s3501_s9 }
 0x62f   :  { %v2123_v22 = vpop.f32.mrf.mxu1 }
 0x630   :  { %v2150_v9 = vadd.f32 %v2123_v22, %v4860_v5 }
 0x632   :  { %v2259_v61 = vadd.f32 %v2232_v18, %v2150_v9  ;;  %v2529_v22 = vpop.f32.mrf.mxu0 }
 0x634   :  { %v2235_v37 = vpop.f32.mrf.mxu2  ;;  %2576 = vrot.lane.b32.xlu2 %v2258_v13, %s3504_s2  ;;  %2578 = vrot.lane.b32.xlu0 %v2259_v61, %s3504_s2  ;;  %v5392_v18 = vpop.f32.mrf.mxu3 }
 0x635   :  { %2654 = vrot.lane.b32.xlu1 %v5896_v31, %s3501_s9 }
 0x637   :  { %v2126_v0 = vpop.f32.mrf.mxu1 }
 0x638   :  { %v2151_v5 = vadd.f32 %v2126_v0, %v4874_v24 }
 0x63a   :  { %v2260_v10 = vadd.f32 %v2235_v37, %v2151_v5  ;;  %v2532_v24 = vpop.f32.mrf.mxu0 }
 0x63c   :  { %v2237_v54 = vpop.f32.mrf.mxu2  ;;  %2760 = vrot.lane.b32.xlu2 %v5326_v27, %s3504_s2  ;;  %2758 = vrot.lane.b32.xlu0 %v5315_v56, %s3504_s2  ;;  %v2635_v56 = vpop.permute.xlu2 %2634 }
 0x63d   :  { %2756 = vrot.lane.b32.xlu1 %v5310_v53, %s3504_s2  ;;  %v2336_v9 = vpop.f32.mrf.mxu3 }
 0x63f   :  { %v2128_v3 = vpop.f32.mrf.mxu1 }
 0x640   :  { %v2152_v12 = vadd.f32 %v2128_v3, %v4885_v41  ;;  %v2627_v41 = vpop.permute.xlu0 %2626 }
 0x642   :  { %v2261_v16 = vadd.f32 %v2237_v54, %v2152_v12 }
 0x644   :  { %2580 = vrot.lane.b32.xlu2 %v2260_v10, %s3504_s2  ;;  %2582 = vrot.lane.b32.xlu0 %v2261_v16, %s3504_s2  ;;  %v2240_v27 = vpop.f32.mrf.mxu2 }
 0x645   :  { %2762 = vrot.lane.b32.xlu1 %v5336_v58, %s3504_s2 }
 0x647   :  { %v2131_v53 = vpop.f32.mrf.mxu1 }
 0x648   :  { %v2153_v13 = vadd.f32 %v2131_v53, %v4901_v6  ;;  %v2535_v6 = vpop.f32.mrf.mxu0 }
 0x64a   :  { %v2262_v54 = vadd.f32 %v2240_v27, %v2153_v13 }
 0x64c   :  { %2766 = vrot.lane.b32.xlu2 %v2517_v26, %s3504_s2  ;;  %2764 = vrot.lane.b32.xlu0 %v5343_v30, %s3504_s2  ;;  %v2242_v37 = vpop.f32.mrf.mxu2 }
 0x64d   :  { %2768 = vrot.lane.b32.xlu1 %v2520_v23, %s3504_s2  ;;  %v2339_v23 = vpop.f32.mrf.mxu3 }
 0x64e   :  { %v2563_v61 = vpop.permute.xlu2 %2562 }
 0x64f   :  { %v2801_v58 = vsel %vm919_vm1, %v5190_v49, %v2563_v61  ;;  %v2133_v31 = vpop.f32.mrf.mxu1 }
 0x650   :  { %v2154_v0 = vadd.f32 %v2133_v31, %v4913_v20  ;;  %v5407_v26 = vsel %vm2816_vm0, %v2801_v58, %v2627_v41  ;;  %v2538_v16 = vpop.f32.mrf.mxu0 }
 0x652   :  { %v2263_v30 = vadd.f32 %v2242_v37, %v2154_v0  ;;  %v5435_v0 = vpop.permute.xlu1 %2624 }
 0x654   :  { %2770 = vrot.lane.b32.xlu0 %v2523_v36, %s3504_s2  ;;  %2584 = vrot.lane.b32.xlu2 %v2262_v54, %s3504_s2  ;;  %v2245_v49 = vpop.f32.mrf.mxu2 }
 0x655   :  { %2586 = vrot.lane.b32.xlu1 %v2263_v30, %s3504_s2  ;;  %v2342_v36 = vpop.f32.mrf.mxu3 }
 0x656   :  { %v2641_v10 = vpop.permute.xlu2 %2640 }
 0x657   :  { %v2136_v5 = vpop.f32.mrf.mxu1 }
 0x658   :  { %v2155_v3 = vadd.f32 %v2136_v5, %v4932_v25 }
 0x65a   :  { %v2264_v12 = vadd.f32 %v2245_v49, %v2155_v3 }
 0x65c   :  { %2772 = vrot.lane.b32.xlu2 %v2526_v45, %s3504_s2  ;;  %2588 = vrot.lane.b32.xlu0 %v2264_v12, %s3504_s2  ;;  %v2247_v13 = vpop.f32.mrf.mxu2 }
 0x65d   :  { %2774 = vrot.lane.b32.xlu1 %v2529_v22, %s3504_s2  ;;  %v2345_v41 = vpop.f32.mrf.mxu3  ;;  %v2541_v22 = vpop.f32.mrf.mxu0 }
 0x65e   :  { %v5416_v20 = vpop.permute.xlu0 %2560  ;;  %v5421_v25 = vpop.permute.xlu2 %2566 }
 0x65f   :  { %v2138_v27 = vpop.f32.mrf.mxu1 }
 0x660   :  { %v2156_v53 = vadd.f32 %v2138_v27, %v4950_v47 }
 0x662   :  { %v2265_v61 = vadd.f32 %v2247_v13, %v2156_v53 }
 0x664   :  { %2778 = vrot.lane.b32.xlu2 %v2535_v6, %s3504_s2  ;;  %2776 = vrot.lane.b32.xlu0 %v2532_v24, %s3504_s2 }
 0x665   :  { %2780 = vrot.lane.b32.xlu1 %v2538_v16, %s3504_s2  ;;  %v2348_v31 = vpop.f32.mrf.mxu3 }
 0x666   :  { %v2633_v45 = vpop.permute.xlu0 %2632 }
 0x66c   :  { %2782 = vrot.lane.b32.xlu0 %v2541_v22, %s3504_s2  ;;  %2590 = vrot.lane.b32.xlu2 %v2265_v61, %s3504_s2 }
 0x66d   :  { %2690 = vrot.lane.b32.xlu1 %v5341_v14, %s3499_s8 }
 0x66e   :  { %v5428_v37 = vpop.permute.xlu0 %2564  ;;  %v2571_v24 = vpop.permute.xlu2 %2570 }
 0x66f   :  { %v2805_v58 = vsel %vm919_vm1, %v5221_v21, %v2571_v24  ;;  %v2351_v21 = vpop.f32.mrf.mxu3 }
 0x670   :  { %v5433_v47 = vsel %vm2816_vm0, %v2805_v58, %v2635_v56  ;;  %v5449_v56 = vpop.permute.xlu1 %2630 }
 0x674   :  { %2692 = vrot.lane.b32.xlu0 %v5350_v46, %s3499_s8  ;;  %2688 = vrot.lane.b32.xlu2 %v5333_v28, %s3499_s8 }
 0x675   :  { %2696 = vrot.lane.b32.xlu1 %v5370_v52, %s3499_s8 }
 0x676   :  { %v2639_v14 = vpop.permute.xlu0 %2638  ;;  %v5443_v54 = vpop.permute.xlu2 %2646 }
 0x678   :  { %v2637_v6 = vpop.permute.xlu1 %2636 }
 0x67c   :  { %2698 = vrot.lane.b32.xlu0 %v5380_v59, %s3499_s8  ;;  %2694 = vrot.lane.b32.xlu2 %v5359_v40, %s3499_s8 }
 0x67d   :  { %2702 = vrot.lane.b32.xlu1 %v2336_v9, %s3499_s8  ;;  %v2354_v9 = vpop.f32.mrf.mxu3 }
 0x67e   :  { %v2569_v46 = vpop.permute.xlu0 %2568  ;;  %v5452_v30 = vpop.permute.xlu2 %2652 }
 0x67f   :  { %v2804_v28 = vsel %vm919_vm1, %v5214_v43, %v2569_v46 }
 0x680   :  { %v5457_v52 = vsel %vm2816_vm0, %v2804_v28, %v2633_v45 }
 0x684   :  { %2704 = vrot.lane.b32.xlu0 %v2339_v23, %s3499_s8  ;;  %2700 = vrot.lane.b32.xlu2 %v5392_v18, %s3499_s8 }
 0x685   :  { %2708 = vrot.lane.b32.xlu1 %v2345_v41, %s3499_s8  ;;  %v2357_v16 = vpop.f32.mrf.mxu3 }
 0x686   :  { %v2645_v40 = vpop.permute.xlu0 %2644  ;;  %v2755_v59 = vpop.permute.xlu2 %2754 }
 0x687   :  { %v2851_v5 = vsel %vm919_vm1, %v5194_v39, %v2755_v59 }
 0x688   :  { %v2868_v43 = vsel %vm2866_vm13, %v2851_v5, 0.0 }
 0x689   :  { %2886 = vst [vmem:[#allocation5 + $0x18] sm:$0xff] %v2868_v43 }
 0x68c   :  { %2710 = vrot.lane.b32.xlu0 %v2348_v31, %s3499_s8  ;;  %2706 = vrot.lane.b32.xlu2 %v2342_v36, %s3499_s8 }
 0x68d   :  { %2714 = vrot.lane.b32.xlu1 %v2354_v9, %s3499_s8  ;;  %v2360_v13 = vpop.f32.mrf.mxu3 }
 0x68e   :  { %v5469_v18 = vpop.permute.xlu0 %2650  ;;  %v2577_v23 = vpop.permute.xlu2 %2576 }
 0x68f   :  { %v2808_v3 = vsel %vm919_vm1, %v5243_v19, %v2577_v23  ;;  %v2573_v49 = vpop.permute.xlu1 %2572 }
 0x690   :  { %v2806_v12 = vsel %vm919_vm1, %v5228_v4, %v2573_v49  ;;  %v5476_v39 = vsel %vm2816_vm0, %v2808_v3, %v2641_v10 }
 0x691   :  { %v5479_v27 = vsel %vm2816_vm0, %v2806_v12, %v2637_v6 }
 0x694   :  { %2716 = vrot.lane.b32.xlu0 %v2357_v16, %s3499_s8  ;;  %2712 = vrot.lane.b32.xlu2 %v2351_v21, %s3499_s8 }
 0x696   :  { %v2575_v36 = vpop.permute.xlu0 %2574  ;;  %v2761_v53 = vpop.permute.xlu2 %2760 }
 0x697   :  { %v2807_v19 = vsel %vm919_vm1, %v5236_v1, %v2575_v36  ;;  %v2854_v45 = vsel %vm919_vm1, %v5217_v38, %v2761_v53  ;;  %v5487_v4 = vpop.permute.xlu1 %2642 }
 0x698   :  { %v2871_v10 = vsel %vm2866_vm13, %v2854_v45, 0.0  ;;  %v5491_v41 = vsel %vm2816_vm0, %v2807_v19, %v2639_v14 }
 0x699   :  { %2892 = vst [vmem:[#allocation5 + $0x48] sm:$0xff] %v2871_v10 }
 0x69c   :  { %2718 = vrot.lane.b32.xlu2 %v2360_v13, %s3499_s8  ;;  %s2919_s8 = sshll.u32 %s3506_s5, 4  ;;  %s2920_s8 = int_to_ptr.vmem [resolvable:$true] %s2919_s8 }
 0x69e   :  { %v2753_v61 = vpop.permute.xlu0 %2752  ;;  %v2581_v22 = vpop.permute.xlu2 %2580 }
 0x69f   :  { %v2850_v24 = vsel %vm919_vm1, %v5186_v32, %v2753_v61  ;;  %v2810_v1 = vsel %vm919_vm1, %v5259_v7, %v2581_v22  ;;  %v5498_v38 = vpop.permute.xlu1 %2648 }
 0x6a0   :  { %v2867_v58 = vsel %vm2866_vm13, %v2850_v24, 0.0  ;;  %v5502_v31 = vsel %vm2816_vm0, %v2810_v1, %v2645_v40 }
 0x6a1   :  { %2884 = vst [vmem:[#allocation5 + $0x8] sm:$0xff] %v2867_v58 }
 0x6a6   :  { %v5504_v14 = vpop.permute.xlu0 %2578  ;;  %v2767_v21 = vpop.permute.xlu2 %2766 }
 0x6a7   :  { %v2857_v46 = vsel %vm919_vm1, %v5238_v17, %v2767_v21  ;;  %v5508_v28 = vpop.permute.xlu1 %2654 }
 0x6a8   :  { %v2874_v32 = vsel %vm2866_vm13, %v2857_v46, 0.0 }
 0x6a9   :  { %2898 = vst [vmem:[#allocation5 + $0x78] sm:$0xff] %v2874_v32 }
 0x6ae   :  { %v2759_v7 = vpop.permute.xlu0 %2758  ;;  %v5511_v59 = vpop.permute.xlu2 %2584 }
 0x6af   :  { %v2853_v9 = vsel %vm919_vm1, %v5209_v11, %v2759_v7  ;;  %v2757_v40 = vpop.permute.xlu1 %2756 }
 0x6b0   :  { %v2870_v6 = vsel %vm2866_vm13, %v2853_v9, 0.0  ;;  %v2852_v5 = vsel %vm919_vm1, %v5202_v44, %v2757_v40 }
 0x6b1   :  { %2890 = vst [vmem:[#allocation5 + $0x38] sm:$0xff] %v2870_v6  ;;  %v2869_v17 = vsel %vm2866_vm13, %v2852_v5, 0.0 }
 0x6b2   :  { %2888 = vst [vmem:[#allocation5 + $0x28] sm:$0xff] %v2869_v17 }
 0x6b6   :  { %v2583_v43 = vpop.permute.xlu0 %2582  ;;  %v2773_v23 = vpop.permute.xlu2 %2772 }
 0x6b7   :  { %v2811_v3 = vsel %vm919_vm1, %v5266_v57, %v2583_v43  ;;  %v2860_v49 = vsel %vm919_vm1, %v5262_v42, %v2773_v23  ;;  %v2763_v12 = vpop.permute.xlu1 %2762 }
 0x6b8   :  { %v2877_v11 = vsel %vm2866_vm13, %v2860_v49, 0.0  ;;  %v2855_v16 = vsel %vm919_vm1, %v5224_v55, %v2763_v12  ;;  %v5528_v44 = vsel %vm2816_vm0, %v2811_v3, %v5443_v54 }
 0x6b9   :  { %2904 = vst [vmem:[#allocation5 + $0xa8] sm:$0xff] %v2877_v11  ;;  %v2872_v36 = vsel %vm2866_vm13, %v2855_v16, 0.0 }
 0x6ba   :  { %2894 = vst [vmem:[#allocation5 + $0x58] sm:$0xff] %v2872_v36 }
 0x6be   :  { %v2765_v53 = vpop.permute.xlu0 %2764  ;;  %v2779_v19 = vpop.permute.xlu2 %2778 }
 0x6bf   :  { %v2856_v57 = vsel %vm919_vm1, %v5231_v8, %v2765_v53  ;;  %v2863_v42 = vsel %vm919_vm1, %v5284_v35, %v2779_v19  ;;  %v2769_v45 = vpop.permute.xlu1 %2768 }
 0x6c0   :  { %v2873_v10 = vsel %vm2866_vm13, %v2856_v57, 0.0  ;;  %v2880_v55 = vsel %vm2866_vm13, %v2863_v42, 0.0  ;;  %v2858_v54 = vsel %vm919_vm1, %v5247_v48, %v2769_v45  ;;  %v2800_v48 = vsel %vm919_vm1, %v5184_v62, %v5416_v20  ;;  %v5898_v45 = vld [vmem:[#allocation33_spill] sm:$0xff] }
 0x6c1   :  { %2896 = vst [vmem:[#allocation5 + $0x68] sm:$0xff] %v2873_v10  ;;  %v2875_v13 = vsel %vm2866_vm13, %v2858_v54, 0.0  ;;  %v2817_v21 = vsel %vm2816_vm0, %v2800_v48, %v5435_v0  ;;  %v2803_v62 = vsel %vm919_vm1, %v5207_v51, %v5421_v25 }
 0x6c2   :  { %2910 = vst [vmem:[#allocation5 + $0xd8] sm:$0xff] %v2880_v55  ;;  %v2820_v40 = vsel %vm2816_vm0, %v2803_v62, %v5449_v56 }
 0x6c3   :  { %2900 = vst [vmem:[#allocation5 + $0x88] sm:$0xff] %v2875_v13 }
 0x6c6   :  { %v2771_v61 = vpop.permute.xlu0 %2770  ;;  %v5540_v22 = vpop.permute.xlu2 %2590 }
 0x6c7   :  { %v2859_v8 = vsel %vm919_vm1, %v5254_v15, %v2771_v61  ;;  %v5544_v35 = vpop.permute.xlu1 %2586  ;;  %v5899_v61 = vld [vmem:[#allocation56_spill] sm:$0xff] }
 0x6c8   :  { %v2876_v24 = vsel %vm2866_vm13, %v2859_v8, 0.0 }
 0x6c9   :  { %2902 = vst [vmem:[#allocation5 + $0x98] sm:$0xff] %v2876_v24 }
 0x6ce   :  { %v5550_v1 = vpop.permute.xlu0 %2588  ;;  %v2689_v58 = vpop.permute.xlu2 %2688 }
 0x6cf   :  { %v2834_v46 = vsel %vm2833_vm14, %v2817_v21, %v2689_v58  ;;  %v2775_v32 = vpop.permute.xlu1 %2774 }
 0x6d0   :  { %2883 = vst [vmem:[#allocation5] sm:$0xff] %v2834_v46  ;;  %v2861_v15 = vsel %vm919_vm1, %v5269_v2, %v2775_v32 }
 0x6d1   :  { %v2878_v7 = vsel %vm2866_vm13, %v2861_v15, 0.0 }
 0x6d2   :  { %2906 = vst [vmem:[#allocation5 + $0xb8] sm:$0xff] %v2878_v7 }
 0x6d6   :  { %v2777_v20 = vpop.permute.xlu0 %2776  ;;  %v2695_v9 = vpop.permute.xlu2 %2694 }
 0x6d7   :  { %v2862_v0 = vsel %vm919_vm1, %v5277_v63, %v2777_v20  ;;  %v2837_v6 = vsel %vm2833_vm14, %v2820_v40, %v2695_v9  ;;  %v2781_v5 = vpop.permute.xlu1 %2780 }
 0x6d8   :  { %v2879_v2 = vsel %vm2866_vm13, %v2862_v0, 0.0  ;;  %2889 = vst [vmem:[#allocation5 + $0x30] sm:$0xff] %v2837_v6  ;;  %v2864_v17 = vsel %vm919_vm1, %v5294_v33, %v2781_v5  ;;  %v2802_v33 = vsel %vm919_vm1, %v5200_v50, %v5428_v37 }
 0x6d9   :  { %2908 = vst [vmem:[#allocation5 + $0xc8] sm:$0xff] %v2879_v2  ;;  %v2881_v51 = vsel %vm2866_vm13, %v2864_v17, 0.0 }
 0x6da   :  { %2912 = vst [vmem:[#allocation5 + $0xe8] sm:$0xff] %v2881_v51 }
 0x6de   :  { %v2783_v25 = vpop.permute.xlu0 %2782  ;;  %v2701_v43 = vpop.permute.xlu2 %2700 }
 0x6df   :  { %v2865_v56 = vsel %vm919_vm1, %v5303_v60, %v2783_v25  ;;  %v2840_v63 = vsel %vm2833_vm14, %v5479_v27, %v2701_v43  ;;  %v2691_v23 = vpop.permute.xlu1 %2690  ;;  %v2809_v60 = vsel %vm919_vm1, %v5250_v34, %v5504_v14  ;;  %v2819_v27 = vsel %vm2816_vm0, %v2802_v33, %v5382_v29  ;;  %v5897_v34 = vld [vmem:[#allocation60_spill] sm:$0xff] }
 0x6e0   :  { %v2882_v3 = vsel %vm2866_vm13, %v2865_v56, 0.0  ;;  %2895 = vst [vmem:[#allocation5 + $0x60] sm:$0xff] %v2840_v63  ;;  %v2835_v49 = vsel %vm2833_vm14, %v5407_v26, %v2691_v23  ;;  %v2826_v16 = vsel %vm2816_vm0, %v2809_v60, %v5487_v4  ;;  %v2812_v29 = vsel %vm919_vm1, %v5897_v34, %v5511_v59 }
 0x6e1   :  { %2914 = vst [vmem:[#allocation5 + $0xf8] sm:$0xff] %v2882_v3  ;;  %v2829_v4 = vsel %vm2816_vm0, %v2812_v29, %v5498_v38  ;;  %v2815_v59 = vsel %vm919_vm1, %v5898_v45, %v5540_v22  ;;  %v2813_v22 = vsel %vm919_vm1, %v5899_v61, %v5544_v35 }
 0x6e2   :  { %2885 = vst [vmem:[#allocation5 + $0x10] sm:$0xff] %v2835_v49  ;;  %v2832_v38 = vsel %vm2816_vm0, %v2815_v59, %v5508_v28 }
 0x6e6   :  { %v2693_v12 = vpop.permute.xlu0 %2692  ;;  %v2707_v11 = vpop.permute.xlu2 %2706 }
 0x6e7   :  { %v2836_v26 = vsel %vm2833_vm14, %v2819_v27, %v2693_v12  ;;  %v2843_v36 = vsel %vm2833_vm14, %v2826_v16, %v2707_v11  ;;  %v2697_v53 = vpop.permute.xlu1 %2696 }
 0x6e8   :  { %2887 = vst [vmem:[#allocation5 + $0x20] sm:$0xff] %v2836_v26  ;;  %v2838_v50 = vsel %vm2833_vm14, %v5457_v52, %v2697_v53 }
 0x6e9   :  { %2901 = vst [vmem:[#allocation5 + $0x90] sm:$0xff] %v2843_v36 }
 0x6ea   :  { %2891 = vst [vmem:[#allocation5 + $0x40] sm:$0xff] %v2838_v50 }
 0x6ee   :  { %v2699_v37 = vpop.permute.xlu0 %2698  ;;  %v2713_v14 = vpop.permute.xlu2 %2712 }
 0x6ef   :  { %v2839_v19 = vsel %vm2833_vm14, %v5433_v47, %v2699_v37  ;;  %v2846_v57 = vsel %vm2833_vm14, %v2829_v4, %v2713_v14  ;;  %v2703_v42 = vpop.permute.xlu1 %2702 }
 0x6f0   :  { %2893 = vst [vmem:[#allocation5 + $0x50] sm:$0xff] %v2839_v19  ;;  %v2841_v52 = vsel %vm2833_vm14, %v5491_v41, %v2703_v42 }
 0x6f1   :  { %2907 = vst [vmem:[#allocation5 + $0xc0] sm:$0xff] %v2846_v57 }
 0x6f2   :  { %2897 = vst [vmem:[#allocation5 + $0x70] sm:$0xff] %v2841_v52 }
 0x6f6   :  { %v2705_v10 = vpop.permute.xlu0 %2704  ;;  %v2719_v55 = vpop.permute.xlu2 %2718 }
 0x6f7   :  { %v2842_v47 = vsel %vm2833_vm14, %v5476_v39, %v2705_v10  ;;  %v2849_v54 = vsel %vm2833_vm14, %v2832_v38, %v2719_v55  ;;  %v2709_v13 = vpop.permute.xlu1 %2708  ;;  %v2830_v39 = vsel %vm2816_vm0, %v2813_v22, %v5469_v18 }
 0x6f8   :  { %2899 = vst [vmem:[#allocation5 + $0x80] sm:$0xff] %v2842_v47  ;;  %v2844_v41 = vsel %vm2833_vm14, %v5502_v31, %v2709_v13  ;;  %v5900_v31 = vld [vmem:[#allocation58_spill] sm:$0xff] }
 0x6f9   :  { %2913 = vst [vmem:[#allocation5 + $0xf0] sm:$0xff] %v2849_v54  ;;  %v2814_v35 = vsel %vm919_vm1, %v5900_v31, %v5550_v1 }
 0x6fa   :  { %2903 = vst [vmem:[#allocation5 + $0xa0] sm:$0xff] %v2844_v41  ;;  %v2831_v18 = vsel %vm2816_vm0, %v2814_v35, %v5452_v30 }
 0x6fe   :  { %v2711_v8 = vpop.permute.xlu0 %2710 }
 0x6ff   :  { %v2845_v28 = vsel %vm2833_vm14, %v5528_v44, %v2711_v8  ;;  %v2715_v24 = vpop.permute.xlu1 %2714 }
 0x700   :  { %2905 = vst [vmem:[#allocation5 + $0xb0] sm:$0xff] %v2845_v28  ;;  %v2847_v48 = vsel %vm2833_vm14, %v2830_v39, %v2715_v24 }
 0x701   :  { %2909 = vst [vmem:[#allocation5 + $0xd0] sm:$0xff] %v2847_v48 }
 0x706   :  { %v2717_v44 = vpop.permute.xlu0 %2716 }
 0x707   :  { %v2848_v58 = vsel %vm2833_vm14, %v2831_v18, %v2717_v44 }
 0x708   :  { %2911 = vst [vmem:[#allocation5 + $0xe0] sm:$0xff] %v2848_v58 }
 0x709   :  { %2927 = dma.vmem_to_hbm [thread:$0]  %s2920_s8, 4096, %s2922_s22, [#allocation4], %s3507_s23, %s3507_s23, %s3508_s24  }
 0x70a   :  { %3494 = dma.done.wait [#allocation4], 4096  }
 0x70b   :  { %3495 = vsyncadd [#allocation4], 4294963200 }
 0x70c   :  { %2932 = vsyncpa [#allocation3], 1 }
 0x70d   :  { %2933 = vsyncpa [#allocation4], 1 }

</bundles_post_ra>
